<compile_context>
chip_gen: v7x
topology: tpu7x:2x2x1
jax: 0.10.0
libtpu: 0.0.40
codegen_flags: <defaults>
</compile_context>

<pallas_src>
import functools
import math

import jax
import jax.numpy as jnp
from jax.experimental import pallas as pl
from jax.experimental.pallas import tpu as pltpu


# ----------------------------------------------------------------------------
# In-kernel helpers
# ----------------------------------------------------------------------------
def _ln_pair(a, b, ga, ba, gb, bb, eps=1e-5):
    """LayerNorm over the virtual concat [a, b] (last axis) without materializing it."""
    d2 = a.shape[-1] + b.shape[-1]
    total = jnp.sum(a, axis=-1, keepdims=True) + jnp.sum(b, axis=-1, keepdims=True)
    mean = total / d2
    ac = a - mean
    bc = b - mean
    var = (jnp.sum(ac * ac, axis=-1, keepdims=True)
           + jnp.sum(bc * bc, axis=-1, keepdims=True)) / d2
    rstd = jax.lax.rsqrt(var + eps)
    return ac * rstd * ga + ba, bc * rstd * gb + bb


def _cross_attention(xq, xkv, bsz, seq,
                     wq_ref, bq_ref, wk_ref, bk_ref, wv_ref, bv_ref,
                     wo_ref, bo_ref, nhead):
    """torch.nn.MultiheadAttention (batch_first, eval) on a (bsz*seq, d) activation block.

    Full-width (d, d) projections / out_proj on the MXU; per-head score/context matmuls
    are batched over the batch block. 1/sqrt(head_dim) is pre-folded into wq.
    """
    f32 = jnp.float32
    cdt = wq_ref.dtype                       # compute dtype of the matmul inputs
    d = wq_ref.shape[1]
    hd = d // nhead

    q = jnp.dot(xq.astype(cdt), wq_ref[...], preferred_element_type=f32) + bq_ref[...]
    k = jnp.dot(xkv.astype(cdt), wk_ref[...], preferred_element_type=f32) + bk_ref[...]
    v = jnp.dot(xkv.astype(cdt), wv_ref[...], preferred_element_type=f32) + bv_ref[...]

    # Leading-dim reshapes only (free): heads stay in contiguous lane slices.
    q3 = q.reshape(bsz, seq, d).astype(cdt)
    k3 = k.reshape(bsz, seq, d).astype(cdt)
    v3 = v.reshape(bsz, seq, d).astype(cdt)

    ctx_heads = []
    for h in range(nhead):                   # static unroll; nhead is small
        lo = h * hd
        qh = q3[:, :, lo:lo + hd]            # (bsz, seq, hd)
        kh = k3[:, :, lo:lo + hd]
        vh = v3[:, :, lo:lo + hd]
        s = jnp.einsum('bqe,bke->bqk', qh, kh, preferred_element_type=f32)
        m = jnp.max(s, axis=-1, keepdims=True)
        p = jnp.exp(s - m)
        denom = jnp.sum(p, axis=-1, keepdims=True)
        # exact reciprocal (approx=True trades ~1e-3 rel. error for EUP throughput)
        a = p * pl.reciprocal(denom, approx=False)
        ctx_heads.append(jnp.einsum('bqk,bke->bqe', a.astype(cdt), vh,
                                    preferred_element_type=f32))
    ctx = jnp.concatenate(ctx_heads, axis=-1).reshape(bsz * seq, d)
    return jnp.dot(ctx.astype(cdt), wo_ref[...], preferred_element_type=f32) + bo_ref[...]


# ----------------------------------------------------------------------------
# Fused kernel: one batch block = one grid step
# ----------------------------------------------------------------------------
def cross_modal_encoder_kernel(
        x1_ref, x2_ref,
        wq1, bq1, wk1, bk1, wv1, bv1, wo1, bo1,
        wq2, bq2, wk2, bk2, wv2, bv2, wo2, bo2,
        w1a, w1b, b1, w2a, w2b, b2a, b2b,
        g1a, be1a, g1b, be1b, g2a, be2a, g2b, be2b,
        out_ref, *, nhead):
    f32 = jnp.float32
    bsz, seq, d = x1_ref.shape

    x1 = x1_ref[...].reshape(bsz * seq, d)
    x2 = x2_ref[...].reshape(bsz * seq, d)

    # cross-modal attentions (query from one modality, key/value from the other)
    a1 = _cross_attention(x1, x2, bsz, seq, wq1, bq1, wk1, bk1, wv1, bv1, wo1, bo1, nhead)
    a2 = _cross_attention(x2, x1, bsz, seq, wq2, bq2, wk2, bk2, wv2, bv2, wo2, bo2, nhead)

    # residuals (dropout1 = identity in eval mode)
    y1 = x1 + a1
    y2 = x2 + a2

    # LayerNorm1 over the (virtual) concat [y1, y2] — no lane concat materialized
    h1, h2 = _ln_pair(y1, y2, g1a[...], be1a[...], g1b[...], be1b[...])

    # feed-forward: linear2(relu(linear1(h)))  with linear1/linear2 split into halves
    cdt = w1a.dtype
    ff = (jnp.dot(h1.astype(cdt), w1a[...], preferred_element_type=f32)
          + jnp.dot(h2.astype(cdt), w1b[...], preferred_element_type=f32) + b1[...])
    ff = jnp.maximum(ff, 0.0).astype(cdt)                    # relu
    z1 = h1 + jnp.dot(ff, w2a[...], preferred_element_type=f32) + b2a[...]
    z2 = h2 + jnp.dot(ff, w2b[...], preferred_element_type=f32) + b2b[...]

    # LayerNorm2 (combined stats), then one lane-dense (seq, 2d) output write
    o1, o2 = _ln_pair(z1, z2, g2a[...], be2a[...], g2b[...], be2b[...])
    out_ref[...] = jnp.concatenate(
        [o1.reshape(bsz, seq, d), o2.reshape(bsz, seq, d)], axis=-1).astype(out_ref.dtype)


# ----------------------------------------------------------------------------
# Wrapper: one pallas_call for the whole forward
# ----------------------------------------------------------------------------
def cross_modal_encoder_layer(src_d1, src_d2, params, *, nhead, batch_block=8):
    B, S, d = src_d1.shape
    d2 = 2 * d
    dim_ff = params['b1'].shape[-1]

    # Several batch elements per grid step (per-step pipeline overhead would otherwise
    # dominate at small S*d). Largest divisor of B not exceeding batch_block.
    bblk = max(bb for bb in range(1, min(batch_block, B) + 1) if B % bb == 0)
    grid = (B // bblk,)

    operands, in_specs = [], []

    def add(arr, spec):
        operands.append(arr)
        in_specs.append(spec)

    def add_const(arr):
        # Constant index_map -> the block is never re-fetched; single-buffer it so the
        # resident weight copy is not doubled (matters most inside v7x's 64 MiB VMEM).
        nd = arr.ndim
        add(arr, pl.BlockSpec(arr.shape, lambda b, _nd=nd: (0,) * _nd,
                              pipeline_mode=pl.Buffered(1)))

    add(src_d1, pl.BlockSpec((bblk, S, d), lambda b: (b, 0, 0)))
    add(src_d2, pl.BlockSpec((bblk, S, d), lambda b: (b, 0, 0)))
    for ap in (params['attn1'], params['attn2']):
        for name in ('wq', 'bq', 'wk', 'bk', 'wv', 'bv', 'wo', 'bo'):
            add_const(ap[name])
    for name in ('w1a', 'w1b', 'b1', 'w2a', 'w2b', 'b2a', 'b2b',
                 'g1a', 'be1a', 'g1b', 'be1b', 'g2a', 'be2a', 'g2b', 'be2b'):
        add_const(params[name])

    # Explicit VMEM budget from the actual footprint (2x headroom), clamped to 64 MiB.
    const_bytes = sum(int(a.size) * a.dtype.itemsize for a in operands[2:])
    io_bytes = 2 * (2 * bblk * S * d * 4) + 2 * (bblk * S * d2 * 4)     # double-buffered I/O
    act_bytes = bblk * S * (24 * d + 4 * dim_ff + 4 * nhead * S) * 4    # rough working set
    vmem_limit = int(min(max(2 * (const_bytes + io_bytes + act_bytes), 32 << 20), 64 << 20))

    kernel = functools.partial(cross_modal_encoder_kernel, nhead=nhead)

    out = pl.pallas_call(
        kernel,
        out_shape=jax.ShapeDtypeStruct((B, S, d2), jnp.float32),
        grid=grid,
        in_specs=in_specs,
        out_specs=pl.BlockSpec((bblk, S, d2), lambda b: (b, 0, 0)),
        compiler_params=pltpu.CompilerParams(
            dimension_semantics=("parallel",),
            vmem_limit_bytes=vmem_limit),
    )(*operands)

    return out, None          # module returns (src, None)


# ----------------------------------------------------------------------------
# Deterministic, torch-flavored parameter init (pre-split / pre-folded for the kernel)
# ----------------------------------------------------------------------------
def _xavier_uniform(key, shape, fan_in, fan_out):
    a = math.sqrt(6.0 / (fan_in + fan_out))
    return jax.random.uniform(key, shape, jnp.float32, -a, a)


def _linear_init(kw, kb, fan_in, fan_out):
    bound = 1.0 / math.sqrt(fan_in)
    w = jax.random.uniform(kw, (fan_in, fan_out), jnp.float32, -bound, bound)
    b = jax.random.uniform(kb, (1, fan_out), jnp.float32, -bound, bound)
    return w, b


def _attn_init(key, d_model, nhead, compute_dtype):
    hd = d_model // nhead
    scale = 1.0 / math.sqrt(hd)
    kq, kk, kv, ko = jax.random.split(key, 4)
    # Full-width (d, d) projection weights; 1/sqrt(head_dim) folded into wq (would also be
    # folded into bq when importing non-zero torch in_proj biases).
    return {
        'wq': (_xavier_uniform(kq, (d_model, d_model), d_model, d_model) * scale).astype(compute_dtype),
        'wk': _xavier_uniform(kk, (d_model, d_model), d_model, d_model).astype(compute_dtype),
        'wv': _xavier_uniform(kv, (d_model, d_model), d_model, d_model).astype(compute_dtype),
        'wo': _xavier_uniform(ko, (d_model, d_model), d_model, d_model).astype(compute_dtype),
        'bq': jnp.zeros((1, d_model), jnp.float32),     # torch default: zero in_proj bias
        'bk': jnp.zeros((1, d_model), jnp.float32),
        'bv': jnp.zeros((1, d_model), jnp.float32),
        'bo': jnp.zeros((1, d_model), jnp.float32),     # torch zeros out_proj bias
    }


def init_params(key, d_model, nhead, dim_feedforward, compute_dtype=jnp.bfloat16):
    d2 = 2 * d_model
    ks = jax.random.split(key, 6)
    w1, b1 = _linear_init(ks[2], ks[3], d2, dim_feedforward)
    w2, b2 = _linear_init(ks[4], ks[5], dim_feedforward, d2)
    ones = jnp.ones((1, d_model), jnp.float32)
    zeros = jnp.zeros((1, d_model), jnp.float32)
    return {
        'attn1': _attn_init(ks[0], d_model, nhead, compute_dtype),
        'attn2': _attn_init(ks[1], d_model, nhead, compute_dtype),
        # linear1 split along its input rows into the y1/y2 halves (removes lane concat);
        # linear2 / bias2 / LayerNorm params split along the output halves.
        'w1a': w1[:d_model].astype(compute_dtype),
        'w1b': w1[d_model:].astype(compute_dtype),
        'b1': b1,
        'w2a': w2[:, :d_model].astype(compute_dtype),
        'w2b': w2[:, d_model:].astype(compute_dtype),
        'b2a': b2[:, :d_model],
        'b2b': b2[:, d_model:],
        'g1a': ones, 'g1b': ones, 'be1a': zeros, 'be1b': zeros,
        'g2a': ones, 'g2b': ones, 'be2a': zeros, 'be2b': zeros,
    }


if __name__ == "__main__":
    # 2*d_model = 128 so the output block is lane-dense; grid length 2 (even for v7x).
    B, S, D_MODEL, NHEAD, DIM_FF = 4, 16, 64, 4, 128

    key = jax.random.PRNGKey(0)
    k1, k2, kp = jax.random.split(key, 3)
    src_d1 = jax.random.normal(k1, (B, S, D_MODEL), jnp.float32)
    src_d2 = jax.random.normal(k2, (B, S, D_MODEL), jnp.float32)
    # bf16 MXU inputs + f32 accumulation (pass compute_dtype=jnp.float32 for f32 parity).
    params = init_params(kp, D_MODEL, NHEAD, DIM_FF, compute_dtype=jnp.bfloat16)

    fwd = jax.jit(functools.partial(cross_modal_encoder_layer, nhead=NHEAD, batch_block=2))
    out, attn_weights = fwd(src_d1, src_d2, params)
    out = jax.block_until_ready(out)

    assert out.shape == (B, S, 2 * D_MODEL), out.shape
    assert attn_weights is None
    assert bool(jnp.all(jnp.isfinite(out)))
    print("KERNEL_OK")
</pallas_src>

<mosaic_0001>
module attributes {stable_mosaic.version = 11 : i64} {
  func.func @cross_modal_encoder_kernel(%arg0: i32, %arg1: memref<2x16x64xf32, #tpu.memory_space<vmem>>, %arg2: memref<2x16x64xf32, #tpu.memory_space<vmem>>, %arg3: memref<64x64xbf16, #tpu.memory_space<vmem>>, %arg4: memref<1x64xf32, #tpu.memory_space<vmem>>, %arg5: memref<64x64xbf16, #tpu.memory_space<vmem>>, %arg6: memref<1x64xf32, #tpu.memory_space<vmem>>, %arg7: memref<64x64xbf16, #tpu.memory_space<vmem>>, %arg8: memref<1x64xf32, #tpu.memory_space<vmem>>, %arg9: memref<64x64xbf16, #tpu.memory_space<vmem>>, %arg10: memref<1x64xf32, #tpu.memory_space<vmem>>, %arg11: memref<64x64xbf16, #tpu.memory_space<vmem>>, %arg12: memref<1x64xf32, #tpu.memory_space<vmem>>, %arg13: memref<64x64xbf16, #tpu.memory_space<vmem>>, %arg14: memref<1x64xf32, #tpu.memory_space<vmem>>, %arg15: memref<64x64xbf16, #tpu.memory_space<vmem>>, %arg16: memref<1x64xf32, #tpu.memory_space<vmem>>, %arg17: memref<64x64xbf16, #tpu.memory_space<vmem>>, %arg18: memref<1x64xf32, #tpu.memory_space<vmem>>, %arg19: memref<64x128xbf16, #tpu.memory_space<vmem>>, %arg20: memref<64x128xbf16, #tpu.memory_space<vmem>>, %arg21: memref<1x128xf32, #tpu.memory_space<vmem>>, %arg22: memref<128x64xbf16, #tpu.memory_space<vmem>>, %arg23: memref<128x64xbf16, #tpu.memory_space<vmem>>, %arg24: memref<1x64xf32, #tpu.memory_space<vmem>>, %arg25: memref<1x64xf32, #tpu.memory_space<vmem>>, %arg26: memref<1x64xf32, #tpu.memory_space<vmem>>, %arg27: memref<1x64xf32, #tpu.memory_space<vmem>>, %arg28: memref<1x64xf32, #tpu.memory_space<vmem>>, %arg29: memref<1x64xf32, #tpu.memory_space<vmem>>, %arg30: memref<1x64xf32, #tpu.memory_space<vmem>>, %arg31: memref<1x64xf32, #tpu.memory_space<vmem>>, %arg32: memref<1x64xf32, #tpu.memory_space<vmem>>, %arg33: memref<1x64xf32, #tpu.memory_space<vmem>>, %arg34: memref<2x16x128xf32, #tpu.memory_space<vmem>>) attributes {dimension_semantics = [#tpu.dimension_semantics<parallel>], iteration_bounds = array<i64: 2>, scalar_prefetch = 0 : i64, scratch_operands = 0 : i64, tpu.core_type = #tpu.core_type<tc>, window_params = [{transform_indices = @transform_0, window_bounds = array<i64: 2, 16, 64>}, {transform_indices = @transform_1, window_bounds = array<i64: 2, 16, 64>}, {pipeline_mode = #tpu.pipeline_mode<synchronous>, transform_indices = @transform_2, window_bounds = array<i64: 64, 64>}, {pipeline_mode = #tpu.pipeline_mode<synchronous>, transform_indices = @transform_3, window_bounds = array<i64: 1, 64>}, {pipeline_mode = #tpu.pipeline_mode<synchronous>, transform_indices = @transform_4, window_bounds = array<i64: 64, 64>}, {pipeline_mode = #tpu.pipeline_mode<synchronous>, transform_indices = @transform_5, window_bounds = array<i64: 1, 64>}, {pipeline_mode = #tpu.pipeline_mode<synchronous>, transform_indices = @transform_6, window_bounds = array<i64: 64, 64>}, {pipeline_mode = #tpu.pipeline_mode<synchronous>, transform_indices = @transform_7, window_bounds = array<i64: 1, 64>}, {pipeline_mode = #tpu.pipeline_mode<synchronous>, transform_indices = @transform_8, window_bounds = array<i64: 64, 64>}, {pipeline_mode = #tpu.pipeline_mode<synchronous>, transform_indices = @transform_9, window_bounds = array<i64: 1, 64>}, {pipeline_mode = #tpu.pipeline_mode<synchronous>, transform_indices = @transform_10, window_bounds = array<i64: 64, 64>}, {pipeline_mode = #tpu.pipeline_mode<synchronous>, transform_indices = @transform_11, window_bounds = array<i64: 1, 64>}, {pipeline_mode = #tpu.pipeline_mode<synchronous>, transform_indices = @transform_12, window_bounds = array<i64: 64, 64>}, {pipeline_mode = #tpu.pipeline_mode<synchronous>, transform_indices = @transform_13, window_bounds = array<i64: 1, 64>}, {pipeline_mode = #tpu.pipeline_mode<synchronous>, transform_indices = @transform_14, window_bounds = array<i64: 64, 64>}, {pipeline_mode = #tpu.pipeline_mode<synchronous>, transform_indices = @transform_15, window_bounds = array<i64: 1, 64>}, {pipeline_mode = #tpu.pipeline_mode<synchronous>, transform_indices = @transform_16, window_bounds = array<i64: 64, 64>}, {pipeline_mode = #tpu.pipeline_mode<synchronous>, transform_indices = @transform_17, window_bounds = array<i64: 1, 64>}, {pipeline_mode = #tpu.pipeline_mode<synchronous>, transform_indices = @transform_18, window_bounds = array<i64: 64, 128>}, {pipeline_mode = #tpu.pipeline_mode<synchronous>, transform_indices = @transform_19, window_bounds = array<i64: 64, 128>}, {pipeline_mode = #tpu.pipeline_mode<synchronous>, transform_indices = @transform_20, window_bounds = array<i64: 1, 128>}, {pipeline_mode = #tpu.pipeline_mode<synchronous>, transform_indices = @transform_21, window_bounds = array<i64: 128, 64>}, {pipeline_mode = #tpu.pipeline_mode<synchronous>, transform_indices = @transform_22, window_bounds = array<i64: 128, 64>}, {pipeline_mode = #tpu.pipeline_mode<synchronous>, transform_indices = @transform_23, window_bounds = array<i64: 1, 64>}, {pipeline_mode = #tpu.pipeline_mode<synchronous>, transform_indices = @transform_24, window_bounds = array<i64: 1, 64>}, {pipeline_mode = #tpu.pipeline_mode<synchronous>, transform_indices = @transform_25, window_bounds = array<i64: 1, 64>}, {pipeline_mode = #tpu.pipeline_mode<synchronous>, transform_indices = @transform_26, window_bounds = array<i64: 1, 64>}, {pipeline_mode = #tpu.pipeline_mode<synchronous>, transform_indices = @transform_27, window_bounds = array<i64: 1, 64>}, {pipeline_mode = #tpu.pipeline_mode<synchronous>, transform_indices = @transform_28, window_bounds = array<i64: 1, 64>}, {pipeline_mode = #tpu.pipeline_mode<synchronous>, transform_indices = @transform_29, window_bounds = array<i64: 1, 64>}, {pipeline_mode = #tpu.pipeline_mode<synchronous>, transform_indices = @transform_30, window_bounds = array<i64: 1, 64>}, {pipeline_mode = #tpu.pipeline_mode<synchronous>, transform_indices = @transform_31, window_bounds = array<i64: 1, 64>}, {pipeline_mode = #tpu.pipeline_mode<synchronous>, transform_indices = @transform_32, window_bounds = array<i64: 1, 64>}, {transform_indices = @transform_33, window_bounds = array<i64: 2, 16, 128>}]} {
    %c0 = arith.constant 0 : index
    %c0_0 = arith.constant 0 : index
    %c0_1 = arith.constant 0 : index
    %0 = vector.load %arg1[%c0, %c0_0, %c0_1] : memref<2x16x64xf32, #tpu.memory_space<vmem>>, vector<2x16x64xf32>
    %1 = vector.shape_cast %0 : vector<2x16x64xf32> to vector<32x64xf32>
    %c0_2 = arith.constant 0 : index
    %c0_3 = arith.constant 0 : index
    %c0_4 = arith.constant 0 : index
    %2 = vector.load %arg2[%c0_2, %c0_3, %c0_4] : memref<2x16x64xf32, #tpu.memory_space<vmem>>, vector<2x16x64xf32>
    %3 = vector.shape_cast %2 : vector<2x16x64xf32> to vector<32x64xf32>
    %4 = arith.truncf %1 : vector<32x64xf32> to vector<32x64xbf16>
    %c0_5 = arith.constant 0 : index
    %c0_6 = arith.constant 0 : index
    %5 = vector.load %arg3[%c0_5, %c0_6] : memref<64x64xbf16, #tpu.memory_space<vmem>>, vector<64x64xbf16>
    %cst = arith.constant dense<0.000000e+00> : vector<32x64xf32>
    %6 = tpu.matmul %4, %5, %cst {dimension_numbers = #tpu.dot_dimension_numbers<[1], [0], [0], [1], [0, 0, 1, 1], [], []>} : vector<32x64xbf16>, vector<64x64xbf16>, vector<32x64xf32> -> vector<32x64xf32>
    %c0_7 = arith.constant 0 : index
    %c0_8 = arith.constant 0 : index
    %7 = vector.load %arg4[%c0_7, %c0_8] : memref<1x64xf32, #tpu.memory_space<vmem>>, vector<1x64xf32>
    %8 = vector.broadcast %7 : vector<1x64xf32> to vector<32x64xf32>
    %9 = arith.addf %6, %8 : vector<32x64xf32>
    %10 = arith.truncf %3 : vector<32x64xf32> to vector<32x64xbf16>
    %c0_9 = arith.constant 0 : index
    %c0_10 = arith.constant 0 : index
    %11 = vector.load %arg5[%c0_9, %c0_10] : memref<64x64xbf16, #tpu.memory_space<vmem>>, vector<64x64xbf16>
    %cst_11 = arith.constant dense<0.000000e+00> : vector<32x64xf32>
    %12 = tpu.matmul %10, %11, %cst_11 {dimension_numbers = #tpu.dot_dimension_numbers<[1], [0], [0], [1], [0, 0, 1, 1], [], []>} : vector<32x64xbf16>, vector<64x64xbf16>, vector<32x64xf32> -> vector<32x64xf32>
    %c0_12 = arith.constant 0 : index
    %c0_13 = arith.constant 0 : index
    %13 = vector.load %arg6[%c0_12, %c0_13] : memref<1x64xf32, #tpu.memory_space<vmem>>, vector<1x64xf32>
    %14 = vector.broadcast %13 : vector<1x64xf32> to vector<32x64xf32>
    %15 = arith.addf %12, %14 : vector<32x64xf32>
    %16 = arith.truncf %3 : vector<32x64xf32> to vector<32x64xbf16>
    %c0_14 = arith.constant 0 : index
    %c0_15 = arith.constant 0 : index
    %17 = vector.load %arg7[%c0_14, %c0_15] : memref<64x64xbf16, #tpu.memory_space<vmem>>, vector<64x64xbf16>
    %cst_16 = arith.constant dense<0.000000e+00> : vector<32x64xf32>
    %18 = tpu.matmul %16, %17, %cst_16 {dimension_numbers = #tpu.dot_dimension_numbers<[1], [0], [0], [1], [0, 0, 1, 1], [], []>} : vector<32x64xbf16>, vector<64x64xbf16>, vector<32x64xf32> -> vector<32x64xf32>
    %c0_17 = arith.constant 0 : index
    %c0_18 = arith.constant 0 : index
    %19 = vector.load %arg8[%c0_17, %c0_18] : memref<1x64xf32, #tpu.memory_space<vmem>>, vector<1x64xf32>
    %20 = vector.broadcast %19 : vector<1x64xf32> to vector<32x64xf32>
    %21 = arith.addf %18, %20 : vector<32x64xf32>
    %22 = vector.shape_cast %9 : vector<32x64xf32> to vector<2x16x64xf32>
    %23 = arith.truncf %22 : vector<2x16x64xf32> to vector<2x16x64xbf16>
    %24 = vector.shape_cast %15 : vector<32x64xf32> to vector<2x16x64xf32>
    %25 = arith.truncf %24 : vector<2x16x64xf32> to vector<2x16x64xbf16>
    %26 = vector.shape_cast %21 : vector<32x64xf32> to vector<2x16x64xf32>
    %27 = arith.truncf %26 : vector<2x16x64xf32> to vector<2x16x64xbf16>
    %28 = vector.extract_strided_slice %23 {offsets = [0, 0, 0], sizes = [2, 16, 16], strides = [1, 1, 1]} : vector<2x16x64xbf16> to vector<2x16x16xbf16>
    %29 = vector.extract_strided_slice %25 {offsets = [0, 0, 0], sizes = [2, 16, 16], strides = [1, 1, 1]} : vector<2x16x64xbf16> to vector<2x16x16xbf16>
    %30 = vector.extract_strided_slice %27 {offsets = [0, 0, 0], sizes = [2, 16, 16], strides = [1, 1, 1]} : vector<2x16x64xbf16> to vector<2x16x16xbf16>
    "tpu.trace_start"() <{level = 10 : i32, message = "bqe,bke->bqk"}> : () -> ()
    %cst_19 = arith.constant dense<0.000000e+00> : vector<2x16x16xf32>
    %31 = tpu.matmul %28, %29, %cst_19 {dimension_numbers = #tpu.dot_dimension_numbers<[2], [2], [1], [1], [0, 0, 0, 1, 1, 1], [0], [0]>} : vector<2x16x16xbf16>, vector<2x16x16xbf16>, vector<2x16x16xf32> -> vector<2x16x16xf32>
    "tpu.trace_stop"() : () -> ()
    %cst_20 = arith.constant dense<0xFF800000> : vector<2x16xf32>
    %32 = vector.multi_reduction <maximumf>, %31, %cst_20 [2] : vector<2x16x16xf32> to vector<2x16xf32>
    %33 = vector.shape_cast %32 : vector<2x16xf32> to vector<2x16x1xf32>
    %34 = vector.broadcast %33 : vector<2x16x1xf32> to vector<2x16x16xf32>
    %35 = arith.subf %31, %34 : vector<2x16x16xf32>
    %36 = math.exp %35 : vector<2x16x16xf32>
    %cst_21 = arith.constant dense<0.000000e+00> : vector<2x16xf32>
    %37 = vector.multi_reduction <add>, %36, %cst_21 [2] : vector<2x16x16xf32> to vector<2x16xf32>
    %38 = vector.shape_cast %37 : vector<2x16xf32> to vector<2x16x1xf32>
    %39 = tpu.reciprocal %38 : vector<2x16x1xf32> -> vector<2x16x1xf32>
    %40 = vector.broadcast %39 : vector<2x16x1xf32> to vector<2x16x16xf32>
    %41 = arith.mulf %36, %40 : vector<2x16x16xf32>
    %42 = arith.truncf %41 : vector<2x16x16xf32> to vector<2x16x16xbf16>
    "tpu.trace_start"() <{level = 10 : i32, message = "bqk,bke->bqe"}> : () -> ()
    %cst_22 = arith.constant dense<0.000000e+00> : vector<2x16x16xf32>
    %43 = tpu.matmul %42, %30, %cst_22 {dimension_numbers = #tpu.dot_dimension_numbers<[2], [1], [1], [2], [0, 0, 0, 1, 1, 2], [0], [0]>} : vector<2x16x16xbf16>, vector<2x16x16xbf16>, vector<2x16x16xf32> -> vector<2x16x16xf32>
    "tpu.trace_stop"() : () -> ()
    %44 = vector.extract_strided_slice %23 {offsets = [0, 0, 16], sizes = [2, 16, 16], strides = [1, 1, 1]} : vector<2x16x64xbf16> to vector<2x16x16xbf16>
    %45 = vector.extract_strided_slice %25 {offsets = [0, 0, 16], sizes = [2, 16, 16], strides = [1, 1, 1]} : vector<2x16x64xbf16> to vector<2x16x16xbf16>
    %46 = vector.extract_strided_slice %27 {offsets = [0, 0, 16], sizes = [2, 16, 16], strides = [1, 1, 1]} : vector<2x16x64xbf16> to vector<2x16x16xbf16>
    "tpu.trace_start"() <{level = 10 : i32, message = "bqe,bke->bqk"}> : () -> ()
    %cst_23 = arith.constant dense<0.000000e+00> : vector<2x16x16xf32>
    %47 = tpu.matmul %44, %45, %cst_23 {dimension_numbers = #tpu.dot_dimension_numbers<[2], [2], [1], [1], [0, 0, 0, 1, 1, 1], [0], [0]>} : vector<2x16x16xbf16>, vector<2x16x16xbf16>, vector<2x16x16xf32> -> vector<2x16x16xf32>
    "tpu.trace_stop"() : () -> ()
    %cst_24 = arith.constant dense<0xFF800000> : vector<2x16xf32>
    %48 = vector.multi_reduction <maximumf>, %47, %cst_24 [2] : vector<2x16x16xf32> to vector<2x16xf32>
    %49 = vector.shape_cast %48 : vector<2x16xf32> to vector<2x16x1xf32>
    %50 = vector.broadcast %49 : vector<2x16x1xf32> to vector<2x16x16xf32>
    %51 = arith.subf %47, %50 : vector<2x16x16xf32>
    %52 = math.exp %51 : vector<2x16x16xf32>
    %cst_25 = arith.constant dense<0.000000e+00> : vector<2x16xf32>
    %53 = vector.multi_reduction <add>, %52, %cst_25 [2] : vector<2x16x16xf32> to vector<2x16xf32>
    %54 = vector.shape_cast %53 : vector<2x16xf32> to vector<2x16x1xf32>
    %55 = tpu.reciprocal %54 : vector<2x16x1xf32> -> vector<2x16x1xf32>
    %56 = vector.broadcast %55 : vector<2x16x1xf32> to vector<2x16x16xf32>
    %57 = arith.mulf %52, %56 : vector<2x16x16xf32>
    %58 = arith.truncf %57 : vector<2x16x16xf32> to vector<2x16x16xbf16>
    "tpu.trace_start"() <{level = 10 : i32, message = "bqk,bke->bqe"}> : () -> ()
    %cst_26 = arith.constant dense<0.000000e+00> : vector<2x16x16xf32>
    %59 = tpu.matmul %58, %46, %cst_26 {dimension_numbers = #tpu.dot_dimension_numbers<[2], [1], [1], [2], [0, 0, 0, 1, 1, 2], [0], [0]>} : vector<2x16x16xbf16>, vector<2x16x16xbf16>, vector<2x16x16xf32> -> vector<2x16x16xf32>
    "tpu.trace_stop"() : () -> ()
    %60 = vector.extract_strided_slice %23 {offsets = [0, 0, 32], sizes = [2, 16, 16], strides = [1, 1, 1]} : vector<2x16x64xbf16> to vector<2x16x16xbf16>
    %61 = vector.extract_strided_slice %25 {offsets = [0, 0, 32], sizes = [2, 16, 16], strides = [1, 1, 1]} : vector<2x16x64xbf16> to vector<2x16x16xbf16>
    %62 = vector.extract_strided_slice %27 {offsets = [0, 0, 32], sizes = [2, 16, 16], strides = [1, 1, 1]} : vector<2x16x64xbf16> to vector<2x16x16xbf16>
    "tpu.trace_start"() <{level = 10 : i32, message = "bqe,bke->bqk"}> : () -> ()
    %cst_27 = arith.constant dense<0.000000e+00> : vector<2x16x16xf32>
    %63 = tpu.matmul %60, %61, %cst_27 {dimension_numbers = #tpu.dot_dimension_numbers<[2], [2], [1], [1], [0, 0, 0, 1, 1, 1], [0], [0]>} : vector<2x16x16xbf16>, vector<2x16x16xbf16>, vector<2x16x16xf32> -> vector<2x16x16xf32>
    "tpu.trace_stop"() : () -> ()
    %cst_28 = arith.constant dense<0xFF800000> : vector<2x16xf32>
    %64 = vector.multi_reduction <maximumf>, %63, %cst_28 [2] : vector<2x16x16xf32> to vector<2x16xf32>
    %65 = vector.shape_cast %64 : vector<2x16xf32> to vector<2x16x1xf32>
    %66 = vector.broadcast %65 : vector<2x16x1xf32> to vector<2x16x16xf32>
    %67 = arith.subf %63, %66 : vector<2x16x16xf32>
    %68 = math.exp %67 : vector<2x16x16xf32>
    %cst_29 = arith.constant dense<0.000000e+00> : vector<2x16xf32>
    %69 = vector.multi_reduction <add>, %68, %cst_29 [2] : vector<2x16x16xf32> to vector<2x16xf32>
    %70 = vector.shape_cast %69 : vector<2x16xf32> to vector<2x16x1xf32>
    %71 = tpu.reciprocal %70 : vector<2x16x1xf32> -> vector<2x16x1xf32>
    %72 = vector.broadcast %71 : vector<2x16x1xf32> to vector<2x16x16xf32>
    %73 = arith.mulf %68, %72 : vector<2x16x16xf32>
    %74 = arith.truncf %73 : vector<2x16x16xf32> to vector<2x16x16xbf16>
    "tpu.trace_start"() <{level = 10 : i32, message = "bqk,bke->bqe"}> : () -> ()
    %cst_30 = arith.constant dense<0.000000e+00> : vector<2x16x16xf32>
    %75 = tpu.matmul %74, %62, %cst_30 {dimension_numbers = #tpu.dot_dimension_numbers<[2], [1], [1], [2], [0, 0, 0, 1, 1, 2], [0], [0]>} : vector<2x16x16xbf16>, vector<2x16x16xbf16>, vector<2x16x16xf32> -> vector<2x16x16xf32>
    "tpu.trace_stop"() : () -> ()
    %76 = vector.extract_strided_slice %23 {offsets = [0, 0, 48], sizes = [2, 16, 16], strides = [1, 1, 1]} : vector<2x16x64xbf16> to vector<2x16x16xbf16>
    %77 = vector.extract_strided_slice %25 {offsets = [0, 0, 48], sizes = [2, 16, 16], strides = [1, 1, 1]} : vector<2x16x64xbf16> to vector<2x16x16xbf16>
    %78 = vector.extract_strided_slice %27 {offsets = [0, 0, 48], sizes = [2, 16, 16], strides = [1, 1, 1]} : vector<2x16x64xbf16> to vector<2x16x16xbf16>
    "tpu.trace_start"() <{level = 10 : i32, message = "bqe,bke->bqk"}> : () -> ()
    %cst_31 = arith.constant dense<0.000000e+00> : vector<2x16x16xf32>
    %79 = tpu.matmul %76, %77, %cst_31 {dimension_numbers = #tpu.dot_dimension_numbers<[2], [2], [1], [1], [0, 0, 0, 1, 1, 1], [0], [0]>} : vector<2x16x16xbf16>, vector<2x16x16xbf16>, vector<2x16x16xf32> -> vector<2x16x16xf32>
    "tpu.trace_stop"() : () -> ()
    %cst_32 = arith.constant dense<0xFF800000> : vector<2x16xf32>
    %80 = vector.multi_reduction <maximumf>, %79, %cst_32 [2] : vector<2x16x16xf32> to vector<2x16xf32>
    %81 = vector.shape_cast %80 : vector<2x16xf32> to vector<2x16x1xf32>
    %82 = vector.broadcast %81 : vector<2x16x1xf32> to vector<2x16x16xf32>
    %83 = arith.subf %79, %82 : vector<2x16x16xf32>
    %84 = math.exp %83 : vector<2x16x16xf32>
    %cst_33 = arith.constant dense<0.000000e+00> : vector<2x16xf32>
    %85 = vector.multi_reduction <add>, %84, %cst_33 [2] : vector<2x16x16xf32> to vector<2x16xf32>
    %86 = vector.shape_cast %85 : vector<2x16xf32> to vector<2x16x1xf32>
    %87 = tpu.reciprocal %86 : vector<2x16x1xf32> -> vector<2x16x1xf32>
    %88 = vector.broadcast %87 : vector<2x16x1xf32> to vector<2x16x16xf32>
    %89 = arith.mulf %84, %88 : vector<2x16x16xf32>
    %90 = arith.truncf %89 : vector<2x16x16xf32> to vector<2x16x16xbf16>
    "tpu.trace_start"() <{level = 10 : i32, message = "bqk,bke->bqe"}> : () -> ()
    %cst_34 = arith.constant dense<0.000000e+00> : vector<2x16x16xf32>
    %91 = tpu.matmul %90, %78, %cst_34 {dimension_numbers = #tpu.dot_dimension_numbers<[2], [1], [1], [2], [0, 0, 0, 1, 1, 2], [0], [0]>} : vector<2x16x16xbf16>, vector<2x16x16xbf16>, vector<2x16x16xf32> -> vector<2x16x16xf32>
    "tpu.trace_stop"() : () -> ()
    %92 = tpu.concatenate %43, %59, %75, %91 in 2 : vector<2x16x16xf32>, vector<2x16x16xf32>, vector<2x16x16xf32>, vector<2x16x16xf32> -> vector<2x16x64xf32>
    %93 = vector.shape_cast %92 : vector<2x16x64xf32> to vector<32x64xf32>
    %94 = arith.truncf %93 : vector<32x64xf32> to vector<32x64xbf16>
    %c0_35 = arith.constant 0 : index
    %c0_36 = arith.constant 0 : index
    %95 = vector.load %arg9[%c0_35, %c0_36] : memref<64x64xbf16, #tpu.memory_space<vmem>>, vector<64x64xbf16>
    %cst_37 = arith.constant dense<0.000000e+00> : vector<32x64xf32>
    %96 = tpu.matmul %94, %95, %cst_37 {dimension_numbers = #tpu.dot_dimension_numbers<[1], [0], [0], [1], [0, 0, 1, 1], [], []>} : vector<32x64xbf16>, vector<64x64xbf16>, vector<32x64xf32> -> vector<32x64xf32>
    %c0_38 = arith.constant 0 : index
    %c0_39 = arith.constant 0 : index
    %97 = vector.load %arg10[%c0_38, %c0_39] : memref<1x64xf32, #tpu.memory_space<vmem>>, vector<1x64xf32>
    %98 = vector.broadcast %97 : vector<1x64xf32> to vector<32x64xf32>
    %99 = arith.addf %96, %98 : vector<32x64xf32>
    %100 = arith.truncf %3 : vector<32x64xf32> to vector<32x64xbf16>
    %c0_40 = arith.constant 0 : index
    %c0_41 = arith.constant 0 : index
    %101 = vector.load %arg11[%c0_40, %c0_41] : memref<64x64xbf16, #tpu.memory_space<vmem>>, vector<64x64xbf16>
    %cst_42 = arith.constant dense<0.000000e+00> : vector<32x64xf32>
    %102 = tpu.matmul %100, %101, %cst_42 {dimension_numbers = #tpu.dot_dimension_numbers<[1], [0], [0], [1], [0, 0, 1, 1], [], []>} : vector<32x64xbf16>, vector<64x64xbf16>, vector<32x64xf32> -> vector<32x64xf32>
    %c0_43 = arith.constant 0 : index
    %c0_44 = arith.constant 0 : index
    %103 = vector.load %arg12[%c0_43, %c0_44] : memref<1x64xf32, #tpu.memory_space<vmem>>, vector<1x64xf32>
    %104 = vector.broadcast %103 : vector<1x64xf32> to vector<32x64xf32>
    %105 = arith.addf %102, %104 : vector<32x64xf32>
    %106 = arith.truncf %1 : vector<32x64xf32> to vector<32x64xbf16>
    %c0_45 = arith.constant 0 : index
    %c0_46 = arith.constant 0 : index
    %107 = vector.load %arg13[%c0_45, %c0_46] : memref<64x64xbf16, #tpu.memory_space<vmem>>, vector<64x64xbf16>
    %cst_47 = arith.constant dense<0.000000e+00> : vector<32x64xf32>
    %108 = tpu.matmul %106, %107, %cst_47 {dimension_numbers = #tpu.dot_dimension_numbers<[1], [0], [0], [1], [0, 0, 1, 1], [], []>} : vector<32x64xbf16>, vector<64x64xbf16>, vector<32x64xf32> -> vector<32x64xf32>
    %c0_48 = arith.constant 0 : index
    %c0_49 = arith.constant 0 : index
    %109 = vector.load %arg14[%c0_48, %c0_49] : memref<1x64xf32, #tpu.memory_space<vmem>>, vector<1x64xf32>
    %110 = vector.broadcast %109 : vector<1x64xf32> to vector<32x64xf32>
    %111 = arith.addf %108, %110 : vector<32x64xf32>
    %112 = arith.truncf %1 : vector<32x64xf32> to vector<32x64xbf16>
    %c0_50 = arith.constant 0 : index
    %c0_51 = arith.constant 0 : index
    %113 = vector.load %arg15[%c0_50, %c0_51] : memref<64x64xbf16, #tpu.memory_space<vmem>>, vector<64x64xbf16>
    %cst_52 = arith.constant dense<0.000000e+00> : vector<32x64xf32>
    %114 = tpu.matmul %112, %113, %cst_52 {dimension_numbers = #tpu.dot_dimension_numbers<[1], [0], [0], [1], [0, 0, 1, 1], [], []>} : vector<32x64xbf16>, vector<64x64xbf16>, vector<32x64xf32> -> vector<32x64xf32>
    %c0_53 = arith.constant 0 : index
    %c0_54 = arith.constant 0 : index
    %115 = vector.load %arg16[%c0_53, %c0_54] : memref<1x64xf32, #tpu.memory_space<vmem>>, vector<1x64xf32>
    %116 = vector.broadcast %115 : vector<1x64xf32> to vector<32x64xf32>
    %117 = arith.addf %114, %116 : vector<32x64xf32>
    %118 = vector.shape_cast %105 : vector<32x64xf32> to vector<2x16x64xf32>
    %119 = arith.truncf %118 : vector<2x16x64xf32> to vector<2x16x64xbf16>
    %120 = vector.shape_cast %111 : vector<32x64xf32> to vector<2x16x64xf32>
    %121 = arith.truncf %120 : vector<2x16x64xf32> to vector<2x16x64xbf16>
    %122 = vector.shape_cast %117 : vector<32x64xf32> to vector<2x16x64xf32>
    %123 = arith.truncf %122 : vector<2x16x64xf32> to vector<2x16x64xbf16>
    %124 = vector.extract_strided_slice %119 {offsets = [0, 0, 0], sizes = [2, 16, 16], strides = [1, 1, 1]} : vector<2x16x64xbf16> to vector<2x16x16xbf16>
    %125 = vector.extract_strided_slice %121 {offsets = [0, 0, 0], sizes = [2, 16, 16], strides = [1, 1, 1]} : vector<2x16x64xbf16> to vector<2x16x16xbf16>
    %126 = vector.extract_strided_slice %123 {offsets = [0, 0, 0], sizes = [2, 16, 16], strides = [1, 1, 1]} : vector<2x16x64xbf16> to vector<2x16x16xbf16>
    "tpu.trace_start"() <{level = 10 : i32, message = "bqe,bke->bqk"}> : () -> ()
    %cst_55 = arith.constant dense<0.000000e+00> : vector<2x16x16xf32>
    %127 = tpu.matmul %124, %125, %cst_55 {dimension_numbers = #tpu.dot_dimension_numbers<[2], [2], [1], [1], [0, 0, 0, 1, 1, 1], [0], [0]>} : vector<2x16x16xbf16>, vector<2x16x16xbf16>, vector<2x16x16xf32> -> vector<2x16x16xf32>
    "tpu.trace_stop"() : () -> ()
    %cst_56 = arith.constant dense<0xFF800000> : vector<2x16xf32>
    %128 = vector.multi_reduction <maximumf>, %127, %cst_56 [2] : vector<2x16x16xf32> to vector<2x16xf32>
    %129 = vector.shape_cast %128 : vector<2x16xf32> to vector<2x16x1xf32>
    %130 = vector.broadcast %129 : vector<2x16x1xf32> to vector<2x16x16xf32>
    %131 = arith.subf %127, %130 : vector<2x16x16xf32>
    %132 = math.exp %131 : vector<2x16x16xf32>
    %cst_57 = arith.constant dense<0.000000e+00> : vector<2x16xf32>
    %133 = vector.multi_reduction <add>, %132, %cst_57 [2] : vector<2x16x16xf32> to vector<2x16xf32>
    %134 = vector.shape_cast %133 : vector<2x16xf32> to vector<2x16x1xf32>
    %135 = tpu.reciprocal %134 : vector<2x16x1xf32> -> vector<2x16x1xf32>
    %136 = vector.broadcast %135 : vector<2x16x1xf32> to vector<2x16x16xf32>
    %137 = arith.mulf %132, %136 : vector<2x16x16xf32>
    %138 = arith.truncf %137 : vector<2x16x16xf32> to vector<2x16x16xbf16>
    "tpu.trace_start"() <{level = 10 : i32, message = "bqk,bke->bqe"}> : () -> ()
    %cst_58 = arith.constant dense<0.000000e+00> : vector<2x16x16xf32>
    %139 = tpu.matmul %138, %126, %cst_58 {dimension_numbers = #tpu.dot_dimension_numbers<[2], [1], [1], [2], [0, 0, 0, 1, 1, 2], [0], [0]>} : vector<2x16x16xbf16>, vector<2x16x16xbf16>, vector<2x16x16xf32> -> vector<2x16x16xf32>
    "tpu.trace_stop"() : () -> ()
    %140 = vector.extract_strided_slice %119 {offsets = [0, 0, 16], sizes = [2, 16, 16], strides = [1, 1, 1]} : vector<2x16x64xbf16> to vector<2x16x16xbf16>
    %141 = vector.extract_strided_slice %121 {offsets = [0, 0, 16], sizes = [2, 16, 16], strides = [1, 1, 1]} : vector<2x16x64xbf16> to vector<2x16x16xbf16>
    %142 = vector.extract_strided_slice %123 {offsets = [0, 0, 16], sizes = [2, 16, 16], strides = [1, 1, 1]} : vector<2x16x64xbf16> to vector<2x16x16xbf16>
    "tpu.trace_start"() <{level = 10 : i32, message = "bqe,bke->bqk"}> : () -> ()
    %cst_59 = arith.constant dense<0.000000e+00> : vector<2x16x16xf32>
    %143 = tpu.matmul %140, %141, %cst_59 {dimension_numbers = #tpu.dot_dimension_numbers<[2], [2], [1], [1], [0, 0, 0, 1, 1, 1], [0], [0]>} : vector<2x16x16xbf16>, vector<2x16x16xbf16>, vector<2x16x16xf32> -> vector<2x16x16xf32>
    "tpu.trace_stop"() : () -> ()
    %cst_60 = arith.constant dense<0xFF800000> : vector<2x16xf32>
    %144 = vector.multi_reduction <maximumf>, %143, %cst_60 [2] : vector<2x16x16xf32> to vector<2x16xf32>
    %145 = vector.shape_cast %144 : vector<2x16xf32> to vector<2x16x1xf32>
    %146 = vector.broadcast %145 : vector<2x16x1xf32> to vector<2x16x16xf32>
    %147 = arith.subf %143, %146 : vector<2x16x16xf32>
    %148 = math.exp %147 : vector<2x16x16xf32>
    %cst_61 = arith.constant dense<0.000000e+00> : vector<2x16xf32>
    %149 = vector.multi_reduction <add>, %148, %cst_61 [2] : vector<2x16x16xf32> to vector<2x16xf32>
    %150 = vector.shape_cast %149 : vector<2x16xf32> to vector<2x16x1xf32>
    %151 = tpu.reciprocal %150 : vector<2x16x1xf32> -> vector<2x16x1xf32>
    %152 = vector.broadcast %151 : vector<2x16x1xf32> to vector<2x16x16xf32>
    %153 = arith.mulf %148, %152 : vector<2x16x16xf32>
    %154 = arith.truncf %153 : vector<2x16x16xf32> to vector<2x16x16xbf16>
    "tpu.trace_start"() <{level = 10 : i32, message = "bqk,bke->bqe"}> : () -> ()
    %cst_62 = arith.constant dense<0.000000e+00> : vector<2x16x16xf32>
    %155 = tpu.matmul %154, %142, %cst_62 {dimension_numbers = #tpu.dot_dimension_numbers<[2], [1], [1], [2], [0, 0, 0, 1, 1, 2], [0], [0]>} : vector<2x16x16xbf16>, vector<2x16x16xbf16>, vector<2x16x16xf32> -> vector<2x16x16xf32>
    "tpu.trace_stop"() : () -> ()
    %156 = vector.extract_strided_slice %119 {offsets = [0, 0, 32], sizes = [2, 16, 16], strides = [1, 1, 1]} : vector<2x16x64xbf16> to vector<2x16x16xbf16>
    %157 = vector.extract_strided_slice %121 {offsets = [0, 0, 32], sizes = [2, 16, 16], strides = [1, 1, 1]} : vector<2x16x64xbf16> to vector<2x16x16xbf16>
    %158 = vector.extract_strided_slice %123 {offsets = [0, 0, 32], sizes = [2, 16, 16], strides = [1, 1, 1]} : vector<2x16x64xbf16> to vector<2x16x16xbf16>
    "tpu.trace_start"() <{level = 10 : i32, message = "bqe,bke->bqk"}> : () -> ()
    %cst_63 = arith.constant dense<0.000000e+00> : vector<2x16x16xf32>
    %159 = tpu.matmul %156, %157, %cst_63 {dimension_numbers = #tpu.dot_dimension_numbers<[2], [2], [1], [1], [0, 0, 0, 1, 1, 1], [0], [0]>} : vector<2x16x16xbf16>, vector<2x16x16xbf16>, vector<2x16x16xf32> -> vector<2x16x16xf32>
    "tpu.trace_stop"() : () -> ()
    %cst_64 = arith.constant dense<0xFF800000> : vector<2x16xf32>
    %160 = vector.multi_reduction <maximumf>, %159, %cst_64 [2] : vector<2x16x16xf32> to vector<2x16xf32>
    %161 = vector.shape_cast %160 : vector<2x16xf32> to vector<2x16x1xf32>
    %162 = vector.broadcast %161 : vector<2x16x1xf32> to vector<2x16x16xf32>
    %163 = arith.subf %159, %162 : vector<2x16x16xf32>
    %164 = math.exp %163 : vector<2x16x16xf32>
    %cst_65 = arith.constant dense<0.000000e+00> : vector<2x16xf32>
    %165 = vector.multi_reduction <add>, %164, %cst_65 [2] : vector<2x16x16xf32> to vector<2x16xf32>
    %166 = vector.shape_cast %165 : vector<2x16xf32> to vector<2x16x1xf32>
    %167 = tpu.reciprocal %166 : vector<2x16x1xf32> -> vector<2x16x1xf32>
    %168 = vector.broadcast %167 : vector<2x16x1xf32> to vector<2x16x16xf32>
    %169 = arith.mulf %164, %168 : vector<2x16x16xf32>
    %170 = arith.truncf %169 : vector<2x16x16xf32> to vector<2x16x16xbf16>
    "tpu.trace_start"() <{level = 10 : i32, message = "bqk,bke->bqe"}> : () -> ()
    %cst_66 = arith.constant dense<0.000000e+00> : vector<2x16x16xf32>
    %171 = tpu.matmul %170, %158, %cst_66 {dimension_numbers = #tpu.dot_dimension_numbers<[2], [1], [1], [2], [0, 0, 0, 1, 1, 2], [0], [0]>} : vector<2x16x16xbf16>, vector<2x16x16xbf16>, vector<2x16x16xf32> -> vector<2x16x16xf32>
    "tpu.trace_stop"() : () -> ()
    %172 = vector.extract_strided_slice %119 {offsets = [0, 0, 48], sizes = [2, 16, 16], strides = [1, 1, 1]} : vector<2x16x64xbf16> to vector<2x16x16xbf16>
    %173 = vector.extract_strided_slice %121 {offsets = [0, 0, 48], sizes = [2, 16, 16], strides = [1, 1, 1]} : vector<2x16x64xbf16> to vector<2x16x16xbf16>
    %174 = vector.extract_strided_slice %123 {offsets = [0, 0, 48], sizes = [2, 16, 16], strides = [1, 1, 1]} : vector<2x16x64xbf16> to vector<2x16x16xbf16>
    "tpu.trace_start"() <{level = 10 : i32, message = "bqe,bke->bqk"}> : () -> ()
    %cst_67 = arith.constant dense<0.000000e+00> : vector<2x16x16xf32>
    %175 = tpu.matmul %172, %173, %cst_67 {dimension_numbers = #tpu.dot_dimension_numbers<[2], [2], [1], [1], [0, 0, 0, 1, 1, 1], [0], [0]>} : vector<2x16x16xbf16>, vector<2x16x16xbf16>, vector<2x16x16xf32> -> vector<2x16x16xf32>
    "tpu.trace_stop"() : () -> ()
    %cst_68 = arith.constant dense<0xFF800000> : vector<2x16xf32>
    %176 = vector.multi_reduction <maximumf>, %175, %cst_68 [2] : vector<2x16x16xf32> to vector<2x16xf32>
    %177 = vector.shape_cast %176 : vector<2x16xf32> to vector<2x16x1xf32>
    %178 = vector.broadcast %177 : vector<2x16x1xf32> to vector<2x16x16xf32>
    %179 = arith.subf %175, %178 : vector<2x16x16xf32>
    %180 = math.exp %179 : vector<2x16x16xf32>
    %cst_69 = arith.constant dense<0.000000e+00> : vector<2x16xf32>
    %181 = vector.multi_reduction <add>, %180, %cst_69 [2] : vector<2x16x16xf32> to vector<2x16xf32>
    %182 = vector.shape_cast %181 : vector<2x16xf32> to vector<2x16x1xf32>
    %183 = tpu.reciprocal %182 : vector<2x16x1xf32> -> vector<2x16x1xf32>
    %184 = vector.broadcast %183 : vector<2x16x1xf32> to vector<2x16x16xf32>
    %185 = arith.mulf %180, %184 : vector<2x16x16xf32>
    %186 = arith.truncf %185 : vector<2x16x16xf32> to vector<2x16x16xbf16>
    "tpu.trace_start"() <{level = 10 : i32, message = "bqk,bke->bqe"}> : () -> ()
    %cst_70 = arith.constant dense<0.000000e+00> : vector<2x16x16xf32>
    %187 = tpu.matmul %186, %174, %cst_70 {dimension_numbers = #tpu.dot_dimension_numbers<[2], [1], [1], [2], [0, 0, 0, 1, 1, 2], [0], [0]>} : vector<2x16x16xbf16>, vector<2x16x16xbf16>, vector<2x16x16xf32> -> vector<2x16x16xf32>
    "tpu.trace_stop"() : () -> ()
    %188 = tpu.concatenate %139, %155, %171, %187 in 2 : vector<2x16x16xf32>, vector<2x16x16xf32>, vector<2x16x16xf32>, vector<2x16x16xf32> -> vector<2x16x64xf32>
    %189 = vector.shape_cast %188 : vector<2x16x64xf32> to vector<32x64xf32>
    %190 = arith.truncf %189 : vector<32x64xf32> to vector<32x64xbf16>
    %c0_71 = arith.constant 0 : index
    %c0_72 = arith.constant 0 : index
    %191 = vector.load %arg17[%c0_71, %c0_72] : memref<64x64xbf16, #tpu.memory_space<vmem>>, vector<64x64xbf16>
    %cst_73 = arith.constant dense<0.000000e+00> : vector<32x64xf32>
    %192 = tpu.matmul %190, %191, %cst_73 {dimension_numbers = #tpu.dot_dimension_numbers<[1], [0], [0], [1], [0, 0, 1, 1], [], []>} : vector<32x64xbf16>, vector<64x64xbf16>, vector<32x64xf32> -> vector<32x64xf32>
    %c0_74 = arith.constant 0 : index
    %c0_75 = arith.constant 0 : index
    %193 = vector.load %arg18[%c0_74, %c0_75] : memref<1x64xf32, #tpu.memory_space<vmem>>, vector<1x64xf32>
    %194 = vector.broadcast %193 : vector<1x64xf32> to vector<32x64xf32>
    %195 = arith.addf %192, %194 : vector<32x64xf32>
    %196 = arith.addf %1, %99 : vector<32x64xf32>
    %197 = arith.addf %3, %195 : vector<32x64xf32>
    %c0_76 = arith.constant 0 : index
    %c0_77 = arith.constant 0 : index
    %198 = vector.load %arg26[%c0_76, %c0_77] : memref<1x64xf32, #tpu.memory_space<vmem>>, vector<1x64xf32>
    %c0_78 = arith.constant 0 : index
    %c0_79 = arith.constant 0 : index
    %199 = vector.load %arg27[%c0_78, %c0_79] : memref<1x64xf32, #tpu.memory_space<vmem>>, vector<1x64xf32>
    %c0_80 = arith.constant 0 : index
    %c0_81 = arith.constant 0 : index
    %200 = vector.load %arg28[%c0_80, %c0_81] : memref<1x64xf32, #tpu.memory_space<vmem>>, vector<1x64xf32>
    %c0_82 = arith.constant 0 : index
    %c0_83 = arith.constant 0 : index
    %201 = vector.load %arg29[%c0_82, %c0_83] : memref<1x64xf32, #tpu.memory_space<vmem>>, vector<1x64xf32>
    %cst_84 = arith.constant dense<0.000000e+00> : vector<32xf32>
    %202 = vector.multi_reduction <add>, %196, %cst_84 [1] : vector<32x64xf32> to vector<32xf32>
    %203 = vector.shape_cast %202 : vector<32xf32> to vector<32x1xf32>
    %cst_85 = arith.constant dense<0.000000e+00> : vector<32xf32>
    %204 = vector.multi_reduction <add>, %197, %cst_85 [1] : vector<32x64xf32> to vector<32xf32>
    %205 = vector.shape_cast %204 : vector<32xf32> to vector<32x1xf32>
    %206 = arith.addf %203, %205 : vector<32x1xf32>
    %cst_86 = arith.constant 1.280000e+02 : f32
    %207 = vector.broadcast %cst_86 : f32 to vector<32x1xf32>
    %208 = arith.divf %206, %207 : vector<32x1xf32>
    %209 = vector.broadcast %208 : vector<32x1xf32> to vector<32x64xf32>
    %210 = arith.subf %196, %209 : vector<32x64xf32>
    %211 = vector.broadcast %208 : vector<32x1xf32> to vector<32x64xf32>
    %212 = arith.subf %197, %211 : vector<32x64xf32>
    %213 = arith.mulf %210, %210 : vector<32x64xf32>
    %cst_87 = arith.constant dense<0.000000e+00> : vector<32xf32>
    %214 = vector.multi_reduction <add>, %213, %cst_87 [1] : vector<32x64xf32> to vector<32xf32>
    %215 = vector.shape_cast %214 : vector<32xf32> to vector<32x1xf32>
    %216 = arith.mulf %212, %212 : vector<32x64xf32>
    %cst_88 = arith.constant dense<0.000000e+00> : vector<32xf32>
    %217 = vector.multi_reduction <add>, %216, %cst_88 [1] : vector<32x64xf32> to vector<32xf32>
    %218 = vector.shape_cast %217 : vector<32xf32> to vector<32x1xf32>
    %219 = arith.addf %215, %218 : vector<32x1xf32>
    %cst_89 = arith.constant 1.280000e+02 : f32
    %220 = vector.broadcast %cst_89 : f32 to vector<32x1xf32>
    %221 = arith.divf %219, %220 : vector<32x1xf32>
    %cst_90 = arith.constant 9.99999974E-6 : f32
    %222 = vector.broadcast %cst_90 : f32 to vector<32x1xf32>
    %223 = arith.addf %221, %222 : vector<32x1xf32>
    %224 = math.rsqrt %223 : vector<32x1xf32>
    %225 = vector.broadcast %224 : vector<32x1xf32> to vector<32x64xf32>
    %226 = arith.mulf %210, %225 : vector<32x64xf32>
    %227 = vector.broadcast %198 : vector<1x64xf32> to vector<32x64xf32>
    %228 = arith.mulf %226, %227 : vector<32x64xf32>
    %229 = vector.broadcast %199 : vector<1x64xf32> to vector<32x64xf32>
    %230 = arith.addf %228, %229 : vector<32x64xf32>
    %231 = vector.broadcast %224 : vector<32x1xf32> to vector<32x64xf32>
    %232 = arith.mulf %212, %231 : vector<32x64xf32>
    %233 = vector.broadcast %200 : vector<1x64xf32> to vector<32x64xf32>
    %234 = arith.mulf %232, %233 : vector<32x64xf32>
    %235 = vector.broadcast %201 : vector<1x64xf32> to vector<32x64xf32>
    %236 = arith.addf %234, %235 : vector<32x64xf32>
    %237 = arith.truncf %230 : vector<32x64xf32> to vector<32x64xbf16>
    %c0_91 = arith.constant 0 : index
    %c0_92 = arith.constant 0 : index
    %238 = vector.load %arg19[%c0_91, %c0_92] : memref<64x128xbf16, #tpu.memory_space<vmem>>, vector<64x128xbf16>
    %cst_93 = arith.constant dense<0.000000e+00> : vector<32x128xf32>
    %239 = tpu.matmul %237, %238, %cst_93 {dimension_numbers = #tpu.dot_dimension_numbers<[1], [0], [0], [1], [0, 0, 1, 1], [], []>} : vector<32x64xbf16>, vector<64x128xbf16>, vector<32x128xf32> -> vector<32x128xf32>
    %240 = arith.truncf %236 : vector<32x64xf32> to vector<32x64xbf16>
    %c0_94 = arith.constant 0 : index
    %c0_95 = arith.constant 0 : index
    %241 = vector.load %arg20[%c0_94, %c0_95] : memref<64x128xbf16, #tpu.memory_space<vmem>>, vector<64x128xbf16>
    %cst_96 = arith.constant dense<0.000000e+00> : vector<32x128xf32>
    %242 = tpu.matmul %240, %241, %cst_96 {dimension_numbers = #tpu.dot_dimension_numbers<[1], [0], [0], [1], [0, 0, 1, 1], [], []>} : vector<32x64xbf16>, vector<64x128xbf16>, vector<32x128xf32> -> vector<32x128xf32>
    %243 = arith.addf %239, %242 : vector<32x128xf32>
    %c0_97 = arith.constant 0 : index
    %c0_98 = arith.constant 0 : index
    %244 = vector.load %arg21[%c0_97, %c0_98] : memref<1x128xf32, #tpu.memory_space<vmem>>, vector<1x128xf32>
    %245 = vector.broadcast %244 : vector<1x128xf32> to vector<32x128xf32>
    %246 = arith.addf %243, %245 : vector<32x128xf32>
    %cst_99 = arith.constant 0.000000e+00 : f32
    %247 = vector.broadcast %cst_99 : f32 to vector<32x128xf32>
    %248 = arith.maximumf %246, %247 : vector<32x128xf32>
    %249 = arith.truncf %248 : vector<32x128xf32> to vector<32x128xbf16>
    %c0_100 = arith.constant 0 : index
    %c0_101 = arith.constant 0 : index
    %250 = vector.load %arg22[%c0_100, %c0_101] : memref<128x64xbf16, #tpu.memory_space<vmem>>, vector<128x64xbf16>
    %cst_102 = arith.constant dense<0.000000e+00> : vector<32x64xf32>
    %251 = tpu.matmul %249, %250, %cst_102 {dimension_numbers = #tpu.dot_dimension_numbers<[1], [0], [0], [1], [0, 0, 1, 1], [], []>} : vector<32x128xbf16>, vector<128x64xbf16>, vector<32x64xf32> -> vector<32x64xf32>
    %252 = arith.addf %230, %251 : vector<32x64xf32>
    %c0_103 = arith.constant 0 : index
    %c0_104 = arith.constant 0 : index
    %253 = vector.load %arg24[%c0_103, %c0_104] : memref<1x64xf32, #tpu.memory_space<vmem>>, vector<1x64xf32>
    %254 = vector.broadcast %253 : vector<1x64xf32> to vector<32x64xf32>
    %255 = arith.addf %252, %254 : vector<32x64xf32>
    %c0_105 = arith.constant 0 : index
    %c0_106 = arith.constant 0 : index
    %256 = vector.load %arg23[%c0_105, %c0_106] : memref<128x64xbf16, #tpu.memory_space<vmem>>, vector<128x64xbf16>
    %cst_107 = arith.constant dense<0.000000e+00> : vector<32x64xf32>
    %257 = tpu.matmul %249, %256, %cst_107 {dimension_numbers = #tpu.dot_dimension_numbers<[1], [0], [0], [1], [0, 0, 1, 1], [], []>} : vector<32x128xbf16>, vector<128x64xbf16>, vector<32x64xf32> -> vector<32x64xf32>
    %258 = arith.addf %236, %257 : vector<32x64xf32>
    %c0_108 = arith.constant 0 : index
    %c0_109 = arith.constant 0 : index
    %259 = vector.load %arg25[%c0_108, %c0_109] : memref<1x64xf32, #tpu.memory_space<vmem>>, vector<1x64xf32>
    %260 = vector.broadcast %259 : vector<1x64xf32> to vector<32x64xf32>
    %261 = arith.addf %258, %260 : vector<32x64xf32>
    %c0_110 = arith.constant 0 : index
    %c0_111 = arith.constant 0 : index
    %262 = vector.load %arg30[%c0_110, %c0_111] : memref<1x64xf32, #tpu.memory_space<vmem>>, vector<1x64xf32>
    %c0_112 = arith.constant 0 : index
    %c0_113 = arith.constant 0 : index
    %263 = vector.load %arg31[%c0_112, %c0_113] : memref<1x64xf32, #tpu.memory_space<vmem>>, vector<1x64xf32>
    %c0_114 = arith.constant 0 : index
    %c0_115 = arith.constant 0 : index
    %264 = vector.load %arg32[%c0_114, %c0_115] : memref<1x64xf32, #tpu.memory_space<vmem>>, vector<1x64xf32>
    %c0_116 = arith.constant 0 : index
    %c0_117 = arith.constant 0 : index
    %265 = vector.load %arg33[%c0_116, %c0_117] : memref<1x64xf32, #tpu.memory_space<vmem>>, vector<1x64xf32>
    %cst_118 = arith.constant dense<0.000000e+00> : vector<32xf32>
    %266 = vector.multi_reduction <add>, %255, %cst_118 [1] : vector<32x64xf32> to vector<32xf32>
    %267 = vector.shape_cast %266 : vector<32xf32> to vector<32x1xf32>
    %cst_119 = arith.constant dense<0.000000e+00> : vector<32xf32>
    %268 = vector.multi_reduction <add>, %261, %cst_119 [1] : vector<32x64xf32> to vector<32xf32>
    %269 = vector.shape_cast %268 : vector<32xf32> to vector<32x1xf32>
    %270 = arith.addf %267, %269 : vector<32x1xf32>
    %cst_120 = arith.constant 1.280000e+02 : f32
    %271 = vector.broadcast %cst_120 : f32 to vector<32x1xf32>
    %272 = arith.divf %270, %271 : vector<32x1xf32>
    %273 = vector.broadcast %272 : vector<32x1xf32> to vector<32x64xf32>
    %274 = arith.subf %255, %273 : vector<32x64xf32>
    %275 = vector.broadcast %272 : vector<32x1xf32> to vector<32x64xf32>
    %276 = arith.subf %261, %275 : vector<32x64xf32>
    %277 = arith.mulf %274, %274 : vector<32x64xf32>
    %cst_121 = arith.constant dense<0.000000e+00> : vector<32xf32>
    %278 = vector.multi_reduction <add>, %277, %cst_121 [1] : vector<32x64xf32> to vector<32xf32>
    %279 = vector.shape_cast %278 : vector<32xf32> to vector<32x1xf32>
    %280 = arith.mulf %276, %276 : vector<32x64xf32>
    %cst_122 = arith.constant dense<0.000000e+00> : vector<32xf32>
    %281 = vector.multi_reduction <add>, %280, %cst_122 [1] : vector<32x64xf32> to vector<32xf32>
    %282 = vector.shape_cast %281 : vector<32xf32> to vector<32x1xf32>
    %283 = arith.addf %279, %282 : vector<32x1xf32>
    %cst_123 = arith.constant 1.280000e+02 : f32
    %284 = vector.broadcast %cst_123 : f32 to vector<32x1xf32>
    %285 = arith.divf %283, %284 : vector<32x1xf32>
    %cst_124 = arith.constant 9.99999974E-6 : f32
    %286 = vector.broadcast %cst_124 : f32 to vector<32x1xf32>
    %287 = arith.addf %285, %286 : vector<32x1xf32>
    %288 = math.rsqrt %287 : vector<32x1xf32>
    %289 = vector.broadcast %288 : vector<32x1xf32> to vector<32x64xf32>
    %290 = arith.mulf %274, %289 : vector<32x64xf32>
    %291 = vector.broadcast %262 : vector<1x64xf32> to vector<32x64xf32>
    %292 = arith.mulf %290, %291 : vector<32x64xf32>
    %293 = vector.broadcast %263 : vector<1x64xf32> to vector<32x64xf32>
    %294 = arith.addf %292, %293 : vector<32x64xf32>
    %295 = vector.broadcast %288 : vector<32x1xf32> to vector<32x64xf32>
    %296 = arith.mulf %276, %295 : vector<32x64xf32>
    %297 = vector.broadcast %264 : vector<1x64xf32> to vector<32x64xf32>
    %298 = arith.mulf %296, %297 : vector<32x64xf32>
    %299 = vector.broadcast %265 : vector<1x64xf32> to vector<32x64xf32>
    %300 = arith.addf %298, %299 : vector<32x64xf32>
    %301 = vector.shape_cast %294 : vector<32x64xf32> to vector<2x16x64xf32>
    %302 = vector.shape_cast %300 : vector<32x64xf32> to vector<2x16x64xf32>
    %303 = tpu.concatenate %301, %302 in 2 : vector<2x16x64xf32>, vector<2x16x64xf32> -> vector<2x16x128xf32>
    %c0_125 = arith.constant 0 : index
    %c0_126 = arith.constant 0 : index
    %c0_127 = arith.constant 0 : index
    %304 = vector.load %arg34[%c0_125, %c0_126, %c0_127] : memref<2x16x128xf32, #tpu.memory_space<vmem>>, vector<2x16x128xf32>
    tpu.vector_store %arg34[%c0_125, %c0_126, %c0_127], %303 {strides = array<i32>} : memref<2x16x128xf32, #tpu.memory_space<vmem>>, vector<2x16x128xf32>,
    return
  }
  func.func @transform_0(%arg0: i32) -> (i32, i32, i32) {
    %c0_i32 = arith.constant 0 : i32
    %c0_i32_0 = arith.constant 0 : i32
    %c0_i32_1 = arith.constant 0 : i32
    return %arg0, %c0_i32, %c0_i32_0 : i32, i32, i32
  }
  func.func @transform_1(%arg0: i32) -> (i32, i32, i32) {
    %c0_i32 = arith.constant 0 : i32
    %c0_i32_0 = arith.constant 0 : i32
    %c0_i32_1 = arith.constant 0 : i32
    return %arg0, %c0_i32, %c0_i32_0 : i32, i32, i32
  }
  func.func @transform_2(%arg0: i32) -> (i32, i32) {
    %c0_i32 = arith.constant 0 : i32
    %c0_i32_0 = arith.constant 0 : i32
    %c0_i32_1 = arith.constant 0 : i32
    return %c0_i32, %c0_i32_0 : i32, i32
  }
  func.func @transform_3(%arg0: i32) -> (i32, i32) {
    %c0_i32 = arith.constant 0 : i32
    %c0_i32_0 = arith.constant 0 : i32
    %c0_i32_1 = arith.constant 0 : i32
    return %c0_i32, %c0_i32_0 : i32, i32
  }
  func.func @transform_4(%arg0: i32) -> (i32, i32) {
    %c0_i32 = arith.constant 0 : i32
    %c0_i32_0 = arith.constant 0 : i32
    %c0_i32_1 = arith.constant 0 : i32
    return %c0_i32, %c0_i32_0 : i32, i32
  }
  func.func @transform_5(%arg0: i32) -> (i32, i32) {
    %c0_i32 = arith.constant 0 : i32
    %c0_i32_0 = arith.constant 0 : i32
    %c0_i32_1 = arith.constant 0 : i32
    return %c0_i32, %c0_i32_0 : i32, i32
  }
  func.func @transform_6(%arg0: i32) -> (i32, i32) {
    %c0_i32 = arith.constant 0 : i32
    %c0_i32_0 = arith.constant 0 : i32
    %c0_i32_1 = arith.constant 0 : i32
    return %c0_i32, %c0_i32_0 : i32, i32
  }
  func.func @transform_7(%arg0: i32) -> (i32, i32) {
    %c0_i32 = arith.constant 0 : i32
    %c0_i32_0 = arith.constant 0 : i32
    %c0_i32_1 = arith.constant 0 : i32
    return %c0_i32, %c0_i32_0 : i32, i32
  }
  func.func @transform_8(%arg0: i32) -> (i32, i32) {
    %c0_i32 = arith.constant 0 : i32
    %c0_i32_0 = arith.constant 0 : i32
    %c0_i32_1 = arith.constant 0 : i32
    return %c0_i32, %c0_i32_0 : i32, i32
  }
  func.func @transform_9(%arg0: i32) -> (i32, i32) {
    %c0_i32 = arith.constant 0 : i32
    %c0_i32_0 = arith.constant 0 : i32
    %c0_i32_1 = arith.constant 0 : i32
    return %c0_i32, %c0_i32_0 : i32, i32
  }
  func.func @transform_10(%arg0: i32) -> (i32, i32) {
    %c0_i32 = arith.constant 0 : i32
    %c0_i32_0 = arith.constant 0 : i32
    %c0_i32_1 = arith.constant 0 : i32
    return %c0_i32, %c0_i32_0 : i32, i32
  }
  func.func @transform_11(%arg0: i32) -> (i32, i32) {
    %c0_i32 = arith.constant 0 : i32
    %c0_i32_0 = arith.constant 0 : i32
    %c0_i32_1 = arith.constant 0 : i32
    return %c0_i32, %c0_i32_0 : i32, i32
  }
  func.func @transform_12(%arg0: i32) -> (i32, i32) {
    %c0_i32 = arith.constant 0 : i32
    %c0_i32_0 = arith.constant 0 : i32
    %c0_i32_1 = arith.constant 0 : i32
    return %c0_i32, %c0_i32_0 : i32, i32
  }
  func.func @transform_13(%arg0: i32) -> (i32, i32) {
    %c0_i32 = arith.constant 0 : i32
    %c0_i32_0 = arith.constant 0 : i32
    %c0_i32_1 = arith.constant 0 : i32
    return %c0_i32, %c0_i32_0 : i32, i32
  }
  func.func @transform_14(%arg0: i32) -> (i32, i32) {
    %c0_i32 = arith.constant 0 : i32
    %c0_i32_0 = arith.constant 0 : i32
    %c0_i32_1 = arith.constant 0 : i32
    return %c0_i32, %c0_i32_0 : i32, i32
  }
  func.func @transform_15(%arg0: i32) -> (i32, i32) {
    %c0_i32 = arith.constant 0 : i32
    %c0_i32_0 = arith.constant 0 : i32
    %c0_i32_1 = arith.constant 0 : i32
    return %c0_i32, %c0_i32_0 : i32, i32
  }
  func.func @transform_16(%arg0: i32) -> (i32, i32) {
    %c0_i32 = arith.constant 0 : i32
    %c0_i32_0 = arith.constant 0 : i32
    %c0_i32_1 = arith.constant 0 : i32
    return %c0_i32, %c0_i32_0 : i32, i32
  }
  func.func @transform_17(%arg0: i32) -> (i32, i32) {
    %c0_i32 = arith.constant 0 : i32
    %c0_i32_0 = arith.constant 0 : i32
    %c0_i32_1 = arith.constant 0 : i32
    return %c0_i32, %c0_i32_0 : i32, i32
  }
  func.func @transform_18(%arg0: i32) -> (i32, i32) {
    %c0_i32 = arith.constant 0 : i32
    %c0_i32_0 = arith.constant 0 : i32
    %c0_i32_1 = arith.constant 0 : i32
    return %c0_i32, %c0_i32_0 : i32, i32
  }
  func.func @transform_19(%arg0: i32) -> (i32, i32) {
    %c0_i32 = arith.constant 0 : i32
    %c0_i32_0 = arith.constant 0 : i32
    %c0_i32_1 = arith.constant 0 : i32
    return %c0_i32, %c0_i32_0 : i32, i32
  }
  func.func @transform_20(%arg0: i32) -> (i32, i32) {
    %c0_i32 = arith.constant 0 : i32
    %c0_i32_0 = arith.constant 0 : i32
    %c0_i32_1 = arith.constant 0 : i32
    return %c0_i32, %c0_i32_0 : i32, i32
  }
  func.func @transform_21(%arg0: i32) -> (i32, i32) {
    %c0_i32 = arith.constant 0 : i32
    %c0_i32_0 = arith.constant 0 : i32
    %c0_i32_1 = arith.constant 0 : i32
    return %c0_i32, %c0_i32_0 : i32, i32
  }
  func.func @transform_22(%arg0: i32) -> (i32, i32) {
    %c0_i32 = arith.constant 0 : i32
    %c0_i32_0 = arith.constant 0 : i32
    %c0_i32_1 = arith.constant 0 : i32
    return %c0_i32, %c0_i32_0 : i32, i32
  }
  func.func @transform_23(%arg0: i32) -> (i32, i32) {
    %c0_i32 = arith.constant 0 : i32
    %c0_i32_0 = arith.constant 0 : i32
    %c0_i32_1 = arith.constant 0 : i32
    return %c0_i32, %c0_i32_0 : i32, i32
  }
  func.func @transform_24(%arg0: i32) -> (i32, i32) {
    %c0_i32 = arith.constant 0 : i32
    %c0_i32_0 = arith.constant 0 : i32
    %c0_i32_1 = arith.constant 0 : i32
    return %c0_i32, %c0_i32_0 : i32, i32
  }
  func.func @transform_25(%arg0: i32) -> (i32, i32) {
    %c0_i32 = arith.constant 0 : i32
    %c0_i32_0 = arith.constant 0 : i32
    %c0_i32_1 = arith.constant 0 : i32
    return %c0_i32, %c0_i32_0 : i32, i32
  }
  func.func @transform_26(%arg0: i32) -> (i32, i32) {
    %c0_i32 = arith.constant 0 : i32
    %c0_i32_0 = arith.constant 0 : i32
    %c0_i32_1 = arith.constant 0 : i32
    return %c0_i32, %c0_i32_0 : i32, i32
  }
  func.func @transform_27(%arg0: i32) -> (i32, i32) {
    %c0_i32 = arith.constant 0 : i32
    %c0_i32_0 = arith.constant 0 : i32
    %c0_i32_1 = arith.constant 0 : i32
    return %c0_i32, %c0_i32_0 : i32, i32
  }
  func.func @transform_28(%arg0: i32) -> (i32, i32) {
    %c0_i32 = arith.constant 0 : i32
    %c0_i32_0 = arith.constant 0 : i32
    %c0_i32_1 = arith.constant 0 : i32
    return %c0_i32, %c0_i32_0 : i32, i32
  }
  func.func @transform_29(%arg0: i32) -> (i32, i32) {
    %c0_i32 = arith.constant 0 : i32
    %c0_i32_0 = arith.constant 0 : i32
    %c0_i32_1 = arith.constant 0 : i32
    return %c0_i32, %c0_i32_0 : i32, i32
  }
  func.func @transform_30(%arg0: i32) -> (i32, i32) {
    %c0_i32 = arith.constant 0 : i32
    %c0_i32_0 = arith.constant 0 : i32
    %c0_i32_1 = arith.constant 0 : i32
    return %c0_i32, %c0_i32_0 : i32, i32
  }
  func.func @transform_31(%arg0: i32) -> (i32, i32) {
    %c0_i32 = arith.constant 0 : i32
    %c0_i32_0 = arith.constant 0 : i32
    %c0_i32_1 = arith.constant 0 : i32
    return %c0_i32, %c0_i32_0 : i32, i32
  }
  func.func @transform_32(%arg0: i32) -> (i32, i32) {
    %c0_i32 = arith.constant 0 : i32
    %c0_i32_0 = arith.constant 0 : i32
    %c0_i32_1 = arith.constant 0 : i32
    return %c0_i32, %c0_i32_0 : i32, i32
  }
  func.func @transform_33(%arg0: i32) -> (i32, i32, i32) {
    %c0_i32 = arith.constant 0 : i32
    %c0_i32_0 = arith.constant 0 : i32
    %c0_i32_1 = arith.constant 0 : i32
    return %arg0, %c0_i32, %c0_i32_0 : i32, i32, i32
  }
}

</mosaic_0001>

<bundles_post_ra>
// kernel: cross_modal_encoder_layer.1
= control target key start
LH: loop header
LB: loop body
LE: loop exit
PB: predicated region body
PF: predicated region fallthrough
CT: control target
= control target key end

     0   :  { %s7227_s6 = smov 1   ;;  %s7228_s10 = smov 2   ;;  %s8558_s0 = inlined_call_operand.smem [shape: u32[34], index: -1, kind: input, shape index: {}] }
   0x1   :  { %s7304_s5 = sld [smem:[%s8558_s0]]   ;;  %s7229_s14 = smov 3  }
   0x2   :  { %s7309_s9 = sld [smem:[%s8558_s0 + %s7227_s6]]   ;;  %s7230_s18 = smov 4  }
   0x3   :  { %s7314_s13 = sld [smem:[%s8558_s0 + %s7228_s10]]   ;;  %s7231_s22 = smov 5  }
   0x4   :  { %s7319_s17 = sld [smem:[%s8558_s0 + %s7229_s14]]   ;;  %s7232_s26 = smov 6  }
   0x5   :  { %s7324_s21 = sld [smem:[%s8558_s0 + %s7230_s18]]   ;;  %s7233_s30 = smov 7  }
   0x6   :  { %s7329_s25 = sld [smem:[%s8558_s0 + %s7231_s22]]   ;;  %s7234_s4 = smov 8  }
   0x7   :  { %8596 = sst [smem:[#allocation51_spill]] %s7304_s5  ;;  %s7235_s10 = smov 9  }
   0x8   :  { %8597 = sst [smem:[#allocation52_spill]] %s7309_s9  ;;  %s7236_s15 = smov 10  }
   0x9   :  { %8598 = sst [smem:[#allocation53_spill]] %s7314_s13  ;;  %s7237_s20 = smov 11  }
   0xa   :  { %s7334_s29 = sld [smem:[%s8558_s0 + %s7232_s26]]   ;;  %s7238_s26 = smov 12  }
   0xb   :  { %s7339_s3 = sld [smem:[%s8558_s0 + %s7233_s30]]   ;;  %s7239_s1 = smov 13  }
   0xc   :  { %s7344_s8 = sld [smem:[%s8558_s0 + %s7234_s4]]   ;;  %s7240_s7 = smov 14  }
   0xd   :  { %s7349_s14 = sld [smem:[%s8558_s0 + %s7235_s10]]   ;;  %s7242_s22 = smov 16  }
   0xe   :  { %s7354_s19 = sld [smem:[%s8558_s0 + %s7236_s15]]   ;;  %s7241_s15 = smov 15  }
   0xf   :  { %s7359_s24 = sld [smem:[%s8558_s0 + %s7237_s20]]   ;;  %s7243_s28 = smov 17  }
  0x10   :  { %8599 = sst [smem:[#allocation54_spill]] %s7334_s29 }
  0x11   :  { %8600 = sst [smem:[#allocation55_spill]] %s7339_s3 }
  0x12   :  { %8601 = sst [smem:[#allocation56_spill]] %s7344_s8 }
  0x13   :  { %s7364_s30 = sld [smem:[%s8558_s0 + %s7238_s26]]  }
  0x14   :  { %s7369_s6 = sld [smem:[%s8558_s0 + %s7239_s1]]  }
  0x15   :  { %s7374_s12 = sld [smem:[%s8558_s0 + %s7240_s7]]   ;;  %s7244_s7 = smov 18  }
  0x16   :  { %s7379_s20 = sld [smem:[%s8558_s0 + %s7241_s15]]   ;;  %s7245_s15 = smov 19  }
  0x17   :  { %s7384_s27 = sld [smem:[%s8558_s0 + %s7242_s22]]   ;;  %s7246_s22 = smov 20  }
  0x18   :  { %s7389_s4 = sld [smem:[%s8558_s0 + %s7243_s28]]   ;;  %s7247_s28 = smov 21  }
  0x19   :  { %8602 = sst [smem:[#allocation57_spill]] %s7364_s30 }
  0x1a   :  { %8603 = sst [smem:[#allocation58_spill]] %s7369_s6 }
  0x1b   :  { %8604 = sst [smem:[#allocation59_spill]] %s7374_s12 }
  0x1c   :  { %s7394_s29 = sld [smem:[%s8558_s0 + %s7244_s7]]   ;;  %s7248_s7 = smov 22  }
  0x1d   :  { %8605 = sst [smem:[#allocation60_spill]] %s7384_s27 }
  0x1e   :  { %8606 = sst [smem:[#allocation61_spill]] %s7389_s4 }
  0x1f   :  { %s7399_s5 = sld [smem:[%s8558_s0 + %s7245_s15]]   ;;  %s7249_s15 = smov 23  }
  0x20   :  { %s7404_s9 = sld [smem:[%s8558_s0 + %s7246_s22]]   ;;  %s7250_s22 = smov 24  }
  0x21   :  { %s7409_s13 = sld [smem:[%s8558_s0 + %s7247_s28]]   ;;  %s7251_s28 = smov 25  }
  0x22   :  { %8607 = sst [smem:[#allocation62_spill]] %s7394_s29 }
  0x23   :  { %s7414_s29 = sld [smem:[%s8558_s0 + %s7248_s7]]   ;;  %s7252_s7 = smov 26  }
  0x25   :  { %8608 = sst [smem:[#allocation63_spill]] %s7399_s5 }
  0x26   :  { %8609 = sst [smem:[#allocation64_spill]] %s7404_s9 }
  0x27   :  { %8610 = sst [smem:[#allocation65_spill]] %s7409_s13 }
  0x28   :  { %s7419_s5 = sld [smem:[%s8558_s0 + %s7249_s15]]   ;;  %s7253_s15 = smov 27  }
  0x29   :  { %8611 = sst [smem:[#allocation66_spill]] %s7414_s29 }
  0x2a   :  { %s7424_s9 = sld [smem:[%s8558_s0 + %s7250_s22]]   ;;  %s7254_s22 = smov 28  }
  0x2b   :  { %s7429_s13 = sld [smem:[%s8558_s0 + %s7251_s28]]   ;;  %s7255_s28 = smov 29  }
  0x2c   :  { %s7434_s29 = sld [smem:[%s8558_s0 + %s7252_s7]]   ;;  %s7256_s7 = smov 30  }
  0x2d   :  { %s7444_s27 = sld [smem:[%s8558_s0 + %s7254_s22]]   ;;  %s7258_s22 = smov 32  }
  0x2e   :  { %8612 = sst [smem:[#allocation67_spill]] %s7419_s5 }
  0x2f   :  { %s7439_s5 = sld [smem:[%s8558_s0 + %s7253_s15]]   ;;  %s7257_s15 = smov 31  }
  0x30   :  { %8613 = sst [smem:[#allocation68_spill]] %s7424_s9 }
  0x31   :  { %8614 = sst [smem:[#allocation69_spill]] %s7429_s13 }
  0x32   :  { %s7449_s13 = sld [smem:[%s8558_s0 + %s7255_s28]]   ;;  %s7259_s28 = smov 33  }
  0x33   :  { %s7454_s12 = sld [smem:[%s8558_s0 + %s7256_s7]]  }
  0x34   :  { %s7464_s30 = sld [smem:[%s8558_s0 + %s7258_s22]]  }
  0x35   :  { %8615 = sst [smem:[#allocation70_spill]] %s7439_s5 }
  0x36   :  { %s7459_s5 = sld [smem:[%s8558_s0 + %s7257_s15]]  }
  0x38   :  { %8616 = sst [smem:[#allocation71_spill]] %s7449_s13 }
  0x39   :  { %s7469_s13 = sld [smem:[%s8558_s0 + %s7259_s28]]  }
  0x3c   :  { %8617 = sst [smem:[#allocation72_spill]] %s7459_s5 }
  0x3d   :  { %72 = vsyncpa [#allocation3], 0 }
  0x3e   :  { %73 = vsyncpa [#allocation6], 0 }
  0x3f   :  { %74 = vsyncpa [#allocation9], 0 }
  0x40   :  { %75 = vsyncpa [#allocation12], 0 }
  0x41   :  { %76 = vsyncpa [#allocation15], 0 }
  0x42   :  { %77 = vsyncpa [#allocation18], 0 }
  0x43   :  { %78 = vsyncpa [#allocation21], 0 }
  0x44   :  { %79 = vsyncpa [#allocation24], 0 }
  0x45   :  { %80 = vsyncpa [#allocation27], 0 }
  0x46   :  { %81 = vsyncpa [#allocation30], 0 }
  0x47   :  { %82 = vsyncpa [#allocation33], 0 }
  0x48   :  { %83 = vsyncpa [#allocation36], 0 }
  0x49   :  { %84 = vsyncpa [#allocation4], 0 }
  0x4a   :  { %86 = vsyncpa [#allocation4 + $0x1], 0  ;;  %s7471_s7 = smov 0   ;;  %s7473_s10 = smov 0  }
  0x4b   :  { %s7475_s0 = smov 0   ;;  %s7477_s11 = smov 0  }
  0x4c LB: > { %s8618_s9 = sld [smem:[#allocation68_spill]]  ;;  %s8619_s8 = sld [smem:[#allocation56_spill]]  ;;  %s7213_s7 = sphi %s7471_s7, %s8691_s7   ;;  %s7225_s11 = sphi %s7477_s11, %s8688_s11   ;;  %s7221_s0 = sphi %s7475_s0, %s8693_s0   ;;  %s7217_s10 = sphi %s7473_s10, %s8692_s10  }
  0x4d   : > { %s8620_s6 = sld [smem:[#allocation58_spill]]  ;;  %s8621_s4 = sld [smem:[#allocation61_spill]] }
  0x4e   : > { %s8622_s3 = sld [smem:[#allocation55_spill]]  ;;  %8623 = sst [smem:[#allocation73_spill]] %s7213_s7 }
  0x4f   : > { %8624 = sst [smem:[#allocation74_spill]] %s7221_s0  ;;  %s7492_s15 = sadd.s32 4294967295, %s7225_s11  }
  0x50   : > { %8625 = sst [smem:[#allocation75_spill]] %s7225_s11  ;;  %s5233_s16 = sadd.s32 4294967294, %s7225_s11  }
  0x51   : > { %s7496_s18 = sadd.s32 1, %s7225_s11   ;;  %s802_s22 = sadd.s32 1, %s7221_s0 }
  0x52   : > { %8626 = sst [smem:[#allocation76_spill]] %s7496_s18  ;;  %s799_s23 = ssub.s32 %s7225_s11, %s7496_s18 }
  0x53   : > { %p812_p0 = scmp.ne.s32.totalorder %s7221_s0, %s7217_s10  ;;  %p800_p1 = scmp.eq.s32.totalorder %s799_s23, 0 }
  0x54   : > { %p813_p2 = scmp.eq.s32.totalorder %s7492_s15, 1  ;;  %p818_p3 = scmp.ne.s32.totalorder %s7217_s10, %s7213_s7 }
  0x55   : > { %p819_p4 = scmp.eq.s32.totalorder %s5233_s16, 1  ;;  %p5234_p7 = scmp.ge.s32.totalorder %s7225_s11, 1 }
  0x56   : > { %s7507_s26 = scalar_select %p800_p1, %s7221_s0, %s802_s22  }
  0x57   : > { %p7509_p5 = por %p813_p2, %p812_p0  ;;  %p7513_p6 = por %p819_p4, %p818_p3 }
  0x58   : > { %8627 = sst [smem:[#allocation77_spill]] %s7507_s26  ;;  %p826_p8 = scmp.lt.s32.totalorder %s7225_s11, 3 }
  0x59   : > { %s8628_s28 = scalar_select %p7509_p5, 1, 0 }
  0x5a   : > { %s8630_s1 = scalar_select %p7513_p6, 1, 0 }
  0x5b   : > { %8629 = sst [smem:[#allocation78_spill]] %s8628_s28  ;;  %p8575_p9 = scmp.eq.s32.totalorder %s7492_s15, 0 }
  0x5c   : > { %8631 = sst [smem:[#allocation79_spill]] %s8630_s1  ;;  %p7520_p10 = pnand %p5234_p7, %p826_p8 }
  0x5d   : > { %s7260_s16 = smov [#allocation5]   ;;  %s7261_s26 = smov [#allocation8]  }
  0x5e   : > { %s8632_s2 = scalar_select %p7520_p10, 1, 0 }
  0x5f   : > { %s852_s22 = sshll.u32 %s7260_s16, 4  ;;  %p6015_p11 = pneg %p7520_p10  ;;  %s7526_s22 = int_to_ptr.vmem [resolvable:$true] %s852_s22 }
  0x60   : > { %s880_s0 = sshll.u32 %s7261_s26, 4  ;;  %s7262_s18 = smov [#allocation11]   ;;  %s7534_s0 = int_to_ptr.vmem [resolvable:$true] %s880_s0 }
  0x61   : > { %p7530_p12 = pnand %p8575_p9, %p6015_p11  ;;  %s7536_s1 = sshll.u32 %s7262_s18, 4  ;;  %s905_s1 = int_to_ptr.vmem [resolvable:$true] %s7536_s1 }
  0x62   : > { %s6499_s7 = scalar_lea.hbm %s7324_s21, 512 }
  0x63   : > { %p6500_p13 = scmp.ne.s32.totalorder %s7324_s21, %s6499_s7  ;;  %p7542_p0 = pneg %p7530_p12 }
  0x64   : > { %p6506_p3 = scmp.lt.u32.totalorder %s6499_s7, %s7324_s21 }
  0x65   : > { %p6502_p1 = pnand %p7542_p0, %p6500_p13 }
  0x67   : > { %p6503_p2 = pneg %p6502_p1 }
  0x69   : > { %p6508_p4 = pnand %p6506_p3, %p6503_p2 }
  0x6b   : > { %6511 = shalt.err (!%p6508_p4)
}
  0x6c   : > { %s6512_s18 = scalar_lea.vmem %s7526_s22, 512  ;;  %p6520_p9 = scmp.lt.s32.totalorder %s7526_s22, %s7526_s22 }
  0x6d   : > { %p6513_p7 = scmp.ne.s32.totalorder %s7526_s22, %s6512_s18  ;;  %p6521_p6 = scmp.lt.s32.totalorder %s6512_s18, %s6512_s18 }
  0x6f   : > { %p6515_p8 = pnand %p6513_p7, %p7542_p0  ;;  %p6522_p5 = por %p6521_p6, %p6520_p9 }
  0x71   : > { %p6516_p11 = pneg %p6515_p8 }
  0x73   : > { %p6523_p10 = pnand %p6522_p5, %p6516_p11 }
  0x75   : > { %6526 = shalt.err (!%p6523_p10)
}
  0x76   : > { %s8581_s26 = smov 64   ;;  %s8583_s7 = smov 4  }
  0x77   : > { %6021 = dma.hbm_to_vmem [thread:$0]  (!%p7530_p12), %s7324_s21, 512, %s7526_s22, [#allocation6], %s8581_s26, %s8581_s26, %s8583_s7  }
  0x78   : > { %s6527_s11 = scalar_lea.hbm %s8622_s3, 16 }
  0x79   : > { %p6528_p13 = scmp.ne.s32.totalorder %s8622_s3, %s6527_s11  ;;  %p6534_p9 = scmp.lt.u32.totalorder %s6527_s11, %s8622_s3 }
  0x7b   : > { %p6530_p6 = pnand %p6528_p13, %p7542_p0 }
  0x7d   : > { %p6531_p5 = pneg %p6530_p6 }
  0x7f   : > { %p6536_p10 = pnand %p6534_p9, %p6531_p5 }
  0x81   : > { %6539 = shalt.err (!%p6536_p10)
}
  0x82   : > { %s6540_s18 = scalar_lea.vmem %s7534_s0, 16  ;;  %s6547_s28 = scalar_lea.vmem %s7534_s0, 32 }
  0x83   : > { %p6541_p1 = scmp.ne.s32.totalorder %s7534_s0, %s6540_s18  ;;  %p6548_p4 = scmp.lt.s32.totalorder %s7534_s0, %s7534_s0 }
  0x84   : > { %p6549_p7 = scmp.lt.s32.totalorder %s6547_s28, %s6540_s18 }
  0x85   : > { %p6543_p2 = pnand %p6541_p1, %p7542_p0 }
  0x86   : > { %p6550_p8 = por %p6549_p7, %p6548_p4 }
  0x87   : > { %p6544_p3 = pneg %p6543_p2 }
  0x89   : > { %p6551_p11 = pnand %p6550_p8, %p6544_p3 }
  0x8b   : > { %6554 = shalt.err (!%p6551_p11)
}
  0x8c   : > { %6027 = dma.hbm_to_vmem [thread:$0]  (!%p7530_p12), %s8622_s3, 16, %s7534_s0, [#allocation9]  }
  0x8d   : > { %s6555_s11 = scalar_lea.hbm %s7349_s14, 16 }
  0x8e   : > { %p6556_p13 = scmp.ne.s32.totalorder %s7349_s14, %s6555_s11  ;;  %p6562_p9 = scmp.lt.u32.totalorder %s6555_s11, %s7349_s14 }
  0x90   : > { %p6558_p6 = pnand %p6556_p13, %p7542_p0 }
  0x92   : > { %p6559_p5 = pneg %p6558_p6 }
  0x94   : > { %p6564_p10 = pnand %p6562_p9, %p6559_p5 }
  0x96   : > { %6567 = shalt.err (!%p6564_p10)
}
  0x97   : > { %s6568_s28 = scalar_lea.vmem %s905_s1, 16  ;;  %s6575_s22 = scalar_lea.vmem %s905_s1, 32 }
  0x98   : > { %p6569_p1 = scmp.ne.s32.totalorder %s905_s1, %s6568_s28  ;;  %p6576_p4 = scmp.lt.s32.totalorder %s905_s1, %s905_s1 }
  0x99   : > { %p6577_p7 = scmp.lt.s32.totalorder %s6575_s22, %s6568_s28 }
  0x9a   : > { %p6571_p2 = pnand %p6569_p1, %p7542_p0 }
  0x9b   : > { %p6578_p8 = por %p6577_p7, %p6576_p4 }
  0x9c   : > { %p6572_p3 = pneg %p6571_p2 }
  0x9e   : > { %p6579_p11 = pnand %p6578_p8, %p6572_p3 }
  0xa0   : > { %6582 = shalt.err (!%p6579_p11)
}
  0xa1   : > { %6033 = dma.hbm_to_vmem [thread:$0]  (!%p7530_p12), %s7349_s14, 16, %s905_s1, [#allocation12]  }
  0xa2   : > { %s7265_s0 = smov [#allocation14]   ;;  %s7266_s11 = smov [#allocation17]  }
  0xa3   : > { %s928_s18 = sshll.u32 %s7265_s0, 4  ;;  %s952_s26 = sshll.u32 %s7266_s11, 4  ;;  %s929_s18 = int_to_ptr.vmem [resolvable:$true] %s928_s18  ;;  %s953_s26 = int_to_ptr.vmem [resolvable:$true] %s952_s26 }
  0xa4   : > { %s6583_s7 = scalar_lea.hbm %s7359_s24, 16 }
  0xa5   : > { %p6584_p13 = scmp.ne.s32.totalorder %s7359_s24, %s6583_s7  ;;  %p6590_p9 = scmp.lt.u32.totalorder %s6583_s7, %s7359_s24 }
  0xa7   : > { %p6586_p6 = pnand %p6584_p13, %p7542_p0 }
  0xa9   : > { %p6587_p5 = pneg %p6586_p6 }
  0xab   : > { %p6592_p10 = pnand %p6590_p9, %p6587_p5 }
  0xad   : > { %6595 = shalt.err (!%p6592_p10)
}
  0xae   : > { %s6596_s28 = scalar_lea.vmem %s929_s18, 16  ;;  %s6603_s1 = scalar_lea.vmem %s929_s18, 32 }
  0xaf   : > { %p6597_p1 = scmp.ne.s32.totalorder %s929_s18, %s6596_s28  ;;  %p6604_p4 = scmp.lt.s32.totalorder %s929_s18, %s929_s18 }
  0xb0   : > { %p6605_p7 = scmp.lt.s32.totalorder %s6603_s1, %s6596_s28 }
  0xb1   : > { %p6599_p2 = pnand %p6597_p1, %p7542_p0 }
  0xb2   : > { %p6606_p8 = por %p6605_p7, %p6604_p4 }
  0xb3   : > { %p6600_p3 = pneg %p6599_p2 }
  0xb5   : > { %p6607_p11 = pnand %p6606_p8, %p6600_p3 }
  0xb7   : > { %6610 = shalt.err (!%p6607_p11)
}
  0xb8   : > { %6039 = dma.hbm_to_vmem [thread:$0]  (!%p7530_p12), %s7359_s24, 16, %s929_s18, [#allocation15]  }
  0xb9   : > { %s6611_s7 = scalar_lea.hbm %s8620_s6, 16 }
  0xba   : > { %p6612_p13 = scmp.ne.s32.totalorder %s8620_s6, %s6611_s7  ;;  %p6618_p9 = scmp.lt.u32.totalorder %s6611_s7, %s8620_s6 }
  0xbc   : > { %p6614_p6 = pnand %p6612_p13, %p7542_p0 }
  0xbe   : > { %p6615_p5 = pneg %p6614_p6 }
  0xc0   : > { %p6620_p10 = pnand %p6618_p9, %p6615_p5 }
  0xc2   : > { %6623 = shalt.err (!%p6620_p10)
}
  0xc3   : > { %s6624_s22 = scalar_lea.vmem %s953_s26, 16  ;;  %s6631_s0 = scalar_lea.vmem %s953_s26, 32 }
  0xc4   : > { %p6625_p1 = scmp.ne.s32.totalorder %s953_s26, %s6624_s22  ;;  %p6632_p4 = scmp.lt.s32.totalorder %s953_s26, %s953_s26 }
  0xc5   : > { %p6633_p7 = scmp.lt.s32.totalorder %s6631_s0, %s6624_s22 }
  0xc6   : > { %p6627_p2 = pnand %p6625_p1, %p7542_p0 }
  0xc7   : > { %p6634_p8 = por %p6633_p7, %p6632_p4 }
  0xc8   : > { %p6628_p3 = pneg %p6627_p2 }
  0xca   : > { %p6635_p11 = pnand %p6634_p8, %p6628_p3 }
  0xcc   : > { %6638 = shalt.err (!%p6635_p11)
}
  0xcd   : > { %6045 = dma.hbm_to_vmem [thread:$0]  (!%p7530_p12), %s8620_s6, 16, %s953_s26, [#allocation18]  }
  0xce   : > { %s7267_s18 = smov [#allocation20]   ;;  %s7268_s28 = smov [#allocation23]  }
  0xcf   : > { %s976_s11 = sshll.u32 %s7267_s18, 4  ;;  %s1000_s1 = sshll.u32 %s7268_s28, 4  ;;  %s977_s11 = int_to_ptr.vmem [resolvable:$true] %s976_s11  ;;  %s1001_s1 = int_to_ptr.vmem [resolvable:$true] %s1000_s1 }
  0xd0   : > { %s6639_s7 = scalar_lea.hbm %s7379_s20, 16 }
  0xd1   : > { %p6640_p13 = scmp.ne.s32.totalorder %s7379_s20, %s6639_s7  ;;  %p6646_p9 = scmp.lt.u32.totalorder %s6639_s7, %s7379_s20 }
  0xd3   : > { %p6642_p6 = pnand %p6640_p13, %p7542_p0 }
  0xd5   : > { %p6643_p5 = pneg %p6642_p6 }
  0xd7   : > { %p6648_p10 = pnand %p6646_p9, %p6643_p5 }
  0xd9   : > { %6651 = shalt.err (!%p6648_p10)
}
  0xda   : > { %s6652_s22 = scalar_lea.vmem %s977_s11, 16  ;;  %s6659_s26 = scalar_lea.vmem %s977_s11, 32 }
  0xdb   : > { %p6653_p1 = scmp.ne.s32.totalorder %s977_s11, %s6652_s22  ;;  %p6660_p4 = scmp.lt.s32.totalorder %s977_s11, %s977_s11 }
  0xdc   : > { %p6661_p7 = scmp.lt.s32.totalorder %s6659_s26, %s6652_s22 }
  0xdd   : > { %p6655_p2 = pnand %p6653_p1, %p7542_p0 }
  0xde   : > { %p6662_p8 = por %p6661_p7, %p6660_p4 }
  0xdf   : > { %p6656_p3 = pneg %p6655_p2 }
  0xe1   : > { %p6663_p11 = pnand %p6662_p8, %p6656_p3 }
  0xe3   : > { %6666 = shalt.err (!%p6663_p11)
}
  0xe4   : > { %6051 = dma.hbm_to_vmem [thread:$0]  (!%p7530_p12), %s7379_s20, 16, %s977_s11, [#allocation21]  }
  0xe5   : > { %s6667_s0 = scalar_lea.hbm %s8621_s4, 16 }
  0xe6   : > { %p6668_p13 = scmp.ne.s32.totalorder %s8621_s4, %s6667_s0  ;;  %p6674_p9 = scmp.lt.u32.totalorder %s6667_s0, %s8621_s4 }
  0xe8   : > { %p6670_p6 = pnand %p6668_p13, %p7542_p0 }
  0xea   : > { %p6671_p5 = pneg %p6670_p6 }
  0xec   : > { %p6676_p10 = pnand %p6674_p9, %p6671_p5 }
  0xee   : > { %6679 = shalt.err (!%p6676_p10)
}
  0xef   : > { %s6680_s18 = scalar_lea.vmem %s1001_s1, 16  ;;  %s6687_s28 = scalar_lea.vmem %s1001_s1, 32 }
  0xf0   : > { %p6681_p1 = scmp.ne.s32.totalorder %s1001_s1, %s6680_s18  ;;  %p6688_p4 = scmp.lt.s32.totalorder %s1001_s1, %s1001_s1 }
  0xf1   : > { %p6689_p7 = scmp.lt.s32.totalorder %s6687_s28, %s6680_s18 }
  0xf2   : > { %p6683_p2 = pnand %p6681_p1, %p7542_p0 }
  0xf3   : > { %p6690_p8 = por %p6689_p7, %p6688_p4 }
  0xf4   : > { %p6684_p3 = pneg %p6683_p2 }
  0xf6   : > { %p6691_p11 = pnand %p6690_p8, %p6684_p3 }
  0xf8   : > { %6694 = shalt.err (!%p6691_p11)
}
  0xf9   : > { %6057 = dma.hbm_to_vmem [thread:$0]  (!%p7530_p12), %s8621_s4, 16, %s1001_s1, [#allocation24]  }
  0xfa   : > { %s7269_s11 = smov [#allocation26]   ;;  %s7270_s22 = smov [#allocation29]  }
  0xfb   : > { %s1039_s7 = sshll.u32 %s7269_s11, 4  ;;  %s1061_s26 = sshll.u32 %s7270_s22, 4  ;;  %s1040_s7 = int_to_ptr.vmem [resolvable:$true] %s1039_s7  ;;  %s1062_s26 = int_to_ptr.vmem [resolvable:$true] %s1061_s26 }
  0xfc   : > { %s6695_s0 = scalar_lea.hbm %s8618_s9, 16 }
  0xfd   : > { %p6696_p13 = scmp.ne.s32.totalorder %s8618_s9, %s6695_s0  ;;  %p6702_p9 = scmp.lt.u32.totalorder %s6695_s0, %s8618_s9 }
  0xff   : > { %p6698_p6 = pnand %p6696_p13, %p7542_p0 }
 0x101   : > { %p6699_p5 = pneg %p6698_p6 }
 0x103   : > { %p6704_p10 = pnand %p6702_p9, %p6699_p5 }
 0x105   : > { %6707 = shalt.err (!%p6704_p10)
}
 0x106   : > { %s6708_s18 = scalar_lea.vmem %s1040_s7, 16  ;;  %s6715_s1 = scalar_lea.vmem %s1040_s7, 32 }
 0x107   : > { %p6709_p1 = scmp.ne.s32.totalorder %s1040_s7, %s6708_s18  ;;  %p6716_p4 = scmp.lt.s32.totalorder %s1040_s7, %s1040_s7 }
 0x108   : > { %p6717_p7 = scmp.lt.s32.totalorder %s6715_s1, %s6708_s18 }
 0x109   : > { %p6711_p2 = pnand %p6709_p1, %p7542_p0 }
 0x10a   : > { %p6718_p8 = por %p6717_p7, %p6716_p4 }
 0x10b   : > { %p6712_p3 = pneg %p6711_p2 }
 0x10d   : > { %p6719_p11 = pnand %p6718_p8, %p6712_p3 }
 0x10f   : > { %6722 = shalt.err (!%p6719_p11)
}
 0x110   : > { %6063 = dma.hbm_to_vmem [thread:$0]  (!%p7530_p12), %s8618_s9, 16, %s1040_s7, [#allocation27]  }
 0x111   : > { %s6723_s28 = scalar_lea.hbm %s7434_s29, 16 }
 0x112   : > { %p6724_p13 = scmp.ne.s32.totalorder %s7434_s29, %s6723_s28  ;;  %p6730_p9 = scmp.lt.u32.totalorder %s6723_s28, %s7434_s29 }
 0x114   : > { %p6726_p6 = pnand %p6724_p13, %p7542_p0 }
 0x116   : > { %p6727_p5 = pneg %p6726_p6 }
 0x118   : > { %p6732_p10 = pnand %p6730_p9, %p6727_p5 }
 0x11a   : > { %6735 = shalt.err (!%p6732_p10)
}
 0x11b   : > { %s6736_s11 = scalar_lea.vmem %s1062_s26, 16  ;;  %s6743_s22 = scalar_lea.vmem %s1062_s26, 32 }
 0x11c   : > { %p6737_p1 = scmp.ne.s32.totalorder %s1062_s26, %s6736_s11  ;;  %p6744_p4 = scmp.lt.s32.totalorder %s1062_s26, %s1062_s26 }
 0x11d   : > { %p6745_p7 = scmp.lt.s32.totalorder %s6743_s22, %s6736_s11 }
 0x11e   : > { %p6739_p2 = pnand %p6737_p1, %p7542_p0 }
 0x11f   : > { %p6746_p8 = por %p6745_p7, %p6744_p4 }
 0x120   : > { %p6740_p3 = pneg %p6739_p2 }
 0x122   : > { %p6747_p11 = pnand %p6746_p8, %p6740_p3 }
 0x124   : > { %6750 = shalt.err (!%p6747_p11)
}
 0x125   : > { %6069 = dma.hbm_to_vmem [thread:$0]  (!%p7530_p12), %s7434_s29, 16, %s1062_s26, [#allocation30]  }
 0x126   : > { %s7271_s7 = smov [#allocation32]   ;;  %s7272_s18 = smov [#allocation2]  }
 0x127   : > { %s1083_s0 = sshll.u32 %s7271_s7, 4  ;;  %s842_s1 = sshll.u32 %s7272_s18, 4  ;;  %s1084_s0 = int_to_ptr.vmem [resolvable:$true] %s1083_s0  ;;  %s843_s1 = int_to_ptr.vmem [resolvable:$true] %s842_s1 }
 0x128   : > { %s6751_s28 = scalar_lea.hbm %s7444_s27, 16 }
 0x129   : > { %p6752_p13 = scmp.ne.s32.totalorder %s7444_s27, %s6751_s28  ;;  %p6758_p9 = scmp.lt.u32.totalorder %s6751_s28, %s7444_s27 }
 0x12b   : > { %p6754_p6 = pnand %p6752_p13, %p7542_p0 }
 0x12d   : > { %p6755_p5 = pneg %p6754_p6 }
 0x12f   : > { %p6760_p10 = pnand %p6758_p9, %p6755_p5 }
 0x131   : > { %6763 = shalt.err (!%p6760_p10)
}
 0x132   : > { %s6764_s11 = scalar_lea.vmem %s1084_s0, 16  ;;  %s6771_s26 = scalar_lea.vmem %s1084_s0, 32 }
 0x133   : > { %p6765_p1 = scmp.ne.s32.totalorder %s1084_s0, %s6764_s11  ;;  %p6772_p4 = scmp.lt.s32.totalorder %s1084_s0, %s1084_s0 }
 0x134   : > { %p6773_p7 = scmp.lt.s32.totalorder %s6771_s26, %s6764_s11 }
 0x135   : > { %p6767_p2 = pnand %p6765_p1, %p7542_p0 }
 0x136   : > { %p6774_p8 = por %p6773_p7, %p6772_p4 }
 0x137   : > { %p6768_p3 = pneg %p6767_p2 }
 0x139   : > { %p6775_p11 = pnand %p6774_p8, %p6768_p3 }
 0x13b   : > { %6778 = shalt.err (!%p6775_p11)
}
 0x13c   : > { %6075 = dma.hbm_to_vmem [thread:$0]  (!%p7530_p12), %s7444_s27, 16, %s1084_s0, [#allocation33]  }
 0x13d   : > { %s6779_s22 = scalar_lea.hbm %s7319_s17, 16 }
 0x13e   : > { %p6780_p13 = scmp.ne.s32.totalorder %s7319_s17, %s6779_s22  ;;  %p6786_p9 = scmp.lt.u32.totalorder %s6779_s22, %s7319_s17 }
 0x140   : > { %p6782_p6 = pnand %p6780_p13, %p7542_p0 }
 0x142   : > { %p6783_p5 = pneg %p6782_p6 }
 0x144   : > { %p6788_p10 = pnand %p6786_p9, %p6783_p5 }
 0x146   : > { %6791 = shalt.err (!%p6788_p10)
}
 0x147   : > { %s6792_s7 = scalar_lea.vmem %s843_s1, 16  ;;  %s6799_s18 = scalar_lea.vmem %s843_s1, 32 }
 0x148   : > { %p6793_p1 = scmp.ne.s32.totalorder %s843_s1, %s6792_s7  ;;  %p6800_p4 = scmp.lt.s32.totalorder %s843_s1, %s843_s1 }
 0x149   : > { %p6801_p7 = scmp.lt.s32.totalorder %s6799_s18, %s6792_s7 }
 0x14a   : > { %p6795_p2 = pnand %p6793_p1, %p7542_p0 }
 0x14b   : > { %p6802_p8 = por %p6801_p7, %p6800_p4 }
 0x14c   : > { %p6796_p3 = pneg %p6795_p2 }
 0x14e   : > { %p6803_p11 = pnand %p6802_p8, %p6796_p3 }
 0x150   : > { %6806 = shalt.err (!%p6803_p11)
}
 0x151   : > { %6018 = dma.hbm_to_vmem [thread:$0]  (!%p7530_p12), %s7319_s17, 16, %s843_s1, [#allocation3]  }
 0x152   : > { %s7273_s0 = smov [#allocation7]   ;;  %s7274_s11 = smov [#allocation10]  }
 0x153   : > { %s866_s28 = sshll.u32 %s7273_s0, 4  ;;  %s890_s26 = sshll.u32 %s7274_s11, 4  ;;  %s867_s28 = int_to_ptr.vmem [resolvable:$true] %s866_s28  ;;  %s891_s26 = int_to_ptr.vmem [resolvable:$true] %s890_s26 }
 0x154   : > { %s6807_s22 = scalar_lea.hbm %s7329_s25, 16 }
 0x155   : > { %p6808_p13 = scmp.ne.s32.totalorder %s7329_s25, %s6807_s22  ;;  %p6814_p9 = scmp.lt.u32.totalorder %s6807_s22, %s7329_s25 }
 0x157   : > { %p6810_p6 = pnand %p6808_p13, %p7542_p0 }
 0x159   : > { %p6811_p5 = pneg %p6810_p6 }
 0x15b   : > { %p6816_p10 = pnand %p6814_p9, %p6811_p5 }
 0x15d   : > { %6819 = shalt.err (!%p6816_p10)
}
 0x15e   : > { %s6820_s7 = scalar_lea.vmem %s867_s28, 16  ;;  %s6827_s1 = scalar_lea.vmem %s867_s28, 32 }
 0x15f   : > { %p6821_p1 = scmp.ne.s32.totalorder %s867_s28, %s6820_s7  ;;  %p6828_p4 = scmp.lt.s32.totalorder %s867_s28, %s867_s28 }
 0x160   : > { %p6829_p7 = scmp.lt.s32.totalorder %s6827_s1, %s6820_s7 }
 0x161   : > { %p6823_p2 = pnand %p6821_p1, %p7542_p0 }
 0x162   : > { %p6830_p8 = por %p6829_p7, %p6828_p4 }
 0x163   : > { %p6824_p3 = pneg %p6823_p2 }
 0x165   : > { %p6831_p11 = pnand %p6830_p8, %p6824_p3 }
 0x167   : > { %6834 = shalt.err (!%p6831_p11)
}
 0x168   : > { %6024 = dma.hbm_to_vmem [thread:$0]  (!%p7530_p12), %s7329_s25, 16, %s867_s28, [#allocation6]  }
 0x169   : > { %s6835_s18 = scalar_lea.hbm %s8619_s8, 512 }
 0x16a   : > { %p6836_p13 = scmp.ne.s32.totalorder %s8619_s8, %s6835_s18  ;;  %p6842_p9 = scmp.lt.u32.totalorder %s6835_s18, %s8619_s8 }
 0x16c   : > { %p6838_p6 = pnand %p6836_p13, %p7542_p0 }
 0x16e   : > { %p6839_p5 = pneg %p6838_p6 }
 0x170   : > { %p6844_p10 = pnand %p6842_p9, %p6839_p5 }
 0x172   : > { %6847 = shalt.err (!%p6844_p10)
}
 0x173   : > { %s6848_s0 = scalar_lea.vmem %s891_s26, 512  ;;  %p6856_p4 = scmp.lt.s32.totalorder %s891_s26, %s891_s26 }
 0x174   : > { %p6849_p1 = scmp.ne.s32.totalorder %s891_s26, %s6848_s0  ;;  %p6857_p7 = scmp.lt.s32.totalorder %s6848_s0, %s6848_s0 }
 0x176   : > { %p6851_p2 = pnand %p6849_p1, %p7542_p0  ;;  %p6858_p8 = por %p6857_p7, %p6856_p4 }
 0x178   : > { %p6852_p3 = pneg %p6851_p2 }
 0x17a   : > { %p6859_p11 = pnand %p6858_p8, %p6852_p3 }
 0x17c   : > { %6862 = shalt.err (!%p6859_p11)
}
 0x17d   : > { %s8635_s28 = smov 4   ;;  %s8636_s11 = smov 64  }
 0x17e   : > { %6030 = dma.hbm_to_vmem [thread:$0]  (!%p7530_p12), %s8619_s8, 512, %s891_s26, [#allocation9], %s8636_s11, %s8636_s11, %s8635_s28  }
 0x17f   : > { %s7275_s22 = smov [#allocation13]   ;;  %s7276_s1 = smov [#allocation16]  }
 0x180   : > { %s914_s7 = sshll.u32 %s7275_s22, 4  ;;  %s938_s18 = sshll.u32 %s7276_s1, 4  ;;  %s915_s7 = int_to_ptr.vmem [resolvable:$true] %s914_s7  ;;  %s939_s18 = int_to_ptr.vmem [resolvable:$true] %s938_s18 }
 0x181   : > { %s6863_s0 = scalar_lea.hbm %s7354_s19, 512 }
 0x182   : > { %p6864_p13 = scmp.ne.s32.totalorder %s7354_s19, %s6863_s0  ;;  %p6870_p9 = scmp.lt.u32.totalorder %s6863_s0, %s7354_s19 }
 0x184   : > { %p6866_p6 = pnand %p6864_p13, %p7542_p0 }
 0x186   : > { %p6867_p5 = pneg %p6866_p6 }
 0x188   : > { %p6872_p10 = pnand %p6870_p9, %p6867_p5 }
 0x18a   : > { %6875 = shalt.err (!%p6872_p10)
}
 0x18b   : > { %s6876_s3 = scalar_lea.vmem %s915_s7, 512  ;;  %p6884_p4 = scmp.lt.s32.totalorder %s915_s7, %s915_s7 }
 0x18c   : > { %p6877_p1 = scmp.ne.s32.totalorder %s915_s7, %s6876_s3  ;;  %p6885_p7 = scmp.lt.s32.totalorder %s6876_s3, %s6876_s3 }
 0x18e   : > { %p6879_p2 = pnand %p6877_p1, %p7542_p0  ;;  %p6886_p8 = por %p6885_p7, %p6884_p4 }
 0x190   : > { %p6880_p3 = pneg %p6879_p2 }
 0x192   : > { %p6887_p11 = pnand %p6886_p8, %p6880_p3 }
 0x194   : > { %6890 = shalt.err (!%p6887_p11)
}
 0x195   : > { %s8637_s26 = sld [smem:[#allocation57_spill]] }
 0x196   : > { %6036 = dma.hbm_to_vmem [thread:$0]  (!%p7530_p12), %s7354_s19, 512, %s915_s7, [#allocation12], %s8636_s11, %s8636_s11, %s8635_s28  }
 0x19b   : > { %s6891_s22 = scalar_lea.hbm %s8637_s26, 512 }
 0x19c   : > { %p6892_p13 = scmp.ne.s32.totalorder %s8637_s26, %s6891_s22  ;;  %p6898_p9 = scmp.lt.u32.totalorder %s6891_s22, %s8637_s26 }
 0x19e   : > { %p6894_p6 = pnand %p6892_p13, %p7542_p0 }
 0x1a0   : > { %p6895_p5 = pneg %p6894_p6 }
 0x1a2   : > { %p6900_p10 = pnand %p6898_p9, %p6895_p5 }
 0x1a4   : > { %6903 = shalt.err (!%p6900_p10)
}
 0x1a5   : > { %s6904_s3 = scalar_lea.vmem %s939_s18, 512  ;;  %p6912_p4 = scmp.lt.s32.totalorder %s939_s18, %s939_s18 }
 0x1a6   : > { %p6905_p1 = scmp.ne.s32.totalorder %s939_s18, %s6904_s3  ;;  %p6913_p7 = scmp.lt.s32.totalorder %s6904_s3, %s6904_s3 }
 0x1a8   : > { %p6907_p2 = pnand %p6905_p1, %p7542_p0  ;;  %p6914_p8 = por %p6913_p7, %p6912_p4 }
 0x1aa   : > { %p6908_p3 = pneg %p6907_p2 }
 0x1ac   : > { %p6915_p11 = pnand %p6914_p8, %p6908_p3 }
 0x1ae   : > { %6918 = shalt.err (!%p6915_p11)
}
 0x1af   : > { %s8638_s7 = sld [smem:[#allocation59_spill]]  ;;  %s7277_s0 = smov [#allocation19]  }
 0x1b0   : > { %6042 = dma.hbm_to_vmem [thread:$0]  (!%p7530_p12), %s8637_s26, 512, %s939_s18, [#allocation15], %s8636_s11, %s8636_s11, %s8635_s28  }
 0x1b1   : > { %s962_s22 = sshll.u32 %s7277_s0, 4  ;;  %s7278_s4 = smov [#allocation22]   ;;  %s963_s22 = int_to_ptr.vmem [resolvable:$true] %s962_s22 }
 0x1b2   : > { %s986_s6 = sshll.u32 %s7278_s4, 4  ;;  %s987_s6 = int_to_ptr.vmem [resolvable:$true] %s986_s6 }
 0x1b5   : > { %s8639_s1 = smov %s8638_s7  ;;  %s6919_s3 = scalar_lea.hbm %s8638_s7, 512 }
 0x1b6   : > { %p6920_p13 = scmp.ne.s32.totalorder %s8639_s1, %s6919_s3  ;;  %p6926_p9 = scmp.lt.u32.totalorder %s6919_s3, %s8639_s1 }
 0x1b8   : > { %p6922_p6 = pnand %p6920_p13, %p7542_p0 }
 0x1ba   : > { %p6923_p5 = pneg %p6922_p6 }
 0x1bc   : > { %p6928_p10 = pnand %p6926_p9, %p6923_p5 }
 0x1be   : > { %6931 = shalt.err (!%p6928_p10)
}
 0x1bf   : > { %s6932_s8 = scalar_lea.vmem %s963_s22, 512  ;;  %p6940_p4 = scmp.lt.s32.totalorder %s963_s22, %s963_s22 }
 0x1c0   : > { %p6933_p1 = scmp.ne.s32.totalorder %s963_s22, %s6932_s8  ;;  %p6941_p7 = scmp.lt.s32.totalorder %s6932_s8, %s6932_s8 }
 0x1c2   : > { %p6935_p2 = pnand %p6933_p1, %p7542_p0  ;;  %p6942_p8 = por %p6941_p7, %p6940_p4 }
 0x1c4   : > { %p6936_p3 = pneg %p6935_p2 }
 0x1c6   : > { %p6943_p11 = pnand %p6942_p8, %p6936_p3 }
 0x1c8   : > { %6946 = shalt.err (!%p6943_p11)
}
 0x1c9   : > { %s8640_s4 = sld [smem:[#allocation60_spill]] }
 0x1ca   : > { %6048 = dma.hbm_to_vmem [thread:$0]  (!%p7530_p12), %s8639_s1, 512, %s963_s22, [#allocation18], %s8636_s11, %s8636_s11, %s8635_s28  }
 0x1cf   : > { %s6947_s18 = scalar_lea.hbm %s8640_s4, 512 }
 0x1d0   : > { %p6948_p13 = scmp.ne.s32.totalorder %s8640_s4, %s6947_s18  ;;  %p6954_p9 = scmp.lt.u32.totalorder %s6947_s18, %s8640_s4 }
 0x1d2   : > { %p6950_p6 = pnand %p6948_p13, %p7542_p0 }
 0x1d4   : > { %p6951_p5 = pneg %p6950_p6 }
 0x1d6   : > { %p6956_p10 = pnand %p6954_p9, %p6951_p5 }
 0x1d8   : > { %6959 = shalt.err (!%p6956_p10)
}
 0x1d9   : > { %s6960_s8 = scalar_lea.vmem %s987_s6, 512  ;;  %p6968_p4 = scmp.lt.s32.totalorder %s987_s6, %s987_s6 }
 0x1da   : > { %p6961_p1 = scmp.ne.s32.totalorder %s987_s6, %s6960_s8  ;;  %p6969_p7 = scmp.lt.s32.totalorder %s6960_s8, %s6960_s8 }
 0x1dc   : > { %p6963_p2 = pnand %p6961_p1, %p7542_p0  ;;  %p6970_p8 = por %p6969_p7, %p6968_p4 }
 0x1de   : > { %p6964_p3 = pneg %p6963_p2 }
 0x1e0   : > { %p6971_p11 = pnand %p6970_p8, %p6964_p3 }
 0x1e2   : > { %6974 = shalt.err (!%p6971_p11)
}
 0x1e3   : > { %s8641_s7 = sld [smem:[#allocation63_spill]]  ;;  %s7279_s0 = smov [#allocation25]  }
 0x1e4   : > { %6054 = dma.hbm_to_vmem [thread:$0]  (!%p7530_p12), %s8640_s4, 512, %s987_s6, [#allocation21], %s8636_s11, %s8636_s11, %s8635_s28  }
 0x1e5   : > { %s1013_s3 = sshll.u32 %s7279_s0, 4  ;;  %s7280_s18 = smov [#allocation28]   ;;  %s1014_s3 = int_to_ptr.vmem [resolvable:$true] %s1013_s3 }
 0x1e6   : > { %s1050_s1 = sshll.u32 %s7280_s18, 4  ;;  %s1051_s1 = int_to_ptr.vmem [resolvable:$true] %s1050_s1 }
 0x1e9   : > { %s8642_s22 = smov %s8641_s7  ;;  %s6975_s8 = scalar_lea.hbm %s8641_s7, 512 }
 0x1ea   : > { %p6976_p13 = scmp.ne.s32.totalorder %s8642_s22, %s6975_s8  ;;  %p6982_p9 = scmp.lt.u32.totalorder %s6975_s8, %s8642_s22 }
 0x1ec   : > { %p6978_p6 = pnand %p6976_p13, %p7542_p0 }
 0x1ee   : > { %p6979_p5 = pneg %p6978_p6 }
 0x1f0   : > { %p6984_p10 = pnand %p6982_p9, %p6979_p5 }
 0x1f2   : > { %6987 = shalt.err (!%p6984_p10)
}
 0x1f3   : > { %s6988_s9 = scalar_lea.vmem %s1014_s3, 512  ;;  %p6996_p4 = scmp.lt.s32.totalorder %s1014_s3, %s1014_s3 }
 0x1f4   : > { %p6989_p1 = scmp.ne.s32.totalorder %s1014_s3, %s6988_s9  ;;  %p6997_p7 = scmp.lt.s32.totalorder %s6988_s9, %s6988_s9 }
 0x1f6   : > { %p6991_p2 = pnand %p6989_p1, %p7542_p0  ;;  %p6998_p8 = por %p6997_p7, %p6996_p4 }
 0x1f8   : > { %p6992_p3 = pneg %p6991_p2 }
 0x1fa   : > { %p6999_p11 = pnand %p6998_p8, %p6992_p3 }
 0x1fc   : > { %7002 = shalt.err (!%p6999_p11)
}
 0x1fd   : > { %s8643_s6 = sld [smem:[#allocation69_spill]] }
 0x1fe   : > { %6060 = dma.hbm_to_vmem [thread:$0]  (!%p7530_p12), %s8642_s22, 512, %s1014_s3, [#allocation24], %s8636_s11, %s8636_s11, %s8635_s28  }
 0x203   : > { %s7003_s7 = scalar_lea.hbm %s8643_s6, 16 }
 0x204   : > { %p7004_p13 = scmp.ne.s32.totalorder %s8643_s6, %s7003_s7  ;;  %p7010_p9 = scmp.lt.u32.totalorder %s7003_s7, %s8643_s6 }
 0x206   : > { %p7006_p6 = pnand %p7004_p13, %p7542_p0 }
 0x208   : > { %p7007_p5 = pneg %p7006_p6 }
 0x20a   : > { %p7012_p10 = pnand %p7010_p9, %p7007_p5 }
 0x20c   : > { %7015 = shalt.err (!%p7012_p10)
}
 0x20d   : > { %s7016_s9 = scalar_lea.vmem %s1051_s1, 16  ;;  %s7023_s0 = scalar_lea.vmem %s1051_s1, 32 }
 0x20e   : > { %p7017_p1 = scmp.ne.s32.totalorder %s1051_s1, %s7016_s9  ;;  %p7024_p4 = scmp.lt.s32.totalorder %s1051_s1, %s1051_s1 }
 0x20f   : > { %p7025_p7 = scmp.lt.s32.totalorder %s7023_s0, %s7016_s9 }
 0x210   : > { %p7019_p2 = pnand %p7017_p1, %p7542_p0 }
 0x211   : > { %p7026_p8 = por %p7025_p7, %p7024_p4 }
 0x212   : > { %p7020_p3 = pneg %p7019_p2 }
 0x214   : > { %p7027_p11 = pnand %p7026_p8, %p7020_p3 }
 0x216   : > { %7030 = shalt.err (!%p7027_p11)
}
 0x217   : > { %s8644_s28 = sld [smem:[#allocation70_spill]]  ;;  %s7281_s11 = smov [#allocation31]  }
 0x218   : > { %6066 = dma.hbm_to_vmem [thread:$0]  (!%p7530_p12), %s8643_s6, 16, %s1051_s1, [#allocation27]  }
 0x219   : > { %s1072_s3 = sshll.u32 %s7281_s11, 4  ;;  %s7282_s18 = smov [#allocation34]   ;;  %s1073_s3 = int_to_ptr.vmem [resolvable:$true] %s1072_s3 }
 0x21a   : > { %s1097_s8 = sshll.u32 %s7282_s18, 4  ;;  %s1098_s8 = int_to_ptr.vmem [resolvable:$true] %s1097_s8 }
 0x21d   : > { %s7031_s7 = scalar_lea.hbm %s8644_s28, 16 }
 0x21e   : > { %p7032_p13 = scmp.ne.s32.totalorder %s8644_s28, %s7031_s7  ;;  %p7038_p9 = scmp.lt.u32.totalorder %s7031_s7, %s8644_s28 }
 0x220   : > { %p7034_p6 = pnand %p7032_p13, %p7542_p0 }
 0x222   : > { %p7035_p5 = pneg %p7034_p6 }
 0x224   : > { %p7040_p10 = pnand %p7038_p9, %p7035_p5 }
 0x226   : > { %7043 = shalt.err (!%p7040_p10)
}
 0x227   : > { %s7044_s9 = scalar_lea.vmem %s1073_s3, 16  ;;  %s7051_s1 = scalar_lea.vmem %s1073_s3, 32 }
 0x228   : > { %p7045_p1 = scmp.ne.s32.totalorder %s1073_s3, %s7044_s9  ;;  %p7052_p4 = scmp.lt.s32.totalorder %s1073_s3, %s1073_s3 }
 0x229   : > { %p7053_p7 = scmp.lt.s32.totalorder %s7051_s1, %s7044_s9 }
 0x22a   : > { %p7047_p2 = pnand %p7045_p1, %p7542_p0 }
 0x22b   : > { %p7054_p8 = por %p7053_p7, %p7052_p4 }
 0x22c   : > { %p7048_p3 = pneg %p7047_p2 }
 0x22e   : > { %p7055_p11 = pnand %p7054_p8, %p7048_p3 }
 0x230   : > { %7058 = shalt.err (!%p7055_p11)
}
 0x231   : > { %6072 = dma.hbm_to_vmem [thread:$0]  (!%p7530_p12), %s8644_s28, 16, %s1073_s3, [#allocation30]  }
 0x232   : > { %s7059_s0 = scalar_lea.hbm %s7454_s12, 16 }
 0x233   : > { %p7060_p13 = scmp.ne.s32.totalorder %s7454_s12, %s7059_s0  ;;  %p7066_p9 = scmp.lt.u32.totalorder %s7059_s0, %s7454_s12 }
 0x235   : > { %p7062_p6 = pnand %p7060_p13, %p7542_p0 }
 0x237   : > { %p7063_p5 = pneg %p7062_p6 }
 0x239   : > { %p7068_p10 = pnand %p7066_p9, %p7063_p5 }
 0x23b   : > { %7071 = shalt.err (!%p7068_p10)
}
 0x23c   : > { %s7072_s11 = scalar_lea.vmem %s1098_s8, 16  ;;  %s7079_s18 = scalar_lea.vmem %s1098_s8, 32 }
 0x23d   : > { %p7073_p1 = scmp.ne.s32.totalorder %s1098_s8, %s7072_s11  ;;  %p7080_p4 = scmp.lt.s32.totalorder %s1098_s8, %s1098_s8 }
 0x23e   : > { %p7081_p7 = scmp.lt.s32.totalorder %s7079_s18, %s7072_s11 }
 0x23f   : > { %p7075_p2 = pnand %p7073_p1, %p7542_p0 }
 0x240   : > { %p7082_p8 = por %p7081_p7, %p7080_p4 }
 0x241   : > { %p7076_p3 = pneg %p7075_p2 }
 0x243   : > { %p7083_p11 = pnand %p7082_p8, %p7076_p3 }
 0x245   : > { %7086 = shalt.err (!%p7083_p11)
}
 0x246   : > { %6078 = dma.hbm_to_vmem [thread:$0]  (!%p7530_p12), %s7454_s12, 16, %s1098_s8, [#allocation33]  }
 0x247   : > { %s7283_s3 = smov [#allocation35]   ;;  %s7087_s9 = scalar_lea.hbm %s7464_s30, 16 }
 0x248   : > { %s1111_s7 = sshll.u32 %s7283_s3, 4  ;;  %p7088_p13 = scmp.ne.s32.totalorder %s7464_s30, %s7087_s9  ;;  %s1112_s7 = int_to_ptr.vmem [resolvable:$true] %s1111_s7 }
 0x249   : > { %p7094_p9 = scmp.lt.u32.totalorder %s7087_s9, %s7464_s30 }
 0x24a   : > { %p7090_p6 = pnand %p7088_p13, %p7542_p0 }
 0x24c   : > { %p7091_p5 = pneg %p7090_p6 }
 0x24e   : > { %p7096_p10 = pnand %p7094_p9, %p7091_p5 }
 0x250   : > { %7099 = shalt.err (!%p7096_p10)
}
 0x251   : > { %s7100_s1 = scalar_lea.vmem %s1112_s7, 16  ;;  %s7107_s0 = scalar_lea.vmem %s1112_s7, 32 }
 0x252   : > { %p7101_p1 = scmp.ne.s32.totalorder %s1112_s7, %s7100_s1  ;;  %p7108_p4 = scmp.lt.s32.totalorder %s1112_s7, %s1112_s7 }
 0x253   : > { %p7109_p7 = scmp.lt.s32.totalorder %s7107_s0, %s7100_s1 }
 0x254   : > { %p7103_p2 = pnand %p7101_p1, %p7542_p0 }
 0x255   : > { %p7110_p8 = por %p7109_p7, %p7108_p4 }
 0x256   : > { %p7104_p3 = pneg %p7103_p2 }
 0x258   : > { %p7111_p11 = pnand %p7110_p8, %p7104_p3 }
 0x25a   : > { %7114 = shalt.err (!%p7111_p11)
}
 0x25b   : > { %6081 = dma.hbm_to_vmem [thread:$0]  (!%p7530_p12), %s7464_s30, 16, %s1112_s7, [#allocation36]  }
 0x25c   : > { %p8645_p13 = scmp.ne.s32.totalorder %s8632_s2, 0 }
 0x25d   : > { %p8646_p6 = scmp.eq.s32.totalorder (!%p8645_p13), %s7492_s15, 0 }
 0x25e   : > { %1144 = sbr.rel (%p8645_p13) target bundleno = 7662 (0x1dee), region = 152 }
 0x265   : > { %7160 = dma.done.wait (%p8646_p6), [#allocation3], 16   ;;  %p8647_p5 = pmov %p8646_p6 }
 0x267   : > { %7162 = vsyncadd (%p8647_p5), [#allocation3], 4294967280  ;;  %p8648_p0 = pmov %p8647_p5 }
 0x269   : > { %7164 = dma.done.wait (%p8648_p0), [#allocation6], 528   ;;  %p8649_p9 = pmov %p8648_p0 }
 0x26a   : > { %p8650_p10 = pmov %p8648_p0 }
 0x26b   : > { %7166 = vsyncadd (%p8649_p9), [#allocation6], 4294966768 }
 0x26c   : > { %7168 = dma.done.wait (%p8650_p10), [#allocation9], 528   ;;  %p8651_p12 = pmov %p8648_p0 }
 0x26d   : > { %p8652_p1 = pmov %p8648_p0 }
 0x26e   : > { %7170 = vsyncadd (%p8651_p12), [#allocation9], 4294966768 }
 0x26f   : > { %7172 = dma.done.wait (%p8652_p1), [#allocation12], 528   ;;  %p8653_p2 = pmov %p8648_p0 }
 0x270   : > { %p8654_p3 = pmov %p8648_p0 }
 0x271   : > { %7174 = vsyncadd (%p8653_p2), [#allocation12], 4294966768 }
 0x272   : > { %7176 = dma.done.wait (%p8654_p3), [#allocation15], 528   ;;  %p8655_p4 = pmov %p8648_p0 }
 0x273   : > { %p8656_p7 = pmov %p8648_p0 }
 0x274   : > { %7178 = vsyncadd (%p8655_p4), [#allocation15], 4294966768 }
 0x275   : > { %7180 = dma.done.wait (%p8656_p7), [#allocation18], 528   ;;  %p8657_p8 = pmov %p8648_p0 }
 0x276   : > { %p8658_p11 = pmov %p8648_p0 }
 0x277   : > { %7182 = vsyncadd (%p8657_p8), [#allocation18], 4294966768 }
 0x278   : > { %7184 = dma.done.wait (%p8658_p11), [#allocation21], 528   ;;  %p8659_p13 = pmov %p8648_p0 }
 0x279   : > { %p8660_p6 = pmov %p8648_p0 }
 0x27a   : > { %7186 = vsyncadd (%p8659_p13), [#allocation21], 4294966768 }
 0x27b   : > { %7188 = dma.done.wait (%p8660_p6), [#allocation24], 528   ;;  %p8661_p5 = pmov %p8648_p0 }
 0x27d   : > { %7190 = vsyncadd (%p8661_p5), [#allocation24], 4294966768 }
 0x27e   : > { %7192 = dma.done.wait (%p8648_p0), [#allocation27], 32   ;;  %p8662_p9 = pmov %p8648_p0 }
 0x27f   : > { %p8663_p10 = pmov %p8648_p0 }
 0x280   : > { %7194 = vsyncadd (%p8662_p9), [#allocation27], 4294967264 }
 0x281   : > { %7196 = dma.done.wait (%p8663_p10), [#allocation30], 32   ;;  %p8664_p12 = pmov %p8648_p0 }
 0x282   : > { %p8665_p1 = pmov %p8648_p0 }
 0x283   : > { %7198 = vsyncadd (%p8664_p12), [#allocation30], 4294967264 }
 0x284   : > { %7200 = dma.done.wait (%p8665_p1), [#allocation33], 32   ;;  %p8666_p2 = pmov %p8648_p0 }
 0x285   : > { %p8667_p3 = pmov %p8648_p0 }
 0x286   : > { %7202 = vsyncadd (%p8666_p2), [#allocation33], 4294967264 }
 0x287   : > { %7204 = dma.done.wait (%p8667_p3), [#allocation36], 16   ;;  %p8668_p4 = pmov %p8648_p0 }
 0x288   : > { %s8669_s2 = sld [smem:[#allocation53_spill]]  ;;  %s8670_s23 = sld [smem:[#allocation52_spill]]  ;;  %v6291_v0 = vld [vmem:[#allocation5] sm:$0xff]   ;;  %v6292_v1 = vld [vmem:[#allocation5 + $0x8] sm:$0xff]   ;;  %v6294_v3 = vld [vmem:[#allocation5 + $0x10] sm:$0xff]   ;;  %vm1384_vm0 = vcmask 523264  }
 0x289   : > { %7206 = vsyncadd (%p8668_p4), [#allocation36], 4294967280  ;;  %s5282_s16 = sshll.u32 %s7492_s15, 1  ;;  %s8671_s8 = sld [smem:[#allocation51_spill]]  ;;  %5581 = vmatprep.subr.bf16.mxu1 %v6291_v0  ;;  %v6296_v8 = vld [vmem:[#allocation5 + $0x18] sm:$0xff]   ;;  %v7284_v24 = vmov 0.0  }
 0x28a   : > { %p1320_p7 = scmp.lt.s32.totalorder %s5282_s16, 3  ;;  %5582 = vmatpush3.bf16.msra.mxu1 %v6291_v0  ;;  %s8672_s7 = sld [smem:[#allocation54_spill]]  ;;  %vm7285_vm1 = vmmov 0   ;;  %v5295_v26 = vld [vmem:[#allocation7] ss:$0 sm:$0xff]  ;;  %vm1630_vm2 = vcmask 130048  }
 0x28b   : > { %5583 = vmatprep.subr.bf16.mxu1 %v6292_v1  ;;  %v5288_v27 = vld [vmem:[#allocation2] ss:$0 sm:$0xff]  ;;  %v5302_v49 = vld [vmem:[#allocation8] ss:$0 sm:$0xff]  ;;  %s7286_s1 = smov 112   ;;  %s7287_s0 = smov 96  }
 0x28c   : > { %s8695_s16 = smov (!%p1320_p7, %s5282_s16), 3  ;;  %vm2643_vm3 = vcmask 261120   ;;  %vm2648_vm4 = vcmask 392192   ;;  %s8680_s5 = sld [smem:[#allocation72_spill]] }
 0x28d   : > { %s5421_s11 = sshll.u32 %s8695_s16, 4  ;;  %s7289_s16 = smov 16  }
 0x28e   : > { %v6293_v2 = vld [vmem:[%s8669_s2] sm:$0xff]   ;;  %v6295_v4 = vld [vmem:[%s8669_s2 + $0x8] sm:$0xff]   ;;  %s7851_s18 = scalar_lea.vmem %s8670_s23, %s5421_s11  ;;  %v6297_v5 = vld [vmem:[%s8669_s2 + $0x10] sm:$0xff]   ;;  %5584 = vmatpush3.bf16.msra.mxu1 %v6292_v1  ;;  %s7288_s23 = smov 80  }
 0x28f   : > { %5569 = vmatprep.subr.bf16.mxu0 %v6293_v2  ;;  %s7855_s3 = scalar_lea.vmem %s8671_s8, %s5421_s11  ;;  %v1339_v6 = vld [vmem:[%s7851_s18] sm:$0xff]  ;;  %v1340_v7 = vld [vmem:[%s7851_s18 + $0x8] sm:$0xff]  ;;  %5585 = vmatprep.subr.bf16.mxu1 %v6294_v3  ;;  %v1341_v12 = vld [vmem:[%s7851_s18 + $0x10] sm:$0xff]  ;;  %s7290_s8 = smov 32  }
 0x290   : > { %5570 = vmatpush3.bf16.msra.mxu0 %v6293_v2  ;;  %v7859_v9 = vpack.c.bf16 %v1340_v7, %v1339_v6  ;;  %v1335_v10 = vld [vmem:[%s7855_s3] sm:$0xff]  ;;  %s8673_s9 = smov %s8672_s7  ;;  %v1336_v11 = vld [vmem:[%s7855_s3 + $0x8] sm:$0xff]  ;;  %v6298_v13 = vld [vmem:[%s8669_s2 + $0x18] sm:$0xff]   ;;  %s7291_s11 = smov 48  }
 0x291   : > { %5571 = vmatprep.subr.bf16.mxu0 %v6295_v4  ;;  %v7867_v14 = vpack.c.bf16 %v1336_v11, %v1335_v10  ;;  %v1342_v15 = vld [vmem:[%s7851_s18 + $0x18] sm:$0xff]  ;;  %v1337_v16 = vld [vmem:[%s7855_s3 + $0x10] sm:$0xff]  ;;  %v6299_v19 = vld [vmem:[%s8672_s7] sm:$0xff]   ;;  %s8676_s7 = sld [smem:[#allocation66_spill]] }
 0x292   : > { %5589 = vmatprep.mubr.msk.bf16.mxu1 %vm1384_vm0, %v7859_v9  ;;  %5586 = vmatpush3.bf16.msra.mxu1 %v6294_v3  ;;  %v1338_v17 = vld [vmem:[%s7855_s3 + $0x18] sm:$0xff]  ;;  %v7874_v18 = vpack.c.bf16 %v1342_v15, %v1341_v12  ;;  %v6300_v21 = vld [vmem:[%s8673_s9 + $0x8] sm:$0xff]   ;;  %v6301_v22 = vld [vmem:[%s8673_s9 + $0x10] sm:$0xff]  }
 0x293   : > { %5587 = vmatprep.subr.bf16.mxu1 %v6296_v8  ;;  %5577 = vmatprep.mubr.msk.bf16.mxu0 %vm1384_vm0, %v7867_v14  ;;  %v7877_v20 = vpack.c.bf16 %v1338_v17, %v1337_v16  ;;  %v6302_v23 = vld [vmem:[%s8673_s9 + $0x18] sm:$0xff]  }
 0x294   : > { %5572 = vmatpush3.bf16.msra.mxu0 %v6295_v4 }
 0x295   : > { %5573 = vmatprep.subr.bf16.mxu0 %v6297_v5 }
 0x296   : > { %5588 = vmatpush3.bf16.msra.mxu1 %v6296_v8 }
 0x297   : > { %5611 = vmatprep.subr.bf16.mxu1 %v7284_v24 }
 0x298   : > { %5574 = vmatpush3.bf16.msra.mxu0 %v6297_v5 }
 0x299   : > { %5575 = vmatprep.subr.bf16.mxu0 %v6298_v13  ;;  %5590 = vmatmul.mubr.msk.bf16.vlgmr.msra.gmra.mrb[0].mxu1 %vm1384_vm0, %v7874_v18 }
 0x29a   : > { %5613 = vmatprep.mubr.msk.bf16.mxu1 %vm7285_vm1, %v7284_v24 }
 0x29c   : > { %5576 = vmatpush3.bf16.msra.mxu0 %v6298_v13 }
 0x29d   : > { %5593 = vmatprep.subr.bf16.mxu0 %v6299_v19 }
 0x29f   : > { %5578 = vmatmul.mubr.msk.bf16.vlgmr.msra.gmra.mrb[0].mxu0 %vm1384_vm0, %v7877_v20 }
 0x2a0   : > { %5594 = vmatpush3.bf16.msra.mxu0 %v6299_v19  ;;  %5601 = vmatprep.mubr.msk.bf16.mxu0 %vm1384_vm0, %v7859_v9 }
 0x2a1   : > { %5595 = vmatprep.subr.bf16.mxu0 %v6300_v21 }
 0x2a4   : > { %5596 = vmatpush3.bf16.msra.mxu0 %v6300_v21 }
 0x2a5   : > { %5597 = vmatprep.subr.bf16.mxu0 %v6301_v22 }
 0x2a8   : > { %5598 = vmatpush3.bf16.msra.mxu0 %v6301_v22 }
 0x2a9   : > { %5599 = vmatprep.subr.bf16.mxu0 %v6302_v23 }
 0x2ac   : > { %5600 = vmatpush3.bf16.msra.mxu0 %v6302_v23 }
 0x2ad   : > { %5605 = vmatprep.subr.bf16.mxu0 %v7284_v24 }
 0x2af   : > { %5602 = vmatmul.mubr.msk.bf16.vlgmr.msra.gmra.mrb[4].mxu0 %vm1384_vm0, %v7874_v18 }
 0x2b0   : > { %5607 = vmatprep.mubr.msk.bf16.mxu0 %vm7285_vm1, %v7284_v24 }
 0x36c   : > { %v5591_v25 = vpop.f32.mrb[0].mxu1 }
 0x36d   : > { %v1521_v28 = vpop.f32.mrb[1].mxu1  ;;  %v1530_v31 = vadd.f32 %v5591_v25, %v5295_v26 }
 0x36e   : > { %v5592_v29 = vpop.f32.mrb[2].mxu1  ;;  %v1522_v36 = vadd.f32 %v5295_v26, %v1521_v28 }
 0x36f   : > { %v1533_v32 = vadd.f32 %v5592_v29, %v5295_v26  ;;  %v1524_v33 = vpop.f32.mrb[3].mxu1 }
 0x370   : > { %v1525_v37 = vadd.f32 %v5295_v26, %v1524_v33 }
 0x371   : > { %v7896_v40 = vpack.c.bf16 %v1533_v32, %v1530_v31 }
 0x372   : > { %v5579_v30 = vpop.f32.mrb[0].mxu0  ;;  %v7898_v43 = vpack.c.bf16 %v1525_v37, %v1522_v36 }
 0x373   : > { %v1434_v34 = vadd.f32 %v5579_v30, %v5288_v27  ;;  %v1425_v35 = vpop.f32.mrb[1].mxu0  ;;  %v1682_v46 = vsel %vm1630_vm2, %v7896_v40, 0 }
 0x374   : > { %v1426_v38 = vadd.f32 %v5288_v27, %v1425_v35  ;;  %v5580_v39 = vpop.f32.mrb[2].mxu0  ;;  %5612 = vmatpush3.bf16.xpose.msra.mxu1 %v1682_v46  ;;  %v1635_v48 = vsel %vm1630_vm2, %v7898_v43, 0 }
 0x375   : > { %v1437_v41 = vadd.f32 %v5580_v39, %v5288_v27  ;;  %v1428_v42 = vpop.f32.mrb[3].mxu0  ;;  %5606 = vmatpush3.bf16.xpose.msra.mxu0 %v1635_v48  ;;  %5623 = vmatprep.subr.bf16.mxu1 %v7284_v24 }
 0x376   : > { %v1429_v44 = vadd.f32 %v5288_v27, %v1428_v42  ;;  %5617 = vmatprep.subr.bf16.mxu0 %v7284_v24 }
 0x377   : > { %v7900_v45 = vpack.c.bf16 %v1437_v41, %v1434_v34 }
 0x378   : > { %v7904_v47 = vpack.c.bf16 %v1429_v44, %v1426_v38 }
 0x37b   : > { %5614 = vmatmul.mubr.msk.bf16.vlgmr.msra.gmra.mrb[4].mxu1 %vm1630_vm2, %v7900_v45 }
 0x37c   : > { %5608 = vmatmul.mubr.msk.bf16.vlgmr.msra.gmra.mrb[8].mxu0 %vm1630_vm2, %v7904_v47  ;;  %5625 = vmatprep.mubr.msk.bf16.mxu1 %vm7285_vm1, %v7284_v24 }
 0x37d   : > { %5619 = vmatprep.mubr.msk.bf16.mxu0 %vm7285_vm1, %v7284_v24 }
 0x382   : > { %v5603_v50 = vpop.f32.mrb[4].mxu0 }
 0x383   : > { %v1618_v51 = vadd.f32 %v5603_v50, %v5302_v49  ;;  %v1609_v52 = vpop.f32.mrb[5].mxu0 }
 0x384   : > { %v1610_v53 = vadd.f32 %v5302_v49, %v1609_v52  ;;  %v5604_v54 = vpop.f32.mrb[6].mxu0 }
 0x385   : > { %v1621_v55 = vadd.f32 %v5604_v54, %v5302_v49  ;;  %v1612_v56 = vpop.f32.mrb[7].mxu0 }
 0x386   : > { %v1613_v57 = vadd.f32 %v5302_v49, %v1612_v56 }
 0x387   : > { %v7918_v58 = vpack.c.bf16 %v1621_v55, %v1618_v51 }
 0x388   : > { %v7920_v59 = vpack.c.bf16 %v1613_v57, %v1610_v53 }
 0x389   : > { %5624 = vmatpush3.bf16.msra.mxu1 %v7918_v58 }
 0x38a   : > { %5618 = vmatpush3.bf16.msra.mxu0 %v7920_v59  ;;  %5635 = vmatprep.subr.bf16.mxu1 %v7284_v24 }
 0x38b   : > { %5629 = vmatprep.subr.bf16.mxu0 %v7284_v24 }
 0x44e   : > { %v1718_v60 = vpop.f32.mrb[4].mxu1 }
 0x44f   : > { %v1671_v61 = vpop.f32.mrb[8].mxu0  ;;  %v5615_v62 = vpop.f32.mrb[5].mxu1  ;;  %v1731_v63 = vsel %vm1630_vm2, %v1718_v60, -inf }
 0x450   : > { %1732 = vmax.xlane.f32.xlu1 %v1731_v63  ;;  %v5609_v0 = vpop.f32.mrb[9].mxu0  ;;  %v1721_v1 = vpop.f32.mrb[6].mxu1  ;;  %v1725_v2 = vsel %vm1630_vm2, %v1671_v61, -inf }
 0x451   : > { %v5616_v3 = vpop.f32.mrb[7].mxu1  ;;  %1726 = vmax.xlane.f32.xlu0 %v1725_v2  ;;  %v1674_v4 = vpop.f32.mrb[10].mxu0  ;;  %v1734_v6 = vsel %vm1630_vm2, %v1721_v1, -inf }
 0x452   : > { %v5610_v5 = vpop.f32.mrb[11].mxu0  ;;  %v1728_v7 = vsel %vm1630_vm2, %v1674_v4, -inf }
 0x454   : > { %1735 = vmax.xlane.f32.xlu1 %v1734_v6 }
 0x455   : > { %1729 = vmax.xlane.f32.xlu0 %v1728_v7 }
 0x465   : > { %1916 = vrot.lane.b32.xlu1 %v7896_v40, %s7286_s1 }
 0x4dd   : > { %v1733_v8 = vpop.xlane.xlu1 %1732 }
 0x4de   : > { %v1739_v10 = vsub.f32 %v1718_v60, %v1733_v8  ;;  %v1727_v11 = vpop.xlane.xlu0 %1726 }
 0x4df   : > { %v1737_v12 = vsub.f32 %v1671_v61, %v1727_v11 }
 0x4e0   : > { %v1745_v13 = vmul.f32 1.442695, %v1739_v10 }
 0x4e1   : > { %v1741_v15 = vmul.f32 1.442695, %v1737_v12  ;;  %v1736_v16 = vpop.xlane.xlu1 %1735 }
 0x4e2   : > { %6347 = vpow2.f32 %v1745_v13  ;;  %v1740_v17 = vsub.f32 %v1721_v1, %v1736_v16  ;;  %v1730_v19 = vpop.xlane.xlu0 %1729 }
 0x4e3   : > { %v1738_v21 = vsub.f32 %v1674_v4, %v1730_v19  ;;  %6349 = vpow2.f32 %v1741_v15 }
 0x4e4   : > { %v1747_v22 = vmul.f32 1.442695, %v1740_v17 }
 0x4e5   : > { %v1743_v23 = vmul.f32 1.442695, %v1738_v21  ;;  %v1917_v33 = vpop.permute.xlu1 %1916 }
 0x4e6   : > { %6351 = vpow2.f32 %v1747_v22  ;;  %v1922_v49 = vsel %vm1630_vm2, %v1917_v33, 0 }
 0x4e7   : > { %6353 = vpow2.f32 %v1743_v23 }
 0x4ec   : > { %v6348_v25 = vpop.eup %6347 }
 0x4ed   : > { %v1755_v26 = vsel %vm1630_vm2, %v6348_v25, 0.0  ;;  %v6350_v27 = vpop.eup %6349 }
 0x4ee   : > { %1756 = vadd.xlane.f32.xlu0 %v1755_v26  ;;  %v1749_v30 = vsel %vm1630_vm2, %v6350_v27, 0.0 }
 0x4f0   : > { %v6352_v28 = vpop.eup %6351 }
 0x4f1   : > { %v1758_v29 = vsel %vm1630_vm2, %v6352_v28, 0.0  ;;  %v6354_v31 = vpop.eup %6353 }
 0x4f2   : > { %1759 = vadd.xlane.f32.xlu1 %v1758_v29  ;;  %1750 = vadd.xlane.f32.xlu0 %v1749_v30  ;;  %v1752_v32 = vsel %vm1630_vm2, %v6354_v31, 0.0 }
 0x4f6   : > { %1753 = vadd.xlane.f32.xlu1 %v1752_v32 }
 0x507   : > { %1860 = vrot.lane.b32.xlu1 %v7904_v47, %s7286_s1 }
 0x508   : > { %1863 = vrot.lane.b32.xlu0 %v7898_v43, %s7286_s1 }
 0x50b   : > { %1913 = vrot.lane.b32.xlu1 %v7900_v45, %s7286_s1 }
 0x57b   : > { %v1757_v34 = vpop.xlane.xlu0 %1756 }
 0x57c   : > { %6355 = vrcp.f32 %v1757_v34 }
 0x57f   : > { %v1760_v35 = vpop.xlane.xlu1 %1759  ;;  %v1751_v36 = vpop.xlane.xlu0 %1750 }
 0x580   : > { %6357 = vrcp.f32 %v1760_v35 }
 0x581   : > { %6359 = vrcp.f32 %v1751_v36 }
 0x583   : > { %v1754_v37 = vpop.xlane.xlu1 %1753  ;;  %v1864_v52 = vpop.permute.xlu0 %1863 }
 0x584   : > { %6361 = vrcp.f32 %v1754_v37  ;;  %v1869_v55 = vsel %vm1630_vm2, %v1864_v52, 0 }
 0x586   : > { %v6356_v38 = vpop.eup %6355 }
 0x587   : > { %v1767_v41 = vmul.f32 %v6356_v38, %v6348_v25  ;;  %v1861_v53 = vpop.permute.xlu1 %1860 }
 0x58a   : > { %v6358_v39 = vpop.eup %6357 }
 0x58b   : > { %v1768_v42 = vmul.f32 %v6358_v39, %v6352_v28  ;;  %v6360_v44 = vpop.eup %6359  ;;  %v1914_v56 = vpop.permute.xlu1 %1913 }
 0x58c   : > { %v1765_v50 = vmul.f32 %v6360_v44, %v6350_v27 }
 0x58d   : > { %v1770_v46 = vpack.c.bf16 %v1768_v42, %v1767_v41 }
 0x58e   : > { %v6362_v48 = vpop.eup %6361 }
 0x58f   : > { %v1766_v51 = vmul.f32 %v6362_v48, %v6354_v31  ;;  %5626 = vmatmul.mubr.msk.bf16.vlgmr.msra.gmra.mrb[8].mxu1 %vm1630_vm2, %v1770_v46 }
 0x590   : > { %5636 = vmatpush3.bf16.xpose.msra.mxu1 %v1922_v49  ;;  %5637 = vmatprep.mubr.msk.bf16.mxu1 %vm7285_vm1, %v7284_v24 }
 0x591   : > { %v1769_v54 = vpack.c.bf16 %v1766_v51, %v1765_v50  ;;  %5647 = vmatprep.subr.bf16.mxu1 %v7284_v24 }
 0x593   : > { %5620 = vmatmul.mubr.msk.bf16.vlgmr.msra.gmra.mrb[12].mxu0 %vm1630_vm2, %v1769_v54 }
 0x594   : > { %5630 = vmatpush3.bf16.xpose.msra.mxu0 %v1869_v55  ;;  %5631 = vmatprep.mubr.msk.bf16.mxu0 %vm7285_vm1, %v7284_v24 }
 0x595   : > { %5641 = vmatprep.subr.bf16.mxu0 %v7284_v24 }
 0x597   : > { %5638 = vmatmul.mubr.msk.bf16.vlgmr.msra.gmra.mrb[12].mxu1 %vm1630_vm2, %v1914_v56 }
 0x598   : > { %5649 = vmatprep.mubr.msk.bf16.mxu1 %vm7285_vm1, %v7284_v24 }
 0x59b   : > { %5632 = vmatmul.mubr.msk.bf16.vlgmr.msra.gmra.mrb[16].mxu0 %vm1630_vm2, %v1861_v53 }
 0x59c   : > { %5643 = vmatprep.mubr.msk.bf16.mxu0 %vm7285_vm1, %v7284_v24 }
 0x662   : > { %v7958_v57 = vpop.f32.mrb[8].mxu1 }
 0x663   : > { %v5627_v60 = vpop.f32.mrb[9].mxu1 }
 0x664   : > { %v7960_v61 = vpop.f32.mrb[10].mxu1 }
 0x665   : > { %v5628_v62 = vpop.f32.mrb[11].mxu1 }
 0x666   : > { %v7962_v63 = vpop.f32.mrb[12].mxu0 }
 0x667   : > { %v5621_v0 = vpop.f32.mrb[13].mxu0 }
 0x668   : > { %v7964_v1 = vpop.f32.mrb[14].mxu0 }
 0x669   : > { %v5622_v2 = vpop.f32.mrb[15].mxu0 }
 0x66a   : > { %v1958_v3 = vpop.f32.mrb[12].mxu1 }
 0x66b   : > { %v5639_v4 = vpop.f32.mrb[13].mxu1  ;;  %v1971_v15 = vsel %vm1630_vm2, %v1958_v3, -inf }
 0x66c   : > { %v1961_v5 = vpop.f32.mrb[14].mxu1 }
 0x66d   : > { %v5640_v6 = vpop.f32.mrb[15].mxu1  ;;  %v1974_v16 = vsel %vm1630_vm2, %v1961_v5, -inf }
 0x66e   : > { %v1905_v7 = vpop.f32.mrb[16].mxu0 }
 0x66f   : > { %v5633_v8 = vpop.f32.mrb[17].mxu0  ;;  %v1965_v10 = vsel %vm1630_vm2, %v1905_v7, -inf }
 0x670   : > { %1966 = vmax.xlane.f32.xlu0 %v1965_v10  ;;  %v1908_v11 = vpop.f32.mrb[18].mxu0 }
 0x671   : > { %v5634_v12 = vpop.f32.mrb[19].mxu0  ;;  %v1968_v13 = vsel %vm1630_vm2, %v1908_v11, -inf }
 0x672   : > { %1969 = vmax.xlane.f32.xlu1 %v1968_v13 }
 0x674   : > { %1972 = vmax.xlane.f32.xlu0 %v1971_v15 }
 0x678   : > { %1975 = vmax.xlane.f32.xlu0 %v1974_v16 }
 0x683   : > { %2060 = vrot.lane.b32.xlu1 %v7918_v58, %s7286_s1 }
 0x687   : > { %2109 = vrot.lane.b32.xlu1 %v7898_v43, %s7287_s0 }
 0x6fd   : > { %v1967_v17 = vpop.xlane.xlu0 %1966 }
 0x6fe   : > { %v1977_v21 = vsub.f32 %v1905_v7, %v1967_v17 }
 0x6ff   : > { %v1970_v19 = vpop.xlane.xlu1 %1969 }
 0x700   : > { %v1981_v26 = vmul.f32 1.442695, %v1977_v21  ;;  %v1978_v27 = vsub.f32 %v1908_v11, %v1970_v19 }
 0x701   : > { %v1973_v22 = vpop.xlane.xlu0 %1972 }
 0x702   : > { %v1979_v23 = vsub.f32 %v1958_v3, %v1973_v22  ;;  %v1983_v31 = vmul.f32 1.442695, %v1978_v27 }
 0x703   : > { %v2061_v25 = vpop.permute.xlu1 %2060 }
 0x704   : > { %v1985_v28 = vmul.f32 1.442695, %v1979_v23  ;;  %5648 = vmatpush3.bf16.msra.mxu1 %v2061_v25 }
 0x705   : > { %v1976_v29 = vpop.xlane.xlu0 %1975  ;;  %5659 = vmatprep.subr.bf16.mxu1 %v7284_v24 }
 0x706   : > { %6363 = vpow2.f32 %v1985_v28  ;;  %v1980_v30 = vsub.f32 %v1961_v5, %v1976_v29 }
 0x707   : > { %6365 = vpow2.f32 %v1981_v26  ;;  %v2110_v42 = vpop.permute.xlu1 %2109 }
 0x708   : > { %v1987_v32 = vmul.f32 1.442695, %v1980_v30  ;;  %v2115_v5 = vsel %vm1630_vm2, %v2110_v42, 0 }
 0x70a   : > { %6367 = vpow2.f32 %v1987_v32 }
 0x70b   : > { %6369 = vpow2.f32 %v1983_v31 }
 0x710   : > { %v6364_v33 = vpop.eup %6363 }
 0x711   : > { %v1995_v34 = vsel %vm1630_vm2, %v6364_v33, 0.0  ;;  %v6366_v35 = vpop.eup %6365 }
 0x712   : > { %1996 = vadd.xlane.f32.xlu0 %v1995_v34  ;;  %v1989_v37 = vsel %vm1630_vm2, %v6366_v35, 0.0 }
 0x714   : > { %v6368_v36 = vpop.eup %6367 }
 0x715   : > { %v1998_v38 = vsel %vm1630_vm2, %v6368_v36, 0.0  ;;  %v6370_v39 = vpop.eup %6369 }
 0x716   : > { %1990 = vadd.xlane.f32.xlu0 %v1989_v37  ;;  %1999 = vadd.xlane.f32.xlu1 %v1998_v38  ;;  %v1992_v41 = vsel %vm1630_vm2, %v6370_v39, 0.0 }
 0x71a   : > { %1993 = vadd.xlane.f32.xlu1 %v1992_v41 }
 0x72b   : > { %2160 = vrot.lane.b32.xlu1 %v7896_v40, %s7287_s0 }
 0x72c   : > { %2012 = vrot.lane.b32.xlu0 %v7920_v59, %s7286_s1 }
 0x72f   : > { %2158 = vrot.lane.b32.xlu1 %v7900_v45, %s7287_s0 }
 0x730   : > { %2107 = vrot.lane.b32.xlu0 %v7904_v47, %s7287_s0 }
 0x79f   : > { %v1997_v44 = vpop.xlane.xlu0 %1996 }
 0x7a0   : > { %6371 = vrcp.f32 %v1997_v44 }
 0x7a3   : > { %v1991_v46 = vpop.xlane.xlu0 %1990  ;;  %v2000_v48 = vpop.xlane.xlu1 %1999 }
 0x7a4   : > { %6373 = vrcp.f32 %v2000_v48 }
 0x7a5   : > { %6375 = vrcp.f32 %v1991_v46 }
 0x7a7   : > { %v2013_v49 = vpop.permute.xlu0 %2012  ;;  %v1994_v50 = vpop.xlane.xlu1 %1993 }
 0x7a8   : > { %6377 = vrcp.f32 %v1994_v50  ;;  %5642 = vmatpush3.bf16.msra.mxu0 %v2013_v49 }
 0x7a9   : > { %5653 = vmatprep.subr.bf16.mxu0 %v7284_v24 }
 0x7aa   : > { %v6372_v51 = vpop.eup %6371 }
 0x7ab   : > { %v2007_v54 = vmul.f32 %v6372_v51, %v6364_v33  ;;  %v2161_v56 = vpop.permute.xlu1 %2160  ;;  %v2108_v7 = vpop.permute.xlu0 %2107 }
 0x7ac   : > { %v2166_v3 = vsel %vm1630_vm2, %v2161_v56, 0 }
 0x7ae   : > { %v6374_v52 = vpop.eup %6373 }
 0x7af   : > { %v6376_v53 = vpop.eup %6375  ;;  %v2008_v55 = vmul.f32 %v6374_v52, %v6368_v36  ;;  %v2159_v6 = vpop.permute.xlu1 %2158 }
 0x7b0   : > { %v2005_v0 = vmul.f32 %v6376_v53, %v6366_v35 }
 0x7b1   : > { %v2010_v62 = vpack.c.bf16 %v2008_v55, %v2007_v54 }
 0x7b2   : > { %v6378_v60 = vpop.eup %6377 }
 0x7b3   : > { %v2006_v2 = vmul.f32 %v6378_v60, %v6370_v39  ;;  %5650 = vmatmul.mubr.msk.bf16.vlgmr.msra.gmra.mrb[16].mxu1 %vm1630_vm2, %v2010_v62 }
 0x7b4   : > { %5660 = vmatpush3.bf16.xpose.msra.mxu1 %v2166_v3  ;;  %5661 = vmatprep.mubr.msk.bf16.mxu1 %vm7285_vm1, %v7284_v24 }
 0x7b5   : > { %v2009_v4 = vpack.c.bf16 %v2006_v2, %v2005_v0  ;;  %5671 = vmatprep.subr.bf16.mxu1 %v7284_v24 }
 0x7b7   : > { %5644 = vmatmul.mubr.msk.bf16.vlgmr.msra.gmra.mrb[20].mxu0 %vm1630_vm2, %v2009_v4 }
 0x7b8   : > { %5654 = vmatpush3.bf16.xpose.msra.mxu0 %v2115_v5  ;;  %5655 = vmatprep.mubr.msk.bf16.mxu0 %vm7285_vm1, %v7284_v24 }
 0x7b9   : > { %5665 = vmatprep.subr.bf16.mxu0 %v7284_v24 }
 0x7bb   : > { %5662 = vmatmul.mubr.msk.bf16.vlgmr.msra.gmra.mrb[20].mxu1 %vm1630_vm2, %v2159_v6 }
 0x7bc   : > { %5673 = vmatprep.mubr.msk.bf16.mxu1 %vm7285_vm1, %v7284_v24 }
 0x7bf   : > { %5656 = vmatmul.mubr.msk.bf16.vlgmr.msra.gmra.mrb[24].mxu0 %vm1630_vm2, %v2108_v7 }
 0x7c0   : > { %5667 = vmatprep.mubr.msk.bf16.mxu0 %vm7285_vm1, %v7284_v24 }
 0x886   : > { %v8004_v8 = vpop.f32.mrb[16].mxu1 }
 0x887   : > { %v5651_v10 = vpop.f32.mrb[17].mxu1 }
 0x888   : > { %v8006_v11 = vpop.f32.mrb[18].mxu1 }
 0x889   : > { %v6236_v12 = vpack.i.bf16 %v8006_v11, %v8004_v8  ;;  %v5652_v13 = vpop.f32.mrb[19].mxu1 }
 0x88a   : > { %v8010_v15 = vpop.f32.mrb[20].mxu0 }
 0x88b   : > { %v5645_v16 = vpop.f32.mrb[21].mxu0 }
 0x88c   : > { %v8012_v17 = vpop.f32.mrb[22].mxu0 }
 0x88d   : > { %v6231_v19 = vpack.i.bf16 %v8012_v17, %v8010_v15  ;;  %v5646_v21 = vpop.f32.mrb[23].mxu0 }
 0x88e   : > { %v2202_v22 = vpop.f32.mrb[20].mxu1 }
 0x88f   : > { %v5663_v23 = vpop.f32.mrb[21].mxu1  ;;  %v2215_v33 = vsel %vm1630_vm2, %v2202_v22, -inf }
 0x890   : > { %v2205_v25 = vpop.f32.mrb[22].mxu1 }
 0x891   : > { %v5664_v26 = vpop.f32.mrb[23].mxu1  ;;  %v2218_v34 = vsel %vm1630_vm2, %v2205_v25, -inf }
 0x892   : > { %v2151_v27 = vpop.f32.mrb[24].mxu0 }
 0x893   : > { %v5657_v28 = vpop.f32.mrb[25].mxu0  ;;  %v2209_v29 = vsel %vm1630_vm2, %v2151_v27, -inf }
 0x894   : > { %2210 = vmax.xlane.f32.xlu0 %v2209_v29  ;;  %v2154_v30 = vpop.f32.mrb[26].mxu0 }
 0x895   : > { %v5658_v31 = vpop.f32.mrb[27].mxu0  ;;  %v2212_v32 = vsel %vm1630_vm2, %v2154_v30, -inf }
 0x896   : > { %2213 = vmax.xlane.f32.xlu1 %v2212_v32 }
 0x898   : > { %2216 = vmax.xlane.f32.xlu0 %v2215_v33 }
 0x89c   : > { %2219 = vmax.xlane.f32.xlu0 %v2218_v34 }
 0x8a7   : > { %2302 = vrot.lane.b32.xlu1 %v7918_v58, %s7287_s0 }
 0x8ab   : > { %2351 = vrot.lane.b32.xlu1 %v7898_v43, %s7288_s23 }
 0x921   : > { %v2211_v35 = vpop.xlane.xlu0 %2210 }
 0x922   : > { %v2221_v37 = vsub.f32 %v2151_v27, %v2211_v35 }
 0x923   : > { %v2214_v36 = vpop.xlane.xlu1 %2213 }
 0x924   : > { %v2225_v42 = vmul.f32 1.442695, %v2221_v37  ;;  %v2222_v44 = vsub.f32 %v2154_v30, %v2214_v36 }
 0x925   : > { %v2217_v38 = vpop.xlane.xlu0 %2216 }
 0x926   : > { %v2223_v39 = vsub.f32 %v2202_v22, %v2217_v38  ;;  %v2227_v50 = vmul.f32 1.442695, %v2222_v44 }
 0x927   : > { %v2303_v41 = vpop.permute.xlu1 %2302 }
 0x928   : > { %v2229_v46 = vmul.f32 1.442695, %v2223_v39  ;;  %5672 = vmatpush3.bf16.msra.mxu1 %v2303_v41 }
 0x929   : > { %v2220_v48 = vpop.xlane.xlu0 %2219  ;;  %5683 = vmatprep.subr.bf16.mxu1 %v7284_v24 }
 0x92a   : > { %6379 = vpow2.f32 %v2229_v46  ;;  %v2224_v49 = vsub.f32 %v2205_v25, %v2220_v48 }
 0x92b   : > { %6381 = vpow2.f32 %v2225_v42  ;;  %v2352_v0 = vpop.permute.xlu1 %2351 }
 0x92c   : > { %v2231_v51 = vmul.f32 1.442695, %v2224_v49  ;;  %v2357_v27 = vsel %vm1630_vm2, %v2352_v0, 0 }
 0x92e   : > { %6383 = vpow2.f32 %v2231_v51 }
 0x92f   : > { %6385 = vpow2.f32 %v2227_v50 }
 0x934   : > { %v6380_v43 = vpop.eup %6379 }
 0x935   : > { %v2239_v52 = vsel %vm1630_vm2, %v6380_v43, 0.0  ;;  %v6382_v53 = vpop.eup %6381 }
 0x936   : > { %2240 = vadd.xlane.f32.xlu0 %v2239_v52  ;;  %v2233_v55 = vsel %vm1630_vm2, %v6382_v53, 0.0 }
 0x938   : > { %v6384_v54 = vpop.eup %6383 }
 0x939   : > { %v2242_v56 = vsel %vm1630_vm2, %v6384_v54, 0.0  ;;  %v6386_v60 = vpop.eup %6385 }
 0x93a   : > { %2234 = vadd.xlane.f32.xlu0 %v2233_v55  ;;  %2243 = vadd.xlane.f32.xlu1 %v2242_v56  ;;  %v2236_v62 = vsel %vm1630_vm2, %v6386_v60, 0.0 }
 0x93e   : > { %2237 = vadd.xlane.f32.xlu1 %v2236_v62 }
 0x94f   : > { %2402 = vrot.lane.b32.xlu1 %v7896_v40, %s7288_s23 }
 0x950   : > { %2255 = vrot.lane.b32.xlu0 %v7920_v59, %s7287_s0 }
 0x953   : > { %2400 = vrot.lane.b32.xlu1 %v7900_v45, %s7288_s23 }
 0x954   : > { %2349 = vrot.lane.b32.xlu0 %v7904_v47, %s7288_s23 }
 0x9c3   : > { %v2241_v2 = vpop.xlane.xlu0 %2240 }
 0x9c4   : > { %6387 = vrcp.f32 %v2241_v2 }
 0x9c7   : > { %v2235_v3 = vpop.xlane.xlu0 %2234  ;;  %v2244_v4 = vpop.xlane.xlu1 %2243 }
 0x9c8   : > { %6389 = vrcp.f32 %v2244_v4 }
 0x9c9   : > { %6391 = vrcp.f32 %v2235_v3 }
 0x9cb   : > { %v2256_v5 = vpop.permute.xlu0 %2255  ;;  %v2238_v6 = vpop.xlane.xlu1 %2237 }
 0x9cc   : > { %6393 = vrcp.f32 %v2238_v6  ;;  %5666 = vmatpush3.bf16.msra.mxu0 %v2256_v5 }
 0x9cd   : > { %5677 = vmatprep.subr.bf16.mxu0 %v7284_v24 }
 0x9ce   : > { %v6388_v40 = vpop.eup %6387 }
 0x9cf   : > { %v2251_v45 = vmul.f32 %v6388_v40, %v6380_v43  ;;  %v2403_v16 = vpop.permute.xlu1 %2402  ;;  %v2350_v29 = vpop.permute.xlu0 %2349 }
 0x9d0   : > { %v2408_v25 = vsel %vm1630_vm2, %v2403_v16, 0 }
 0x9d2   : > { %v6390_v7 = vpop.eup %6389 }
 0x9d3   : > { %v6392_v10 = vpop.eup %6391  ;;  %v2252_v13 = vmul.f32 %v6390_v7, %v6384_v54  ;;  %v2401_v28 = vpop.permute.xlu1 %2400 }
 0x9d4   : > { %v2249_v22 = vmul.f32 %v6392_v10, %v6382_v53 }
 0x9d5   : > { %v2254_v21 = vpack.c.bf16 %v2252_v13, %v2251_v45 }
 0x9d6   : > { %v6394_v47 = vpop.eup %6393 }
 0x9d7   : > { %v2250_v23 = vmul.f32 %v6394_v47, %v6386_v60  ;;  %5674 = vmatmul.mubr.msk.bf16.vlgmr.msra.gmra.mrb[24].mxu1 %vm1630_vm2, %v2254_v21 }
 0x9d8   : > { %5684 = vmatpush3.bf16.xpose.msra.mxu1 %v2408_v25  ;;  %5685 = vmatprep.mubr.msk.bf16.mxu1 %vm7285_vm1, %v7284_v24 }
 0x9d9   : > { %v2253_v26 = vpack.c.bf16 %v2250_v23, %v2249_v22  ;;  %5695 = vmatprep.subr.bf16.mxu1 %v7284_v24 }
 0x9db   : > { %5668 = vmatmul.mubr.msk.bf16.vlgmr.msra.gmra.mrb[28].mxu0 %vm1630_vm2, %v2253_v26 }
 0x9dc   : > { %5678 = vmatpush3.bf16.xpose.msra.mxu0 %v2357_v27  ;;  %5679 = vmatprep.mubr.msk.bf16.mxu0 %vm7285_vm1, %v7284_v24 }
 0x9dd   : > { %5689 = vmatprep.subr.bf16.mxu0 %v7284_v24 }
 0x9df   : > { %5686 = vmatmul.mubr.msk.bf16.vlgmr.msra.gmra.mrb[28].mxu1 %vm1630_vm2, %v2401_v28 }
 0x9e0   : > { %5697 = vmatprep.mubr.msk.bf16.mxu1 %vm7285_vm1, %v7284_v24 }
 0x9e3   : > { %5680 = vmatmul.mubr.msk.bf16.vlgmr.msra.gmra.mrb[32].mxu0 %vm1630_vm2, %v2350_v29 }
 0x9e4   : > { %5691 = vmatprep.mubr.msk.bf16.mxu0 %vm7285_vm1, %v7284_v24 }
 0xaaa   : > { %v2342_v30 = vpop.f32.mrb[24].mxu1 }
 0xaab   : > { %v5675_v31 = vpop.f32.mrb[25].mxu1 }
 0xaac   : > { %v2345_v32 = vpop.f32.mrb[26].mxu1 }
 0xaad   : > { %v6246_v33 = vpack.i.bf16 %v2345_v32, %v2342_v30  ;;  %v5676_v34 = vpop.f32.mrb[27].mxu1 }
 0xaae   : > { %v2295_v35 = vpop.f32.mrb[28].mxu0  ;;  %v6304_v34 = vld [vmem:[#allocation10 + $0x8] sm:$0xff]  }
 0xaaf   : > { %v5669_v36 = vpop.f32.mrb[29].mxu0 }
 0xab0   : > { %v2298_v37 = vpop.f32.mrb[30].mxu0  ;;  %v6306_v36 = vld [vmem:[#allocation10 + $0x18] sm:$0xff]  }
 0xab1   : > { %v6241_v38 = vpack.i.bf16 %v2298_v37, %v2295_v35  ;;  %v5670_v39 = vpop.f32.mrb[31].mxu0  ;;  %v6305_v35 = vld [vmem:[#allocation10 + $0x10] sm:$0xff]  }
 0xab2   : > { %v2444_v41 = vpop.f32.mrb[28].mxu1 }
 0xab3   : > { %v5687_v42 = vpop.f32.mrb[29].mxu1  ;;  %v2457_v53 = vsel %vm1630_vm2, %v2444_v41, -inf }
 0xab4   : > { %v2447_v44 = vpop.f32.mrb[30].mxu1 }
 0xab5   : > { %v5688_v46 = vpop.f32.mrb[31].mxu1  ;;  %v2460_v54 = vsel %vm1630_vm2, %v2447_v44, -inf }
 0xab6   : > { %v2393_v48 = vpop.f32.mrb[32].mxu0 }
 0xab7   : > { %v5681_v49 = vpop.f32.mrb[33].mxu0  ;;  %v2451_v50 = vsel %vm1630_vm2, %v2393_v48, -inf }
 0xab8   : > { %2452 = vmax.xlane.f32.xlu0 %v2451_v50  ;;  %v2396_v51 = vpop.f32.mrb[34].mxu0  ;;  %v6309_v49 = vld [vmem:[#allocation13] sm:$0xff]  }
 0xab9   : > { %v5682_v43 = vpop.f32.mrb[35].mxu0  ;;  %v2454_v52 = vsel %vm1630_vm2, %v2396_v51, -inf }
 0xaba   : > { %2455 = vmax.xlane.f32.xlu1 %v2454_v52  ;;  %v6311_v43 = vld [vmem:[#allocation13 + $0x8] sm:$0xff]   ;;  %v6313_v52 = vld [vmem:[#allocation13 + $0x10] sm:$0xff]  }
 0xabc   : > { %2458 = vmax.xlane.f32.xlu0 %v2457_v53  ;;  %v6314_v53 = vld [vmem:[#allocation13 + $0x18] sm:$0xff]  }
 0xac0   : > { %2461 = vmax.xlane.f32.xlu0 %v2460_v54 }
 0xb45   : > { %v2453_v55 = vpop.xlane.xlu0 %2452 }
 0xb46   : > { %v2463_v56 = vsub.f32 %v2393_v48, %v2453_v55 }
 0xb47   : > { %v2456_v60 = vpop.xlane.xlu1 %2455 }
 0xb48   : > { %v2467_v2 = vmul.f32 1.442695, %v2463_v56  ;;  %v2464_v3 = vsub.f32 %v2396_v51, %v2456_v60 }
 0xb49   : > { %v2459_v62 = vpop.xlane.xlu0 %2458 }
 0xb4a   : > { %v2465_v0 = vsub.f32 %v2444_v41, %v2459_v62  ;;  %v2469_v40 = vmul.f32 1.442695, %v2464_v3 }
 0xb4c   : > { %v2471_v4 = vmul.f32 1.442695, %v2465_v0 }
 0xb4d   : > { %v2462_v5 = vpop.xlane.xlu0 %2461 }
 0xb4e   : > { %6395 = vpow2.f32 %v2471_v4  ;;  %v2466_v6 = vsub.f32 %v2447_v44, %v2462_v5 }
 0xb4f   : > { %6397 = vpow2.f32 %v2467_v2 }
 0xb50   : > { %v2473_v7 = vmul.f32 1.442695, %v2466_v6 }
 0xb52   : > { %6399 = vpow2.f32 %v2473_v7 }
 0xb53   : > { %6401 = vpow2.f32 %v2469_v40 }
 0xb58   : > { %v6396_v10 = vpop.eup %6395 }
 0xb59   : > { %v2481_v45 = vsel %vm1630_vm2, %v6396_v10, 0.0  ;;  %v6398_v13 = vpop.eup %6397 }
 0xb5a   : > { %2482 = vadd.xlane.f32.xlu0 %v2481_v45  ;;  %v2475_v47 = vsel %vm1630_vm2, %v6398_v13, 0.0 }
 0xb5c   : > { %v6400_v16 = vpop.eup %6399 }
 0xb5d   : > { %v2484_v21 = vsel %vm1630_vm2, %v6400_v16, 0.0  ;;  %v6402_v22 = vpop.eup %6401 }
 0xb5e   : > { %2476 = vadd.xlane.f32.xlu0 %v2475_v47  ;;  %2485 = vadd.xlane.f32.xlu1 %v2484_v21  ;;  %v2478_v23 = vsel %vm1630_vm2, %v6402_v22, 0.0 }
 0xb62   : > { %2479 = vadd.xlane.f32.xlu1 %v2478_v23 }
 0xb73   : > { %2544 = vrot.lane.b32.xlu1 %v7918_v58, %s7288_s23 }
 0xb74   : > { %2497 = vrot.lane.b32.xlu0 %v7920_v59, %s7288_s23 }
 0xb77   : > { %6232 = vrot.lane.b32.xlu1 %v6231_v19, %s7289_s16 }
 0xb78   : > { %6242 = vrot.lane.b32.xlu0 %v6241_v38, %s7290_s8  ;;  %v8080_v38 = vld [vmem:[#allocation16] sm:$0xff]  }
 0xb7b   : > { %6237 = vrot.lane.b32.xlu1 %v6236_v12, %s7289_s16 }
 0xb7f   : > { %6247 = vrot.lane.b32.xlu1 %v6246_v33, %s7290_s8  ;;  %v6303_v33 = vld [vmem:[#allocation10] sm:$0xff]  }
 0xbe7   : > { %v2483_v58 = vpop.xlane.xlu0 %2482 }
 0xbe8   : > { %6403 = vrcp.f32 %v2483_v58 }
 0xbeb   : > { %v2477_v25 = vpop.xlane.xlu0 %2476  ;;  %v2486_v59 = vpop.xlane.xlu1 %2485 }
 0xbec   : > { %6405 = vrcp.f32 %v2486_v59 }
 0xbed   : > { %6407 = vrcp.f32 %v2477_v25 }
 0xbef   : > { %v2498_v26 = vpop.permute.xlu0 %2497  ;;  %v2480_v27 = vpop.xlane.xlu1 %2479 }
 0xbf0   : > { %6409 = vrcp.f32 %v2480_v27  ;;  %5690 = vmatpush3.bf16.msra.mxu0 %v2498_v26 }
 0xbf1   : > { %5701 = vmatprep.subr.bf16.mxu0 %v6303_v33 }
 0xbf2   : > { %v6404_v17 = vpop.eup %6403 }
 0xbf3   : > { %v2545_v15 = vpop.permute.xlu1 %2544  ;;  %v2493_v29 = vmul.f32 %v6404_v17, %v6396_v10  ;;  %v6243_v5 = vpop.permute.xlu0 %6242  ;;  %v6308_v17 = vld [vmem:[#allocation16 + $0x8] sm:$0xff]  }
 0xbf4   : > { %5696 = vmatpush3.bf16.msra.mxu1 %v2545_v15  ;;  %v6245_v21 = vunpack.i.h.bf16 %v6243_v5 }
 0xbf5   : > { %5713 = vmatprep.subr.bf16.mxu1 %v6309_v49 }
 0xbf6   : > { %v6406_v19 = vpop.eup %6405 }
 0xbf7   : > { %v6408_v28 = vpop.eup %6407  ;;  %v2494_v8 = vmul.f32 %v6406_v19, %v6400_v16  ;;  %v6233_v54 = vpop.permute.xlu1 %6232  ;;  %v6310_v19 = vld [vmem:[#allocation16 + $0x10] sm:$0xff]  }
 0xbf8   : > { %v2491_v30 = vmul.f32 %v6408_v28, %v6398_v13  ;;  %v6235_v0 = vunpack.i.h.bf16 %v6233_v54  ;;  %v6234_v2 = vunpack.i.l.bf16 %v6233_v54  ;;  %v6312_v28 = vld [vmem:[#allocation16 + $0x18] sm:$0xff]  }
 0xbf9   : > { %v2496_v12 = vpack.c.bf16 %v2494_v8, %v2493_v29  ;;  %v6315_v29 = vld [vmem:[#allocation19] sm:$0xff]   ;;  %v6317_v8 = vld [vmem:[#allocation19 + $0x10] sm:$0xff]  }
 0xbfa   : > { %v6410_v11 = vpop.eup %6409  ;;  %v2640_v45 = vsel %vm1630_vm2, %v7964_v1, %v6235_v0  ;;  %v2639_v13 = vsel %vm1630_vm2, %v7962_v63, %v6234_v2 }
 0xbfb   : > { %v2492_v31 = vmul.f32 %v6410_v11, %v6402_v22  ;;  %5698 = vmatmul.mubr.msk.bf16.vlgmr.msra.gmra.mrb[32].mxu1 %vm1630_vm2, %v2496_v12  ;;  %v6238_v55 = vpop.permute.xlu1 %6237  ;;  %v6244_v22 = vunpack.i.l.bf16 %v6243_v5  ;;  %v2645_v1 = vsel %vm2643_vm3, %v2640_v45, %v6245_v21  ;;  %v6318_v11 = vld [vmem:[#allocation19 + $0x18] sm:$0xff]  }
 0xbfc   : > { %5721 = vmatprep.mubr.msk.bf16.mxu1 %vm1384_vm0, %v7859_v9  ;;  %5714 = vmatpush3.bf16.msra.mxu1 %v6309_v49  ;;  %v6240_v60 = vunpack.i.h.bf16 %v6238_v55  ;;  %v6239_v62 = vunpack.i.l.bf16 %v6238_v55 }
 0xbfd   : > { %v2495_v32 = vpack.c.bf16 %v2492_v31, %v2491_v30  ;;  %5715 = vmatprep.subr.bf16.mxu1 %v6311_v43  ;;  %v2644_v26 = vsel %vm2643_vm3, %v2639_v13, %v6244_v22  ;;  %v5332_v30 = vld [vmem:[#allocation14] ss:$0 sm:$0xff] }
 0xbfe   : > { %v2642_v40 = vsel %vm1630_vm2, %v7960_v61, %v6240_v60 }
 0xbff   : > { %5692 = vmatmul.mubr.msk.bf16.vlgmr.msra.gmra.mrb[36].mxu0 %vm1630_vm2, %v2495_v32  ;;  %v6248_v56 = vpop.permute.xlu1 %6247 }
 0xc00   : > { %5702 = vmatpush3.bf16.msra.mxu0 %v6303_v33  ;;  %5716 = vmatpush3.bf16.msra.mxu1 %v6311_v43  ;;  %v6250_v3 = vunpack.i.h.bf16 %v6248_v56  ;;  %v6249_v4 = vunpack.i.l.bf16 %v6248_v56 }
 0xc01   : > { %5703 = vmatprep.subr.bf16.mxu0 %v6304_v34  ;;  %5717 = vmatprep.subr.bf16.mxu1 %v6313_v52 }
 0xc02   : > { %v2647_v47 = vsel %vm2643_vm3, %v2642_v40, %v6250_v3 }
 0xc04   : > { %5704 = vmatpush3.bf16.msra.mxu0 %v6304_v34  ;;  %5718 = vmatpush3.bf16.msra.mxu1 %v6313_v52 }
 0xc05   : > { %5705 = vmatprep.subr.bf16.mxu0 %v6305_v35  ;;  %5719 = vmatprep.subr.bf16.mxu1 %v6314_v53 }
 0xc08   : > { %5706 = vmatpush3.bf16.msra.mxu0 %v6305_v35  ;;  %5720 = vmatpush3.bf16.msra.mxu1 %v6314_v53 }
 0xc09   : > { %5707 = vmatprep.subr.bf16.mxu0 %v6306_v36  ;;  %5737 = vmatprep.subr.bf16.mxu1 %v6315_v29 }
 0xc0b   : > { %5722 = vmatmul.mubr.msk.bf16.vlgmr.msra.gmra.mrb[36].mxu1 %vm1384_vm0, %v7874_v18  ;;  %v2641_v18 = vsel %vm1630_vm2, %v7958_v57, %v6239_v62  ;;  %v5346_v62 = vld [vmem:[#allocation20] ss:$0 sm:$0xff] }
 0xc0c   : > { %5708 = vmatpush3.bf16.msra.mxu0 %v6306_v36  ;;  %5745 = vmatprep.mubr.msk.bf16.mxu1 %vm1384_vm0, %v7867_v14  ;;  %v2646_v16 = vsel %vm2643_vm3, %v2641_v18, %v6249_v4 }
 0xc0d   : > { %5725 = vmatprep.subr.bf16.mxu0 %v8080_v38  ;;  %5738 = vmatpush3.bf16.msra.mxu1 %v6315_v29 }
 0xcce   : > { %v2584_v37 = vpop.f32.mrb[32].mxu1 }
 0xccf   : > { %v5699_v39 = vpop.f32.mrb[33].mxu1 }
 0xcd0   : > { %v2587_v41 = vpop.f32.mrb[34].mxu1 }
 0xcd1   : > { %v6256_v9 = vpack.i.bf16 %v2587_v41, %v2584_v37  ;;  %v5700_v42 = vpop.f32.mrb[35].mxu1 }
 0xcd2   : > { %v2537_v44 = vpop.f32.mrb[36].mxu0 }
 0xcd3   : > { %v5693_v46 = vpop.f32.mrb[37].mxu0  ;;  %6257 = vrot.lane.b32.xlu1 %v6256_v9, %s7291_s11 }
 0xcd4   : > { %v2540_v48 = vpop.f32.mrb[38].mxu0  ;;  %v5339_v46 = vld [vmem:[#allocation17] ss:$0 sm:$0xff] }
 0xcd5   : > { %v6251_v50 = vpack.i.bf16 %v2540_v48, %v2537_v44  ;;  %v5694_v51 = vpop.f32.mrb[39].mxu0 }
 0xcd7   : > { %6252 = vrot.lane.b32.xlu0 %v6251_v50, %s7291_s11 }
 0xcde   : > { %v5723_v12 = vpop.f32.mrb[36].mxu1 }
 0xcdf   : > { %v2831_v31 = vadd.f32 %v5723_v12, %v5332_v30  ;;  %v2822_v32 = vpop.f32.mrb[37].mxu1 }
 0xce0   : > { %v2823_v33 = vadd.f32 %v5332_v30, %v2822_v32  ;;  %v5724_v34 = vpop.f32.mrb[38].mxu1 }
 0xce1   : > { %v2834_v35 = vadd.f32 %v5724_v34, %v5332_v30  ;;  %v2825_v36 = vpop.f32.mrb[39].mxu1 }
 0xce2   : > { %v2826_v37 = vadd.f32 %v5332_v30, %v2825_v36 }
 0xce4   : > { %v8122_v39 = vpack.c.bf16 %v2826_v37, %v2823_v33 }
 0xd45   : > { %v6258_v6 = vpop.permute.xlu1 %6257 }
 0xd46   : > { %v6260_v7 = vunpack.i.h.bf16 %v6258_v6  ;;  %v6259_v10 = vunpack.i.l.bf16 %v6258_v6 }
 0xd48   : > { %v2651_v23 = vsel %vm2648_vm4, %v2646_v16, %v6259_v10  ;;  %v2652_v61 = vsel %vm2648_vm4, %v2647_v47, %v6260_v7 }
 0xd49   : > { %v6253_v58 = vpop.permute.xlu0 %6252  ;;  %v2654_v57 = vpack.c.bf16 %v2652_v61, %v2651_v23 }
 0xd4a   : > { %v6255_v25 = vunpack.i.h.bf16 %v6253_v58  ;;  %v6254_v59 = vunpack.i.l.bf16 %v6253_v58 }
 0xd4c   : > { %v2650_v63 = vsel %vm2648_vm4, %v2645_v1, %v6255_v25  ;;  %v2649_v27 = vsel %vm2648_vm4, %v2644_v26, %v6254_v59 }
 0xd4d   : > { %v2653_v15 = vpack.c.bf16 %v2650_v63, %v2649_v27 }
 0xd4f   : > { %5709 = vmatprep.mubr.msk.bf16.mxu0 %vm1384_vm0, %v2653_v15 }
 0xd50   : > { %5710 = vmatmul.mubr.msk.bf16.vlgmr.msra.gmra.mrb[40].mxu0 %vm1384_vm0, %v2654_v57 }
 0xd51   : > { %5726 = vmatpush3.bf16.msra.mxu0 %v8080_v38  ;;  %5733 = vmatprep.mubr.msk.bf16.mxu0 %vm1384_vm0, %v7867_v14  ;;  %v6316_v14 = vld [vmem:[#allocation19 + $0x8] sm:$0xff]   ;;  %v8120_v38 = vpack.c.bf16 %v2834_v35, %v2831_v31 }
 0xd52   : > { %5727 = vmatprep.subr.bf16.mxu0 %v6308_v17  ;;  %5739 = vmatprep.subr.bf16.mxu1 %v6316_v14 }
 0xd53   : > { %5740 = vmatpush3.bf16.msra.mxu1 %v6316_v14 }
 0xd54   : > { %5741 = vmatprep.subr.bf16.mxu1 %v6317_v8 }
 0xd55   : > { %5728 = vmatpush3.bf16.msra.mxu0 %v6308_v17 }
 0xd56   : > { %5729 = vmatprep.subr.bf16.mxu0 %v6310_v19 }
 0xd57   : > { %5742 = vmatpush3.bf16.msra.mxu1 %v6317_v8 }
 0xd58   : > { %5743 = vmatprep.subr.bf16.mxu1 %v6318_v11 }
 0xd59   : > { %5730 = vmatpush3.bf16.msra.mxu0 %v6310_v19 }
 0xd5a   : > { %5731 = vmatprep.subr.bf16.mxu0 %v6312_v28 }
 0xd5b   : > { %5744 = vmatpush3.bf16.msra.mxu1 %v6318_v11 }
 0xd5c   : > { %5755 = vmatprep.subr.bf16.mxu1 %v7284_v24 }
 0xd5d   : > { %5732 = vmatpush3.bf16.msra.mxu0 %v6312_v28 }
 0xd5e   : > { %5749 = vmatprep.subr.bf16.mxu0 %v7284_v24  ;;  %5746 = vmatmul.mubr.msk.bf16.vlgmr.msra.gmra.mrb[40].mxu1 %vm1384_vm0, %v7877_v20 }
 0xd5f   : > { %5757 = vmatprep.mubr.msk.bf16.mxu1 %vm7285_vm1, %v7284_v24 }
 0xd60   : > { %5734 = vmatmul.mubr.msk.bf16.vlgmr.msra.gmra.mrb[44].mxu0 %vm1384_vm0, %v7877_v20 }
 0xd61   : > { %5751 = vmatprep.mubr.msk.bf16.mxu0 %vm7285_vm1, %v7284_v24 }
 0xe23   : > { %v8124_v41 = vpop.f32.mrb[40].mxu0 }
 0xe24   : > { %v8126_v9 = vpop.f32.mrb[41].mxu0 }
 0xe25   : > { %v8128_v20 = vpop.f32.mrb[42].mxu0 }
 0xe26   : > { %v8130_v42 = vpop.f32.mrb[43].mxu0 }
 0xe31   : > { %v5747_v0 = vpop.f32.mrb[40].mxu1 }
 0xe32   : > { %v3007_v2 = vadd.f32 %v5747_v0, %v5346_v62  ;;  %v2998_v3 = vpop.f32.mrb[41].mxu1 }
 0xe33   : > { %v5735_v44 = vpop.f32.mrb[44].mxu0  ;;  %v2999_v4 = vadd.f32 %v5346_v62, %v2998_v3  ;;  %v5748_v5 = vpop.f32.mrb[42].mxu1 }
 0xe34   : > { %v2910_v48 = vpop.f32.mrb[45].mxu0  ;;  %v2919_v50 = vadd.f32 %v5735_v44, %v5339_v46  ;;  %v3010_v6 = vadd.f32 %v5748_v5, %v5346_v62  ;;  %v3001_v40 = vpop.f32.mrb[43].mxu1 }
 0xe35   : > { %v5736_v49 = vpop.f32.mrb[46].mxu0  ;;  %v2911_v52 = vadd.f32 %v5339_v46, %v2910_v48  ;;  %v3002_v18 = vadd.f32 %v5346_v62, %v3001_v40 }
 0xe36   : > { %v2922_v51 = vadd.f32 %v5736_v49, %v5339_v46  ;;  %v2913_v43 = vpop.f32.mrb[47].mxu0  ;;  %v8150_v7 = vpack.c.bf16 %v3010_v6, %v3007_v2 }
 0xe37   : > { %v2914_v53 = vadd.f32 %v5339_v46, %v2913_v43  ;;  %v8152_v10 = vpack.c.bf16 %v3002_v18, %v2999_v4 }
 0xe38   : > { %v8132_v54 = vpack.c.bf16 %v2922_v51, %v2919_v50 }
 0xe39   : > { %v8134_v55 = vpack.c.bf16 %v2914_v53, %v2911_v52 }
 0xe3a   : > { %v3070_v56 = vsel %vm1630_vm2, %v8132_v54, 0 }
 0xe3b   : > { %5756 = vmatpush3.bf16.xpose.msra.mxu1 %v3070_v56  ;;  %v3023_v60 = vsel %vm1630_vm2, %v8134_v55, 0 }
 0xe3c   : > { %5750 = vmatpush3.bf16.xpose.msra.mxu0 %v3023_v60  ;;  %5767 = vmatprep.subr.bf16.mxu1 %v7284_v24 }
 0xe3d   : > { %5761 = vmatprep.subr.bf16.mxu0 %v7284_v24 }
 0xe42   : > { %5758 = vmatmul.mubr.msk.bf16.vlgmr.msra.gmra.mrb[44].mxu1 %vm1630_vm2, %v8120_v38 }
 0xe43   : > { %5752 = vmatmul.mubr.msk.bf16.vlgmr.msra.gmra.mrb[48].mxu0 %vm1630_vm2, %v8122_v39  ;;  %5769 = vmatprep.mubr.msk.bf16.mxu1 %vm7285_vm1, %v7284_v24 }
 0xe44   : > { %5763 = vmatprep.mubr.msk.bf16.mxu0 %vm7285_vm1, %v7284_v24  ;;  %5768 = vmatpush3.bf16.msra.mxu1 %v8150_v7 }
 0xe45   : > { %5762 = vmatpush3.bf16.msra.mxu0 %v8152_v10  ;;  %5779 = vmatprep.subr.bf16.mxu1 %v7284_v24 }
 0xe46   : > { %5773 = vmatprep.subr.bf16.mxu0 %v7284_v24 }
 0xf15   : > { %v3106_v45 = vpop.f32.mrb[44].mxu1 }
 0xf16   : > { %v3059_v13 = vpop.f32.mrb[48].mxu0  ;;  %v5759_v16 = vpop.f32.mrb[45].mxu1  ;;  %v3119_v25 = vsel %vm1630_vm2, %v3106_v45, -inf }
 0xf17   : > { %v5753_v47 = vpop.f32.mrb[49].mxu0  ;;  %v3109_v21 = vpop.f32.mrb[46].mxu1  ;;  %v3113_v22 = vsel %vm1630_vm2, %v3059_v13, -inf }
 0xf18   : > { %v5760_v23 = vpop.f32.mrb[47].mxu1  ;;  %3114 = vmax.xlane.f32.xlu0 %v3113_v22  ;;  %v3062_v61 = vpop.f32.mrb[50].mxu0  ;;  %v3122_v59 = vsel %vm1630_vm2, %v3109_v21, -inf }
 0xf19   : > { %v5754_v58 = vpop.f32.mrb[51].mxu0  ;;  %v3116_v57 = vsel %vm1630_vm2, %v3062_v61, -inf }
 0xf1a   : > { %3117 = vmax.xlane.f32.xlu1 %v3116_v57 }
 0xf1c   : > { %3120 = vmax.xlane.f32.xlu0 %v3119_v25 }
 0xf20   : > { %3123 = vmax.xlane.f32.xlu0 %v3122_v59 }
 0xf2b   : > { %3304 = vrot.lane.b32.xlu1 %v8132_v54, %s7286_s1 }
 0xfa5   : > { %v3115_v26 = vpop.xlane.xlu0 %3114 }
 0xfa6   : > { %v3125_v1 = vsub.f32 %v3059_v13, %v3115_v26 }
 0xfa7   : > { %v3118_v63 = vpop.xlane.xlu1 %3117 }
 0xfa8   : > { %v3129_v17 = vmul.f32 1.442695, %v3125_v1  ;;  %v3126_v19 = vsub.f32 %v3062_v61, %v3118_v63 }
 0xfa9   : > { %v3121_v27 = vpop.xlane.xlu0 %3120 }
 0xfaa   : > { %v3127_v15 = vsub.f32 %v3106_v45, %v3121_v27  ;;  %v3131_v8 = vmul.f32 1.442695, %v3126_v19 }
 0xfab   : > { %v3305_v37 = vpop.permute.xlu1 %3304 }
 0xfac   : > { %v3133_v28 = vmul.f32 1.442695, %v3127_v15  ;;  %v3310_v2 = vsel %vm1630_vm2, %v3305_v37, 0 }
 0xfad   : > { %v3124_v29 = vpop.xlane.xlu0 %3123 }
 0xfae   : > { %6411 = vpow2.f32 %v3133_v28  ;;  %v3128_v14 = vsub.f32 %v3109_v21, %v3124_v29 }
 0xfaf   : > { %6413 = vpow2.f32 %v3129_v17 }
 0xfb0   : > { %v3135_v11 = vmul.f32 1.442695, %v3128_v14 }
 0xfb2   : > { %6415 = vpow2.f32 %v3135_v11 }
 0xfb3   : > { %6417 = vpow2.f32 %v3131_v8 }
 0xfb8   : > { %v6412_v12 = vpop.eup %6411 }
 0xfb9   : > { %v3143_v30 = vsel %vm1630_vm2, %v6412_v12, 0.0  ;;  %v6414_v31 = vpop.eup %6413 }
 0xfba   : > { %3144 = vadd.xlane.f32.xlu0 %v3143_v30  ;;  %v3137_v33 = vsel %vm1630_vm2, %v6414_v31, 0.0 }
 0xfbc   : > { %v6416_v32 = vpop.eup %6415 }
 0xfbd   : > { %v3146_v34 = vsel %vm1630_vm2, %v6416_v32, 0.0  ;;  %v6418_v35 = vpop.eup %6417 }
 0xfbe   : > { %3138 = vadd.xlane.f32.xlu0 %v3137_v33  ;;  %3147 = vadd.xlane.f32.xlu1 %v3146_v34  ;;  %v3140_v36 = vsel %vm1630_vm2, %v6418_v35, 0.0 }
 0xfc2   : > { %3141 = vadd.xlane.f32.xlu1 %v3140_v36 }
 0xfd3   : > { %3248 = vrot.lane.b32.xlu1 %v8122_v39, %s7286_s1 }
 0xfd4   : > { %3251 = vrot.lane.b32.xlu0 %v8134_v55, %s7286_s1 }
 0xfd7   : > { %3301 = vrot.lane.b32.xlu1 %v8120_v38, %s7286_s1 }
0x1047   : > { %v3145_v44 = vpop.xlane.xlu0 %3144 }
0x1048   : > { %6419 = vrcp.f32 %v3145_v44 }
0x104b   : > { %v3139_v46 = vpop.xlane.xlu0 %3138  ;;  %v3148_v48 = vpop.xlane.xlu1 %3147 }
0x104c   : > { %6421 = vrcp.f32 %v3148_v48 }
0x104d   : > { %6423 = vrcp.f32 %v3139_v46 }
0x104f   : > { %v3142_v49 = vpop.xlane.xlu1 %3141  ;;  %v3252_v3 = vpop.permute.xlu0 %3251 }
0x1050   : > { %6425 = vrcp.f32 %v3142_v49  ;;  %v3257_v6 = vsel %vm1630_vm2, %v3252_v3, 0 }
0x1052   : > { %v6420_v50 = vpop.eup %6419 }
0x1053   : > { %v3155_v52 = vmul.f32 %v6420_v50, %v6412_v12  ;;  %v3249_v4 = vpop.permute.xlu1 %3248 }
0x1056   : > { %v6422_v51 = vpop.eup %6421 }
0x1057   : > { %v6424_v43 = vpop.eup %6423  ;;  %v3156_v53 = vmul.f32 %v6422_v51, %v6416_v32  ;;  %v3302_v40 = vpop.permute.xlu1 %3301 }
0x1058   : > { %v3153_v62 = vmul.f32 %v6424_v43, %v6414_v31 }
0x1059   : > { %v3158_v60 = vpack.c.bf16 %v3156_v53, %v3155_v52 }
0x105a   : > { %v6426_v56 = vpop.eup %6425 }
0x105b   : > { %v3154_v0 = vmul.f32 %v6426_v56, %v6418_v35  ;;  %5770 = vmatmul.mubr.msk.bf16.vlgmr.msra.gmra.mrb[48].mxu1 %vm1630_vm2, %v3158_v60 }
0x105c   : > { %5780 = vmatpush3.bf16.xpose.msra.mxu1 %v3310_v2  ;;  %5781 = vmatprep.mubr.msk.bf16.mxu1 %vm7285_vm1, %v7284_v24 }
0x105d   : > { %v3157_v5 = vpack.c.bf16 %v3154_v0, %v3153_v62  ;;  %5791 = vmatprep.subr.bf16.mxu1 %v7284_v24 }
0x105f   : > { %5764 = vmatmul.mubr.msk.bf16.vlgmr.msra.gmra.mrb[52].mxu0 %vm1630_vm2, %v3157_v5 }
0x1060   : > { %5774 = vmatpush3.bf16.xpose.msra.mxu0 %v3257_v6  ;;  %5775 = vmatprep.mubr.msk.bf16.mxu0 %vm7285_vm1, %v7284_v24 }
0x1061   : > { %5785 = vmatprep.subr.bf16.mxu0 %v7284_v24 }
0x1063   : > { %5782 = vmatmul.mubr.msk.bf16.vlgmr.msra.gmra.mrb[52].mxu1 %vm1630_vm2, %v3302_v40 }
0x1064   : > { %5793 = vmatprep.mubr.msk.bf16.mxu1 %vm7285_vm1, %v7284_v24 }
0x1067   : > { %5776 = vmatmul.mubr.msk.bf16.vlgmr.msra.gmra.mrb[56].mxu0 %vm1630_vm2, %v3249_v4 }
0x1068   : > { %5787 = vmatprep.mubr.msk.bf16.mxu0 %vm7285_vm1, %v7284_v24 }
0x112e   : > { %v8190_v18 = vpop.f32.mrb[48].mxu1 }
0x112f   : > { %v5771_v45 = vpop.f32.mrb[49].mxu1 }
0x1130   : > { %v8192_v13 = vpop.f32.mrb[50].mxu1 }
0x1131   : > { %v5772_v16 = vpop.f32.mrb[51].mxu1 }
0x1132   : > { %v8194_v47 = vpop.f32.mrb[52].mxu0 }
0x1133   : > { %v5765_v21 = vpop.f32.mrb[53].mxu0 }
0x1134   : > { %v8196_v22 = vpop.f32.mrb[54].mxu0 }
0x1135   : > { %v5766_v23 = vpop.f32.mrb[55].mxu0 }
0x1136   : > { %v3346_v61 = vpop.f32.mrb[52].mxu1 }
0x1137   : > { %v5783_v58 = vpop.f32.mrb[53].mxu1  ;;  %v3359_v17 = vsel %vm1630_vm2, %v3346_v61, -inf }
0x1138   : > { %v3349_v57 = vpop.f32.mrb[54].mxu1 }
0x1139   : > { %v5784_v25 = vpop.f32.mrb[55].mxu1  ;;  %v3362_v19 = vsel %vm1630_vm2, %v3349_v57, -inf }
0x113a   : > { %v3293_v59 = vpop.f32.mrb[56].mxu0 }
0x113b   : > { %v5777_v26 = vpop.f32.mrb[57].mxu0  ;;  %v3353_v1 = vsel %vm1630_vm2, %v3293_v59, -inf }
0x113c   : > { %3354 = vmax.xlane.f32.xlu0 %v3353_v1  ;;  %v3296_v63 = vpop.f32.mrb[58].mxu0 }
0x113d   : > { %v5778_v27 = vpop.f32.mrb[59].mxu0  ;;  %v3356_v15 = vsel %vm1630_vm2, %v3296_v63, -inf }
0x113e   : > { %3357 = vmax.xlane.f32.xlu1 %v3356_v15 }
0x1140   : > { %3360 = vmax.xlane.f32.xlu0 %v3359_v17 }
0x1144   : > { %3363 = vmax.xlane.f32.xlu0 %v3362_v19 }
0x114f   : > { %3448 = vrot.lane.b32.xlu1 %v8150_v7, %s7286_s1 }
0x1153   : > { %3497 = vrot.lane.b32.xlu1 %v8134_v55, %s7287_s0 }
0x11c9   : > { %v3355_v28 = vpop.xlane.xlu0 %3354 }
0x11ca   : > { %v3365_v14 = vsub.f32 %v3293_v59, %v3355_v28 }
0x11cb   : > { %v3358_v29 = vpop.xlane.xlu1 %3357 }
0x11cc   : > { %v3369_v30 = vmul.f32 1.442695, %v3365_v14  ;;  %v3366_v31 = vsub.f32 %v3296_v63, %v3358_v29 }
0x11cd   : > { %v3361_v8 = vpop.xlane.xlu0 %3360 }
0x11ce   : > { %v3367_v11 = vsub.f32 %v3346_v61, %v3361_v8  ;;  %v3371_v35 = vmul.f32 1.442695, %v3366_v31 }
0x11cf   : > { %v3449_v12 = vpop.permute.xlu1 %3448 }
0x11d0   : > { %v3373_v32 = vmul.f32 1.442695, %v3367_v11  ;;  %5792 = vmatpush3.bf16.msra.mxu1 %v3449_v12 }
0x11d1   : > { %v3364_v33 = vpop.xlane.xlu0 %3363  ;;  %5803 = vmatprep.subr.bf16.mxu1 %v7284_v24 }
0x11d2   : > { %6427 = vpow2.f32 %v3373_v32  ;;  %v3368_v34 = vsub.f32 %v3349_v57, %v3364_v33 }
0x11d3   : > { %6429 = vpow2.f32 %v3369_v30  ;;  %v3498_v52 = vpop.permute.xlu1 %3497 }
0x11d4   : > { %v3375_v36 = vmul.f32 1.442695, %v3368_v34  ;;  %v3503_v57 = vsel %vm1630_vm2, %v3498_v52, 0 }
0x11d6   : > { %6431 = vpow2.f32 %v3375_v36 }
0x11d7   : > { %6433 = vpow2.f32 %v3371_v35 }
0x11dc   : > { %v6428_v37 = vpop.eup %6427 }
0x11dd   : > { %v3383_v44 = vsel %vm1630_vm2, %v6428_v37, 0.0  ;;  %v6430_v46 = vpop.eup %6429 }
0x11de   : > { %3384 = vadd.xlane.f32.xlu0 %v3383_v44  ;;  %v3377_v49 = vsel %vm1630_vm2, %v6430_v46, 0.0 }
0x11e0   : > { %v6432_v48 = vpop.eup %6431 }
0x11e1   : > { %v3386_v50 = vsel %vm1630_vm2, %v6432_v48, 0.0  ;;  %v6434_v51 = vpop.eup %6433 }
0x11e2   : > { %3378 = vadd.xlane.f32.xlu0 %v3377_v49  ;;  %3387 = vadd.xlane.f32.xlu1 %v3386_v50  ;;  %v3380_v43 = vsel %vm1630_vm2, %v6434_v51, 0.0 }
0x11e6   : > { %3381 = vadd.xlane.f32.xlu1 %v3380_v43 }
0x11f7   : > { %3548 = vrot.lane.b32.xlu1 %v8132_v54, %s7287_s0 }
0x11f8   : > { %3400 = vrot.lane.b32.xlu0 %v8152_v10, %s7286_s1  ;;  %s8677_s1 = smov %s8676_s7 }
0x11fb   : > { %3546 = vrot.lane.b32.xlu1 %v8120_v38, %s7287_s0 }
0x11fc   : > { %3495 = vrot.lane.b32.xlu0 %v8122_v39, %s7287_s0 }
0x126b   : > { %v3385_v53 = vpop.xlane.xlu0 %3384 }
0x126c   : > { %6435 = vrcp.f32 %v3385_v53 }
0x126f   : > { %v3379_v56 = vpop.xlane.xlu0 %3378  ;;  %v3388_v60 = vpop.xlane.xlu1 %3387 }
0x1270   : > { %6437 = vrcp.f32 %v3388_v60 }
0x1271   : > { %6439 = vrcp.f32 %v3379_v56 }
0x1273   : > { %v3401_v62 = vpop.permute.xlu0 %3400  ;;  %v3382_v0 = vpop.xlane.xlu1 %3381 }
0x1274   : > { %6441 = vrcp.f32 %v3382_v0  ;;  %5786 = vmatpush3.bf16.msra.mxu0 %v3401_v62 }
0x1275   : > { %5797 = vmatprep.subr.bf16.mxu0 %v7284_v24 }
0x1276   : > { %v6436_v2 = vpop.eup %6435 }
0x1277   : > { %v3395_v5 = vmul.f32 %v6436_v2, %v6428_v37  ;;  %v3549_v40 = vpop.permute.xlu1 %3548  ;;  %v3496_v59 = vpop.permute.xlu0 %3495 }
0x1278   : > { %v3554_v61 = vsel %vm1630_vm2, %v3549_v40, 0 }
0x127a   : > { %v6438_v3 = vpop.eup %6437 }
0x127b   : > { %v6440_v4 = vpop.eup %6439  ;;  %v3396_v6 = vmul.f32 %v6438_v3, %v6432_v48  ;;  %v3547_v25 = vpop.permute.xlu1 %3546 }
0x127c   : > { %v3393_v21 = vmul.f32 %v6440_v4, %v6430_v46 }
0x127d   : > { %v3398_v16 = vpack.c.bf16 %v3396_v6, %v3395_v5 }
0x127e   : > { %v6442_v45 = vpop.eup %6441 }
0x127f   : > { %v3394_v23 = vmul.f32 %v6442_v45, %v6434_v51  ;;  %5794 = vmatmul.mubr.msk.bf16.vlgmr.msra.gmra.mrb[56].mxu1 %vm1630_vm2, %v3398_v16 }
0x1280   : > { %5804 = vmatpush3.bf16.xpose.msra.mxu1 %v3554_v61  ;;  %5805 = vmatprep.mubr.msk.bf16.mxu1 %vm7285_vm1, %v7284_v24 }
0x1281   : > { %v3397_v58 = vpack.c.bf16 %v3394_v23, %v3393_v21  ;;  %5815 = vmatprep.subr.bf16.mxu1 %v7284_v24 }
0x1283   : > { %5788 = vmatmul.mubr.msk.bf16.vlgmr.msra.gmra.mrb[60].mxu0 %vm1630_vm2, %v3397_v58 }
0x1284   : > { %5798 = vmatpush3.bf16.xpose.msra.mxu0 %v3503_v57  ;;  %5799 = vmatprep.mubr.msk.bf16.mxu0 %vm7285_vm1, %v7284_v24 }
0x1285   : > { %5809 = vmatprep.subr.bf16.mxu0 %v7284_v24 }
0x1287   : > { %5806 = vmatmul.mubr.msk.bf16.vlgmr.msra.gmra.mrb[60].mxu1 %vm1630_vm2, %v3547_v25 }
0x1288   : > { %5817 = vmatprep.mubr.msk.bf16.mxu1 %vm7285_vm1, %v7284_v24 }
0x128b   : > { %5800 = vmatmul.mubr.msk.bf16.vlgmr.msra.gmra.mrb[64].mxu0 %vm1630_vm2, %v3496_v59 }
0x128c   : > { %5811 = vmatprep.mubr.msk.bf16.mxu0 %vm7285_vm1, %v7284_v24 }
0x1352   : > { %v8236_v26 = vpop.f32.mrb[56].mxu1 }
0x1353   : > { %v5795_v1 = vpop.f32.mrb[57].mxu1 }
0x1354   : > { %v8238_v63 = vpop.f32.mrb[58].mxu1 }
0x1355   : > { %v6266_v27 = vpack.i.bf16 %v8238_v63, %v8236_v26  ;;  %v5796_v15 = vpop.f32.mrb[59].mxu1 }
0x1356   : > { %v8242_v17 = vpop.f32.mrb[60].mxu0 }
0x1357   : > { %v5789_v19 = vpop.f32.mrb[61].mxu0 }
0x1358   : > { %v8244_v28 = vpop.f32.mrb[62].mxu0 }
0x1359   : > { %v6261_v29 = vpack.i.bf16 %v8244_v28, %v8242_v17  ;;  %v5790_v14 = vpop.f32.mrb[63].mxu0 }
0x135a   : > { %v3590_v8 = vpop.f32.mrb[60].mxu1 }
0x135b   : > { %v5807_v11 = vpop.f32.mrb[61].mxu1  ;;  %v3603_v37 = vsel %vm1630_vm2, %v3590_v8, -inf }
0x135c   : > { %v3593_v12 = vpop.f32.mrb[62].mxu1 }
0x135d   : > { %v5808_v30 = vpop.f32.mrb[63].mxu1  ;;  %v3606_v44 = vsel %vm1630_vm2, %v3593_v12, -inf }
0x135e   : > { %v3539_v31 = vpop.f32.mrb[64].mxu0 }
0x135f   : > { %v5801_v32 = vpop.f32.mrb[65].mxu0  ;;  %v3597_v33 = vsel %vm1630_vm2, %v3539_v31, -inf }
0x1360   : > { %3598 = vmax.xlane.f32.xlu0 %v3597_v33  ;;  %v3542_v34 = vpop.f32.mrb[66].mxu0 }
0x1361   : > { %v5802_v35 = vpop.f32.mrb[67].mxu0  ;;  %v3600_v36 = vsel %vm1630_vm2, %v3542_v34, -inf }
0x1362   : > { %3601 = vmax.xlane.f32.xlu1 %v3600_v36 }
0x1364   : > { %3604 = vmax.xlane.f32.xlu0 %v3603_v37 }
0x1368   : > { %3607 = vmax.xlane.f32.xlu0 %v3606_v44 }
0x1373   : > { %3690 = vrot.lane.b32.xlu1 %v8150_v7, %s7287_s0 }
0x1377   : > { %3739 = vrot.lane.b32.xlu1 %v8134_v55, %s7288_s23 }
0x13ed   : > { %v3599_v46 = vpop.xlane.xlu0 %3598 }
0x13ee   : > { %v3609_v49 = vsub.f32 %v3539_v31, %v3599_v46 }
0x13ef   : > { %v3602_v48 = vpop.xlane.xlu1 %3601 }
0x13f0   : > { %v3613_v52 = vmul.f32 1.442695, %v3609_v49  ;;  %v3610_v53 = vsub.f32 %v3542_v34, %v3602_v48 }
0x13f1   : > { %v3605_v50 = vpop.xlane.xlu0 %3604 }
0x13f2   : > { %v3611_v51 = vsub.f32 %v3590_v8, %v3605_v50  ;;  %v3615_v0 = vmul.f32 1.442695, %v3610_v53 }
0x13f3   : > { %v3691_v43 = vpop.permute.xlu1 %3690 }
0x13f4   : > { %v3617_v56 = vmul.f32 1.442695, %v3611_v51  ;;  %5816 = vmatpush3.bf16.msra.mxu1 %v3691_v43 }
0x13f5   : > { %v3608_v60 = vpop.xlane.xlu0 %3607  ;;  %5827 = vmatprep.subr.bf16.mxu1 %v7284_v24 }
0x13f6   : > { %6443 = vpow2.f32 %v3617_v56  ;;  %v3612_v62 = vsub.f32 %v3593_v12, %v3608_v60 }
0x13f7   : > { %6445 = vpow2.f32 %v3613_v52  ;;  %v3740_v21 = vpop.permute.xlu1 %3739 }
0x13f8   : > { %v3619_v2 = vmul.f32 1.442695, %v3612_v62  ;;  %v3745_v31 = vsel %vm1630_vm2, %v3740_v21, 0 }
0x13fa   : > { %6447 = vpow2.f32 %v3619_v2 }
0x13fb   : > { %6449 = vpow2.f32 %v3615_v0 }
0x1400   : > { %v6444_v55 = vpop.eup %6443 }
0x1401   : > { %v3627_v3 = vsel %vm1630_vm2, %v6444_v55, 0.0  ;;  %v6446_v4 = vpop.eup %6445 }
0x1402   : > { %3628 = vadd.xlane.f32.xlu0 %v3627_v3  ;;  %v3621_v6 = vsel %vm1630_vm2, %v6446_v4, 0.0 }
0x1404   : > { %v6448_v5 = vpop.eup %6447 }
0x1405   : > { %v3630_v40 = vsel %vm1630_vm2, %v6448_v5, 0.0  ;;  %v6450_v45 = vpop.eup %6449 }
0x1406   : > { %3622 = vadd.xlane.f32.xlu0 %v3621_v6  ;;  %3631 = vadd.xlane.f32.xlu1 %v3630_v40  ;;  %v3624_v16 = vsel %vm1630_vm2, %v6450_v45, 0.0 }
0x140a   : > { %3625 = vadd.xlane.f32.xlu1 %v3624_v16 }
0x141b   : > { %3790 = vrot.lane.b32.xlu1 %v8132_v54, %s7288_s23 }
0x141c   : > { %3643 = vrot.lane.b32.xlu0 %v8152_v10, %s7287_s0  ;;  %s8678_s0 = sld [smem:[#allocation64_spill]] }
0x141f   : > { %3788 = vrot.lane.b32.xlu1 %v8120_v38, %s7288_s23 }
0x1420   : > { %3737 = vrot.lane.b32.xlu0 %v8122_v39, %s7288_s23 }
0x148f   : > { %v3629_v23 = vpop.xlane.xlu0 %3628 }
0x1490   : > { %6451 = vrcp.f32 %v3629_v23 }
0x1493   : > { %v3623_v61 = vpop.xlane.xlu0 %3622  ;;  %v3632_v58 = vpop.xlane.xlu1 %3631 }
0x1494   : > { %6453 = vrcp.f32 %v3632_v58 }
0x1495   : > { %6455 = vrcp.f32 %v3623_v61 }
0x1497   : > { %v3644_v57 = vpop.permute.xlu0 %3643  ;;  %v3626_v25 = vpop.xlane.xlu1 %3625 }
0x1498   : > { %6457 = vrcp.f32 %v3626_v25  ;;  %5810 = vmatpush3.bf16.msra.mxu0 %v3644_v57 }
0x1499   : > { %5821 = vmatprep.subr.bf16.mxu0 %v7284_v24 }
0x149a   : > { %v6452_v54 = vpop.eup %6451 }
0x149b   : > { %v3639_v38 = vmul.f32 %v6452_v54, %v6444_v55  ;;  %v3791_v19 = vpop.permute.xlu1 %3790  ;;  %v3738_v33 = vpop.permute.xlu0 %3737 }
0x149c   : > { %v3796_v12 = vsel %vm1630_vm2, %v3791_v19, 0 }
0x149e   : > { %v6454_v59 = vpop.eup %6453 }
0x149f   : > { %v6456_v1 = vpop.eup %6455  ;;  %v3640_v15 = vmul.f32 %v6454_v59, %v6448_v5  ;;  %v3789_v32 = vpop.permute.xlu1 %3788 }
0x14a0   : > { %v3637_v8 = vmul.f32 %v6456_v1, %v6446_v4 }
0x14a1   : > { %v3642_v14 = vpack.c.bf16 %v3640_v15, %v3639_v38 }
0x14a2   : > { %v6458_v39 = vpop.eup %6457 }
0x14a3   : > { %v3638_v11 = vmul.f32 %v6458_v39, %v6450_v45  ;;  %5818 = vmatmul.mubr.msk.bf16.vlgmr.msra.gmra.mrb[64].mxu1 %vm1630_vm2, %v3642_v14 }
0x14a4   : > { %5828 = vmatpush3.bf16.xpose.msra.mxu1 %v3796_v12  ;;  %5829 = vmatprep.mubr.msk.bf16.mxu1 %vm7285_vm1, %v7284_v24 }
0x14a5   : > { %v3641_v30 = vpack.c.bf16 %v3638_v11, %v3637_v8  ;;  %5839 = vmatprep.subr.bf16.mxu1 %v7284_v24 }
0x14a7   : > { %5812 = vmatmul.mubr.msk.bf16.vlgmr.msra.gmra.mrb[68].mxu0 %vm1630_vm2, %v3641_v30 }
0x14a8   : > { %5822 = vmatpush3.bf16.xpose.msra.mxu0 %v3745_v31  ;;  %5823 = vmatprep.mubr.msk.bf16.mxu0 %vm7285_vm1, %v7284_v24 }
0x14a9   : > { %5833 = vmatprep.subr.bf16.mxu0 %v7284_v24 }
0x14ab   : > { %5830 = vmatmul.mubr.msk.bf16.vlgmr.msra.gmra.mrb[68].mxu1 %vm1630_vm2, %v3789_v32 }
0x14ac   : > { %5841 = vmatprep.mubr.msk.bf16.mxu1 %vm7285_vm1, %v7284_v24 }
0x14af   : > { %5824 = vmatmul.mubr.msk.bf16.vlgmr.msra.gmra.mrb[72].mxu0 %vm1630_vm2, %v3738_v33 }
0x14b0   : > { %5835 = vmatprep.mubr.msk.bf16.mxu0 %vm7285_vm1, %v7284_v24 }
0x1576   : > { %v3730_v34 = vpop.f32.mrb[64].mxu1 }
0x1577   : > { %v5819_v35 = vpop.f32.mrb[65].mxu1 }
0x1578   : > { %v3733_v36 = vpop.f32.mrb[66].mxu1 }
0x1579   : > { %v6276_v37 = vpack.i.bf16 %v3733_v36, %v3730_v34  ;;  %v5820_v44 = vpop.f32.mrb[67].mxu1  ;;  %v6319_v36 = vld [vmem:[#allocation22] sm:$0xff]  }
0x157a   : > { %v3683_v46 = vpop.f32.mrb[68].mxu0  ;;  %v6321_v44 = vld [vmem:[#allocation22 + $0x10] sm:$0xff]  }
0x157b   : > { %v5813_v48 = vpop.f32.mrb[69].mxu0 }
0x157c   : > { %v3686_v49 = vpop.f32.mrb[70].mxu0 }
0x157d   : > { %v6271_v50 = vpack.i.bf16 %v3686_v49, %v3683_v46  ;;  %v5814_v51 = vpop.f32.mrb[71].mxu0  ;;  %v6322_v46 = vld [vmem:[#allocation22 + $0x18] sm:$0xff]  }
0x157e   : > { %v3832_v43 = vpop.f32.mrb[68].mxu1 }
0x157f   : > { %v5831_v52 = vpop.f32.mrb[69].mxu1  ;;  %v3845_v3 = vsel %vm1630_vm2, %v3832_v43, -inf }
0x1580   : > { %v3835_v53 = vpop.f32.mrb[70].mxu1 }
0x1581   : > { %v5832_v56 = vpop.f32.mrb[71].mxu1  ;;  %v3848_v4 = vsel %vm1630_vm2, %v3835_v53, -inf }
0x1582   : > { %v3781_v60 = vpop.f32.mrb[72].mxu0 }
0x1583   : > { %v5825_v62 = vpop.f32.mrb[73].mxu0  ;;  %v3839_v0 = vsel %vm1630_vm2, %v3781_v60, -inf }
0x1584   : > { %3840 = vmax.xlane.f32.xlu0 %v3839_v0  ;;  %v3784_v24 = vpop.f32.mrb[74].mxu0  ;;  %v5325_v0 = vld [vmem:[#allocation11] ss:$0 sm:$0xff] }
0x1585   : > { %v5826_v2 = vpop.f32.mrb[75].mxu0  ;;  %v3842_v55 = vsel %vm1630_vm2, %v3784_v24, -inf }
0x1586   : > { %3843 = vmax.xlane.f32.xlu1 %v3842_v55  ;;  %v2738_v2 = vadd.f32 %v5325_v0, %v8130_v42  ;;  %v2743_v55 = vadd.f32 %v8124_v41, %v5325_v0 }
0x1588   : > { %3846 = vmax.xlane.f32.xlu0 %v3845_v3  ;;  %v6491_v3 = vld [vmem:[%s7855_s3] sm:$0xff] }
0x158c   : > { %3849 = vmax.xlane.f32.xlu0 %v3848_v4 }
0x1611   : > { %v3841_v5 = vpop.xlane.xlu0 %3840 }
0x1612   : > { %v3851_v6 = vsub.f32 %v3781_v60, %v3841_v5  ;;  %v2746_v5 = vadd.f32 %v8128_v20, %v5325_v0 }
0x1613   : > { %v3844_v40 = vpop.xlane.xlu1 %3843 }
0x1614   : > { %v3855_v21 = vmul.f32 1.442695, %v3851_v6  ;;  %v3852_v23 = vsub.f32 %v3784_v24, %v3844_v40  ;;  %v2735_v24 = vadd.f32 %v5325_v0, %v8126_v9  ;;  %v6492_v6 = vld [vmem:[%s7855_s3 + $0x8] sm:$0xff]  ;;  %v6494_v9 = vld [vmem:[%s7855_s3 + $0x18] sm:$0xff] }
0x1615   : > { %v3847_v45 = vpop.xlane.xlu0 %3846  ;;  %v8320_v40 = vadd.f32 %v6492_v6, %v2738_v2  ;;  %v6498_v2 = vld [vmem:[%s7851_s18 + $0x10] sm:$0xff] }
0x1616   : > { %v3853_v16 = vsub.f32 %v3832_v43, %v3847_v45  ;;  %v3857_v25 = vmul.f32 1.442695, %v3852_v23  ;;  %v8316_v4 = vadd.f32 %v6491_v3, %v2735_v24  ;;  %v6493_v45 = vld [vmem:[%s7855_s3 + $0x10] sm:$0xff]  ;;  %v8328_v23 = vadd.f32 %v6494_v9, %v2746_v5  ;;  %s8675_s3 = sld [smem:[#allocation65_spill]] }
0x1617   : > { %v4150_v41 = vsel %vm1384_vm0, %v8320_v40, 0.0 }
0x1618   : > { %v3859_v61 = vmul.f32 1.442695, %v3853_v16  ;;  %v8323_v16 = vadd.f32 %v6493_v45, %v2743_v55  ;;  %v4156_v42 = vsel %vm1384_vm0, %v8328_v23, 0.0 }
0x1619   : > { %v3850_v58 = vpop.xlane.xlu0 %3849 }
0x161a   : > { %6459 = vpow2.f32 %v3859_v61  ;;  %v3854_v57 = vsub.f32 %v3835_v53, %v3850_v58  ;;  %v4153_v20 = vsel %vm1384_vm0, %v8323_v16, 0.0 }
0x161b   : > { %6461 = vpow2.f32 %v3855_v21  ;;  %v4147_v21 = vsel %vm1384_vm0, %v8316_v4, 0.0 }
0x161c   : > { %v3861_v54 = vmul.f32 1.442695, %v3854_v57 }
0x161e   : > { %6463 = vpow2.f32 %v3861_v54 }
0x161f   : > { %6465 = vpow2.f32 %v3857_v25 }
0x1624   : > { %v6460_v59 = vpop.eup %6459 }
0x1625   : > { %v3869_v1 = vsel %vm1630_vm2, %v6460_v59, 0.0  ;;  %v6462_v38 = vpop.eup %6461 }
0x1626   : > { %3870 = vadd.xlane.f32.xlu0 %v3869_v1  ;;  %v3863_v19 = vsel %vm1630_vm2, %v6462_v38, 0.0 }
0x1628   : > { %v6464_v15 = vpop.eup %6463 }
0x1629   : > { %v3872_v39 = vsel %vm1630_vm2, %v6464_v15, 0.0  ;;  %v6466_v14 = vpop.eup %6465 }
0x162a   : > { %3864 = vadd.xlane.f32.xlu0 %v3863_v19  ;;  %3873 = vadd.xlane.f32.xlu1 %v3872_v39  ;;  %v3866_v8 = vsel %vm1630_vm2, %v6466_v14, 0.0 }
0x162e   : > { %3867 = vadd.xlane.f32.xlu1 %v3866_v8 }
0x163f   : > { %3932 = vrot.lane.b32.xlu1 %v8150_v7, %s7288_s23 }
0x1640   : > { %3885 = vrot.lane.b32.xlu0 %v8152_v10, %s7288_s23  ;;  %s8679_s23 = sld [smem:[#allocation67_spill]] }
0x1643   : > { %6262 = vrot.lane.b32.xlu1 %v6261_v29, %s7289_s16 }
0x1644   : > { %6272 = vrot.lane.b32.xlu0 %v6271_v50, %s7290_s8 }
0x1647   : > { %6267 = vrot.lane.b32.xlu1 %v6266_v27, %s7289_s16  ;;  %s8681_s16 = sld [smem:[#allocation71_spill]] }
0x164b   : > { %6277 = vrot.lane.b32.xlu1 %v6276_v37, %s7290_s8  ;;  %v6320_v37 = vld [vmem:[#allocation22 + $0x8] sm:$0xff]   ;;  %s7292_s8 = smov 64  }
0x16b3   : > { %v3871_v11 = vpop.xlane.xlu0 %3870 }
0x16b4   : > { %6467 = vrcp.f32 %v3871_v11 }
0x16b7   : > { %v3865_v7 = vpop.xlane.xlu0 %3864  ;;  %v3874_v12 = vpop.xlane.xlu1 %3873 }
0x16b8   : > { %6469 = vrcp.f32 %v3874_v12 }
0x16b9   : > { %6471 = vrcp.f32 %v3865_v7 }
0x16bb   : > { %v3886_v10 = vpop.permute.xlu0 %3885  ;;  %v3868_v30 = vpop.xlane.xlu1 %3867 }
0x16bc   : > { %6473 = vrcp.f32 %v3868_v30  ;;  %5834 = vmatpush3.bf16.msra.mxu0 %v3886_v10 }
0x16bd   : > { %5845 = vmatprep.subr.bf16.mxu0 %v6319_v36 }
0x16be   : > { %v6468_v28 = vpop.eup %6467 }
0x16bf   : > { %v3933_v17 = vpop.permute.xlu1 %3932  ;;  %v3881_v32 = vmul.f32 %v6468_v28, %v6460_v59  ;;  %v6273_v19 = vpop.permute.xlu0 %6272 }
0x16c0   : > { %5840 = vmatpush3.bf16.msra.mxu1 %v3933_v17  ;;  %v6275_v28 = vunpack.i.h.bf16 %v6273_v19 }
0x16c2   : > { %v6470_v29 = vpop.eup %6469 }
0x16c3   : > { %v6472_v31 = vpop.eup %6471  ;;  %v3882_v26 = vmul.f32 %v6470_v29, %v6464_v15  ;;  %v6263_v61 = vpop.permute.xlu1 %6262  ;;  %v6274_v29 = vunpack.i.l.bf16 %v6273_v19 }
0x16c4   : > { %v3879_v33 = vmul.f32 %v6472_v31, %v6462_v38  ;;  %v6265_v59 = vunpack.i.h.bf16 %v6263_v61  ;;  %v6264_v1 = vunpack.i.l.bf16 %v6263_v61 }
0x16c5   : > { %v3884_v27 = vpack.c.bf16 %v3882_v26, %v3881_v32 }
0x16c6   : > { %v6474_v63 = vpop.eup %6473  ;;  %v4028_v12 = vsel %vm1630_vm2, %v8196_v22, %v6265_v59  ;;  %v4027_v10 = vsel %vm1630_vm2, %v8194_v47, %v6264_v1 }
0x16c7   : > { %v3880_v34 = vmul.f32 %v6474_v63, %v6466_v14  ;;  %5842 = vmatmul.mubr.msk.bf16.vlgmr.msra.gmra.mrb[72].mxu1 %vm1630_vm2, %v3884_v27  ;;  %v6268_v58 = vpop.permute.xlu1 %6267  ;;  %v4031_v22 = vsel %vm2643_vm3, %v4027_v10, %v6274_v29  ;;  %v4032_v27 = vsel %vm2643_vm3, %v4028_v12, %v6275_v28 }
0x16c8   : > { %v6270_v25 = vunpack.i.h.bf16 %v6268_v58  ;;  %v6269_v54 = vunpack.i.l.bf16 %v6268_v58 }
0x16c9   : > { %v3883_v35 = vpack.c.bf16 %v3880_v34, %v3879_v33 }
0x16ca   : > { %v4030_v14 = vsel %vm1630_vm2, %v8192_v13, %v6270_v25  ;;  %v4029_v8 = vsel %vm1630_vm2, %v8190_v18, %v6269_v54 }
0x16cb   : > { %5836 = vmatmul.mubr.msk.bf16.vlgmr.msra.gmra.mrb[76].mxu0 %vm1630_vm2, %v3883_v35  ;;  %v6278_v57 = vpop.permute.xlu1 %6277  ;;  %v5369_v35 = vld [vmem:[#allocation23] ss:$0 sm:$0xff] }
0x16cc   : > { %5846 = vmatpush3.bf16.msra.mxu0 %v6319_v36  ;;  %v6280_v38 = vunpack.i.h.bf16 %v6278_v57  ;;  %v6279_v15 = vunpack.i.l.bf16 %v6278_v57 }
0x16cd   : > { %5847 = vmatprep.subr.bf16.mxu0 %v6320_v37 }
0x16ce   : > { %v4033_v30 = vsel %vm2643_vm3, %v4029_v8, %v6279_v15  ;;  %v4034_v17 = vsel %vm2643_vm3, %v4030_v14, %v6280_v38 }
0x16d0   : > { %5848 = vmatpush3.bf16.msra.mxu0 %v6320_v37 }
0x16d1   : > { %5849 = vmatprep.subr.bf16.mxu0 %v6321_v44 }
0x16d4   : > { %5850 = vmatpush3.bf16.msra.mxu0 %v6321_v44 }
0x16d5   : > { %5851 = vmatprep.subr.bf16.mxu0 %v6322_v46 }
0x16d8   : > { %5852 = vmatpush3.bf16.msra.mxu0 %v6322_v46 }
0x179a   : > { %v3972_v48 = vpop.f32.mrb[72].mxu1 }
0x179b   : > { %v5843_v49 = vpop.f32.mrb[73].mxu1 }
0x179c   : > { %v3975_v50 = vpop.f32.mrb[74].mxu1 }
0x179d   : > { %v6286_v51 = vpack.i.bf16 %v3975_v50, %v3972_v48  ;;  %v5844_v43 = vpop.f32.mrb[75].mxu1  ;;  %v6495_v50 = vld [vmem:[%s7851_s18] sm:$0xff] }
0x179e   : > { %v3925_v52 = vpop.f32.mrb[76].mxu0 }
0x179f   : > { %v5837_v53 = vpop.f32.mrb[77].mxu0  ;;  %6287 = vrot.lane.b32.xlu1 %v6286_v51, %s7291_s11 }
0x17a0   : > { %v3928_v56 = vpop.f32.mrb[78].mxu0 }
0x17a1   : > { %v6281_v60 = vpack.i.bf16 %v3928_v56, %v3925_v52  ;;  %v5838_v62 = vpop.f32.mrb[79].mxu0  ;;  %v6496_v52 = vld [vmem:[%s7851_s18 + $0x18] sm:$0xff] }
0x17a3   : > { %6282 = vrot.lane.b32.xlu0 %v6281_v60, %s7291_s11  ;;  %v6497_v60 = vld [vmem:[%s7851_s18 + $0x8] sm:$0xff]  ;;  %s8674_s18 = sld [smem:[#allocation62_spill]]  ;;  %s1316_s11 = sand.u32 1, %s7217_s10  }
0x17c2   : > { %4148 = vadd.xlane.f32.xlu0 %v4147_v21 }
0x17c3   : > { %4151 = vadd.xlane.f32.xlu1 %v4150_v41 }
0x17c6   : > { %4154 = vadd.xlane.f32.xlu0 %v4153_v20 }
0x17c7   : > { %4157 = vadd.xlane.f32.xlu1 %v4156_v42 }
0x1811   : > { %v6288_v39 = vpop.permute.xlu1 %6287 }
0x1812   : > { %v6290_v11 = vunpack.i.h.bf16 %v6288_v39  ;;  %v6289_v7 = vunpack.i.l.bf16 %v6288_v39 }
0x1814   : > { %v4037_v31 = vsel %vm2648_vm4, %v4033_v30, %v6289_v7  ;;  %v4038_v13 = vsel %vm2648_vm4, %v4034_v17, %v6290_v11 }
0x1815   : > { %v6283_v32 = vpop.permute.xlu0 %6282  ;;  %v4040_v18 = vpack.c.bf16 %v4038_v13, %v4037_v31 }
0x1816   : > { %v6285_v26 = vunpack.i.h.bf16 %v6283_v32  ;;  %v6284_v63 = vunpack.i.l.bf16 %v6283_v32 }
0x1818   : > { %v4036_v47 = vsel %vm2648_vm4, %v4032_v27, %v6285_v26  ;;  %v4035_v33 = vsel %vm2648_vm4, %v4031_v22, %v6284_v63 }
0x1819   : > { %v4039_v34 = vpack.c.bf16 %v4036_v47, %v4035_v33  ;;  %v6323_v47 = vld [vmem:[#allocation25] sm:$0xff]   ;;  %v6324_v33 = vld [vmem:[#allocation25 + $0x8] sm:$0xff]  }
0x181a   : > { %5857 = vmatprep.subr.bf16.mxu1 %v6323_v47 }
0x181b   : > { %5853 = vmatprep.mubr.msk.bf16.mxu0 %vm1384_vm0, %v4039_v34  ;;  %5858 = vmatpush3.bf16.msra.mxu1 %v6323_v47  ;;  %v6325_v34 = vld [vmem:[#allocation25 + $0x10] sm:$0xff]   ;;  %v6329_v47 = vld [vmem:[%s8674_s18 + $0x10] sm:$0xff]  }
0x181c   : > { %5854 = vmatmul.mubr.msk.bf16.vlgmr.msra.gmra.mrb[80].mxu0 %vm1384_vm0, %v4040_v18  ;;  %5859 = vmatprep.subr.bf16.mxu1 %v6324_v33 }
0x181f   : > { %5860 = vmatpush3.bf16.msra.mxu1 %v6324_v33 }
0x1820   : > { %5861 = vmatprep.subr.bf16.mxu1 %v6325_v34 }
0x1823   : > { %5862 = vmatpush3.bf16.msra.mxu1 %v6325_v34 }
0x184f   : > { %v4149_v6 = vpop.xlane.xlu0 %4148 }
0x1850   : > { %v4152_v45 = vpop.xlane.xlu1 %4151 }
0x1853   : > { %v4155_v21 = vpop.xlane.xlu0 %4154 }
0x1854   : > { %v4158_v9 = vpop.xlane.xlu1 %4157 }
0x18ef   : > { %v5855_v36 = vpop.f32.mrb[80].mxu0 }
0x18f0   : > { %v4120_v37 = vpop.f32.mrb[81].mxu0  ;;  %v4129_v56 = vadd.f32 %v5855_v36, %v5369_v35  ;;  %v8407_v36 = vld [vmem:[%s8674_s18] sm:$0xff]  }
0x18f1   : > { %v4121_v44 = vadd.f32 %v5369_v35, %v4120_v37  ;;  %v5856_v46 = vpop.f32.mrb[82].mxu0  ;;  %v6331_v37 = vld [vmem:[%s8675_s3] sm:$0xff]  }
0x18f2   : > { %v4132_v48 = vadd.f32 %v5856_v46, %v5369_v35  ;;  %v4123_v49 = vpop.f32.mrb[83].mxu0  ;;  %v4141_v55 = vadd.f32 %v6498_v2, %v4129_v56  ;;  %5881 = vmatprep.subr.bf16.mxu0 %v6331_v37  ;;  %v6335_v46 = vld [vmem:[%s8675_s3 + $0x10] sm:$0xff]  }
0x18f3   : > { %v4139_v51 = vadd.f32 %v6495_v50, %v4121_v44  ;;  %v4124_v43 = vadd.f32 %v5369_v35, %v4123_v49  ;;  %v6326_v35 = vld [vmem:[#allocation25 + $0x18] sm:$0xff]   ;;  %5882 = vmatpush3.bf16.msra.mxu0 %v6331_v37  ;;  %v6339_v49 = vld [vmem:[%s8675_s3 + $0x20] sm:$0xff]  }
0x18f4   : > { %v4142_v53 = vadd.f32 %v6496_v52, %v4132_v48  ;;  %v4165_v5 = vsel %vm1384_vm0, %v4141_v55, 0.0  ;;  %5863 = vmatprep.subr.bf16.mxu1 %v6326_v35  ;;  %v6333_v44 = vld [vmem:[%s8675_s3 + $0x8] sm:$0xff]   ;;  %v6337_v48 = vld [vmem:[%s8675_s3 + $0x18] sm:$0xff]  }
0x18f5   : > { %v4140_v62 = vadd.f32 %v6497_v60, %v4124_v43  ;;  %v4159_v0 = vsel %vm1384_vm0, %v4139_v51, 0.0  ;;  %5864 = vmatpush3.bf16.msra.mxu1 %v6326_v35  ;;  %5883 = vmatprep.subr.bf16.mxu0 %v6333_v44  ;;  %v6341_v50 = vld [vmem:[%s8675_s3 + $0x28] sm:$0xff]   ;;  %v6330_v35 = vld [vmem:[%s8674_s18 + $0x18] sm:$0xff]  }
0x18f6   : > { %4160 = vadd.xlane.f32.xlu0 %v4159_v0  ;;  %v4168_v24 = vsel %vm1384_vm0, %v4142_v53, 0.0  ;;  %5869 = vmatprep.subr.bf16.mxu1 %v8407_v36 }
0x18f7   : > { %4169 = vadd.xlane.f32.xlu1 %v4168_v24  ;;  %v4162_v3 = vsel %vm1384_vm0, %v4140_v62, 0.0  ;;  %5884 = vmatpush3.bf16.msra.mxu0 %v6333_v44 }
0x18f8   : > { %5885 = vmatprep.subr.bf16.mxu0 %v6335_v46 }
0x18fa   : > { %4163 = vadd.xlane.f32.xlu0 %v4162_v3 }
0x18fb   : > { %5886 = vmatpush3.bf16.msra.mxu0 %v6335_v46 }
0x18fc   : > { %5887 = vmatprep.subr.bf16.mxu0 %v6337_v48 }
0x18fe   : > { %4166 = vadd.xlane.f32.xlu0 %v4165_v5 }
0x18ff   : > { %5888 = vmatpush3.bf16.msra.mxu0 %v6337_v48  ;;  %v6334_v48 = vld [vmem:[%s8677_s1 + $0x8] sm:$0xff]  }
0x1900   : > { %5889 = vmatprep.subr.bf16.mxu0 %v6339_v49 }
0x1903   : > { %5890 = vmatpush3.bf16.msra.mxu0 %v6339_v49  ;;  %v6338_v49 = vld [vmem:[%s8677_s1 + $0x18] sm:$0xff]  }
0x1904   : > { %5891 = vmatprep.subr.bf16.mxu0 %v6341_v50 }
0x1907   : > { %5892 = vmatpush3.bf16.msra.mxu0 %v6341_v50  ;;  %v6340_v50 = vld [vmem:[%s8677_s1 + $0x20] sm:$0xff]  }
0x1983   : > { %v4161_v41 = vpop.xlane.xlu0 %4160 }
0x1984   : > { %v4170_v20 = vpop.xlane.xlu1 %4169  ;;  %v4171_v57 = vadd.f32 %v4161_v41, %v4149_v6 }
0x1985   : > { %v4174_v42 = vadd.f32 %v4170_v20, %v4158_v9 }
0x1986   : > { %v4176_v15 = vmul.f32 0.0078125, %v4171_v57 }
0x1987   : > { %v4179_v61 = vmul.f32 0.0078125, %v4174_v42  ;;  %v4164_v58 = vpop.xlane.xlu0 %4163 }
0x1988   : > { %v4172_v25 = vadd.f32 %v4164_v58, %v4152_v45  ;;  %v8376_v7 = vsub.f32 %v8316_v4, %v4176_v15  ;;  %v8388_v28 = vsub.f32 %v4139_v51, %v4176_v15 }
0x1989   : > { %v8363_v54 = vsub.f32 %v8328_v23, %v4179_v61 }
0x198a   : > { %v4177_v59 = vmul.f32 0.0078125, %v4172_v25  ;;  %v4188_v4 = vmul.f32 %v8376_v7, %v8376_v7  ;;  %v4204_v18 = vmul.f32 %v8388_v28, %v8388_v28  ;;  %v5378_v25 = vld [vmem:[#allocation31] ss:$0 sm:$0xff] }
0x198b   : > { %v4167_v1 = vpop.xlane.xlu0 %4166  ;;  %v4191_v38 = vmul.f32 %v8363_v54, %v8363_v54 }
0x198c   : > { %v8368_v19 = vsub.f32 %v8320_v40, %v4177_v59  ;;  %v4173_v39 = vadd.f32 %v4167_v1, %v4155_v21  ;;  %v8370_v14 = vsub.f32 %v4140_v62, %v4177_v59  ;;  %v8382_v40 = vsub.f32 %v4142_v53, %v4179_v61 }
0x198d   : > { %v4201_v8 = vsel %vm1384_vm0, %v4191_v38, 0.0  ;;  %v4192_v32 = vsel %vm1384_vm0, %v4188_v4, 0.0  ;;  %v4208_v63 = vsel %vm1384_vm0, %v4204_v18, 0.0 }
0x198e   : > { %v4178_v11 = vmul.f32 0.0078125, %v4173_v39  ;;  %4202 = vadd.xlane.f32.xlu1 %v4201_v8  ;;  %v4189_v23 = vmul.f32 %v8368_v19, %v8368_v19  ;;  %v4205_v30 = vmul.f32 %v8370_v14, %v8370_v14  ;;  %v4207_v31 = vmul.f32 %v8382_v40, %v8382_v40 }
0x1990   : > { %v8379_v12 = vsub.f32 %v8323_v16, %v4178_v11  ;;  %v4195_v10 = vsel %vm1384_vm0, %v4189_v23, 0.0  ;;  %v4211_v16 = vsel %vm1384_vm0, %v4205_v30, 0.0  ;;  %v8396_v13 = vsub.f32 %v4141_v55, %v4178_v11  ;;  %v5379_v11 = vld [vmem:[#allocation32] ss:$0 sm:$0xff]  ;;  %v5376_v23 = vld [vmem:[#allocation28] ss:$0 sm:$0xff] }
0x1991   : > { %v4217_v26 = vsel %vm1384_vm0, %v4207_v31, 0.0 }
0x1992   : > { %4196 = vadd.xlane.f32.xlu1 %v4195_v10  ;;  %v4190_v17 = vmul.f32 %v8379_v12, %v8379_v12  ;;  %v4206_v22 = vmul.f32 %v8396_v13, %v8396_v13 }
0x1994   : > { %v4198_v29 = vsel %vm1384_vm0, %v4190_v17, 0.0  ;;  %v4214_v27 = vsel %vm1384_vm0, %v4206_v22, 0.0 }
0x1995   : > { %4199 = vadd.xlane.f32.xlu0 %v4198_v29 }
0x1996   : > { %4212 = vadd.xlane.f32.xlu1 %v4211_v16 }
0x1999   : > { %4193 = vadd.xlane.f32.xlu0 %v4192_v32 }
0x199a   : > { %4218 = vadd.xlane.f32.xlu1 %v4217_v26 }
0x199d   : > { %4209 = vadd.xlane.f32.xlu0 %v4208_v63  ;;  %v6328_v63 = vld [vmem:[%s8674_s18 + $0x8] sm:$0xff]  }
0x19a1   : > { %4215 = vadd.xlane.f32.xlu0 %v4214_v27 }
0x1a1b   : > { %v4203_v51 = vpop.xlane.xlu1 %4202 }
0x1a1f   : > { %v4197_v43 = vpop.xlane.xlu1 %4196 }
0x1a22   : > { %v4200_v52 = vpop.xlane.xlu0 %4199 }
0x1a23   : > { %v4213_v53 = vpop.xlane.xlu1 %4212 }
0x1a24   : > { %v4221_v56 = vadd.f32 %v4213_v53, %v4197_v43  ;;  %v6343_v43 = vld [vmem:[%s8675_s3 + $0x30] sm:$0xff]   ;;  %v6345_v53 = vld [vmem:[%s8675_s3 + $0x38] sm:$0xff]  }
0x1a25   : > { %5893 = vmatprep.subr.bf16.mxu0 %v6343_v43 }
0x1a26   : > { %v4225_v60 = vmul.f32 0.0078125, %v4221_v56  ;;  %v4194_v62 = vpop.xlane.xlu0 %4193  ;;  %5894 = vmatpush3.bf16.msra.mxu0 %v6343_v43  ;;  %v6346_v56 = vld [vmem:[%s8677_s1 + $0x38] sm:$0xff]  }
0x1a27   : > { %v4219_v0 = vpop.xlane.xlu1 %4218  ;;  %5895 = vmatprep.subr.bf16.mxu0 %v6345_v53 }
0x1a28   : > { %v4229_v24 = vadd.f32 1e-05, %v4225_v60  ;;  %v4223_v2 = vadd.f32 %v4219_v0, %v4203_v51  ;;  %v6342_v51 = vld [vmem:[%s8677_s1 + $0x28] sm:$0xff]   ;;  %v5392_v60 = vld [vmem:[%s8678_s0] ss:$0 sm:$0xff] }
0x1a2a   : > { %v4227_v55 = vmul.f32 0.0078125, %v4223_v2  ;;  %v4210_v3 = vpop.xlane.xlu0 %4209  ;;  %6475 = vrsqrt.f32 %v4229_v24  ;;  %5896 = vmatpush3.bf16.msra.mxu0 %v6345_v53 }
0x1a2b   : > { %v4220_v5 = vadd.f32 %v4210_v3, %v4194_v62 }
0x1a2c   : > { %v4231_v6 = vadd.f32 1e-05, %v4227_v55 }
0x1a2d   : > { %v4224_v45 = vmul.f32 0.0078125, %v4220_v5 }
0x1a2e   : > { %v4216_v21 = vpop.xlane.xlu0 %4215  ;;  %6477 = vrsqrt.f32 %v4231_v6 }
0x1a2f   : > { %v4228_v9 = vadd.f32 1e-05, %v4224_v45  ;;  %v4222_v41 = vadd.f32 %v4216_v21, %v4200_v52  ;;  %v6344_v52 = vld [vmem:[%s8677_s1 + $0x30] sm:$0xff]  }
0x1a31   : > { %6479 = vrsqrt.f32 %v4228_v9  ;;  %v4226_v20 = vmul.f32 0.0078125, %v4222_v41 }
0x1a33   : > { %v4230_v42 = vadd.f32 1e-05, %v4226_v20 }
0x1a34   : > { %v6476_v61 = vpop.eup %6475 }
0x1a35   : > { %6481 = vrsqrt.f32 %v4230_v42  ;;  %v4261_v58 = vmul.f32 %v6476_v61, %v8370_v14  ;;  %v4237_v8 = vmul.f32 %v6476_v61, %v8368_v19  ;;  %v5377_v19 = vld [vmem:[#allocation29] ss:$0 sm:$0xff] }
0x1a37   : > { %v4271_v39 = vmul.f32 %v5378_v25, %v4261_v58  ;;  %v5401_v58 = vld [vmem:[%s8679_s23] ss:$0 sm:$0xff]  ;;  %s8682_s23 = sld [smem:[#allocation78_spill]] }
0x1a38   : > { %v6478_v57 = vpop.eup %6477 }
0x1a39   : > { %v4263_v1 = vmul.f32 %v6478_v57, %v8382_v40  ;;  %v8424_v16 = vadd.f32 %v5379_v11, %v4271_v39  ;;  %v4247_v40 = vmul.f32 %v5376_v23, %v4237_v8  ;;  %v4239_v33 = vmul.f32 %v6478_v57, %v8363_v54  ;;  %v6336_v54 = vld [vmem:[%s8677_s1 + $0x10] sm:$0xff]   ;;  %s8521_s1 = scalar_lea.sflag [#allocation4], %s1316_s11 }
0x1a3b   : > { %v6480_v59 = vpop.eup %6479  ;;  %v4273_v29 = vmul.f32 %v5378_v25, %v4263_v1  ;;  %v4249_v37 = vmul.f32 %v5376_v23, %v4239_v33 }
0x1a3c   : > { %v4236_v38 = vmul.f32 %v6480_v59, %v8376_v7  ;;  %v4260_v15 = vmul.f32 %v6480_v59, %v8388_v28 }
0x1a3d   : > { %v8433_v18 = vadd.f32 %v5379_v11, %v4273_v29  ;;  %v4259_v46 = vadd.f32 %v5377_v19, %v4249_v37  ;;  %p8683_p11 = scmp.ne.s32.totalorder %s8682_s23, 0 }
0x1a3e   : > { %v4270_v10 = vmul.f32 %v5378_v25, %v4260_v15  ;;  %v4246_v17 = vmul.f32 %v5376_v23, %v4236_v38 }
0x1a3f   : > { %v6482_v30 = vpop.eup %6481 }
0x1a40   : > { %v4262_v14 = vmul.f32 %v6482_v30, %v8396_v13  ;;  %v8422_v4 = vadd.f32 %v5379_v11, %v4270_v10  ;;  %v8428_v31 = vadd.f32 %v5377_v19, %v4246_v17  ;;  %v8435_v13 = vadd.f32 %v5377_v19, %v4247_v40 }
0x1a41   : > { %v4238_v27 = vmul.f32 %v6482_v30, %v8379_v12 }
0x1a42   : > { %v4272_v7 = vmul.f32 %v5378_v25, %v4262_v14  ;;  %v4294_v28 = vpack.c.bf16 %v8424_v16, %v8422_v4  ;;  %v4284_v22 = vpack.c.bf16 %v8435_v13, %v8428_v31 }
0x1a43   : > { %v4248_v34 = vmul.f32 %v5376_v23, %v4238_v27 }
0x1a44   : > { %5865 = vmatprep.mubr.msk.bf16.mxu1 %vm1384_vm0, %v4294_v28  ;;  %v8431_v32 = vadd.f32 %v5379_v11, %v4272_v7  ;;  %v5410_v7 = vld [vmem:[#allocation26] ss:$0 sm:$0xff] }
0x1a45   : > { %v4258_v44 = vadd.f32 %v5377_v19, %v4248_v34 }
0x1a46   : > { %v4295_v26 = vpack.c.bf16 %v8433_v18, %v8431_v32 }
0x1a47   : > { %v4285_v12 = vpack.c.bf16 %v4259_v46, %v4258_v44 }
0x1a48   : > { %5866 = vmatmul.mubr.msk.bf16.vlgmr.msra.gmra.mrb[76].mxu1 %vm1384_vm0, %v4295_v26 }
0x1a49   : > { %5870 = vmatpush3.bf16.msra.mxu1 %v8407_v36  ;;  %5877 = vmatprep.mubr.msk.bf16.mxu1 %vm1384_vm0, %v4284_v22  ;;  %v6332_v36 = vld [vmem:[%s8676_s7] sm:$0xff]   ;;  %s5281_s7 = sshll.u32 %s1316_s11, 5 }
0x1a4a   : > { %5871 = vmatprep.subr.bf16.mxu1 %v6328_v63  ;;  %s1318_s0 = scalar_lea.vmem [#allocation37], %s5281_s7 }
0x1a4d   : > { %5872 = vmatpush3.bf16.msra.mxu1 %v6328_v63 }
0x1a4e   : > { %5873 = vmatprep.subr.bf16.mxu1 %v6329_v47 }
0x1a51   : > { %5874 = vmatpush3.bf16.msra.mxu1 %v6329_v47 }
0x1a52   : > { %5875 = vmatprep.subr.bf16.mxu1 %v6330_v35 }
0x1a55   : > { %5876 = vmatpush3.bf16.msra.mxu1 %v6330_v35 }
0x1a56   : > { %5901 = vmatprep.subr.bf16.mxu1 %v6332_v36 }
0x1a58   : > { %5878 = vmatmul.mubr.msk.bf16.vlgmr.msra.gmra.mrb[76].mxu1 %vm1384_vm0, %v4285_v12 }
0x1a59   : > { %5902 = vmatpush3.bf16.msra.mxu1 %v6332_v36 }
0x1a5a   : > { %5903 = vmatprep.subr.bf16.mxu1 %v6334_v48 }
0x1a5d   : > { %5904 = vmatpush3.bf16.msra.mxu1 %v6334_v48 }
0x1a5e   : > { %5905 = vmatprep.subr.bf16.mxu1 %v6336_v54 }
0x1a61   : > { %5906 = vmatpush3.bf16.msra.mxu1 %v6336_v54 }
0x1a62   : > { %5907 = vmatprep.subr.bf16.mxu1 %v6338_v49 }
0x1a65   : > { %5908 = vmatpush3.bf16.msra.mxu1 %v6338_v49 }
0x1a66   : > { %5909 = vmatprep.subr.bf16.mxu1 %v6340_v50 }
0x1a69   : > { %5910 = vmatpush3.bf16.msra.mxu1 %v6340_v50 }
0x1a6a   : > { %5911 = vmatprep.subr.bf16.mxu1 %v6342_v51 }
0x1a6d   : > { %5912 = vmatpush3.bf16.msra.mxu1 %v6342_v51 }
0x1a6e   : > { %5913 = vmatprep.subr.bf16.mxu1 %v6344_v52 }
0x1a71   : > { %5914 = vmatpush3.bf16.msra.mxu1 %v6344_v52 }
0x1a72   : > { %5915 = vmatprep.subr.bf16.mxu1 %v6346_v56 }
0x1a75   : > { %5916 = vmatpush3.bf16.msra.mxu1 %v6346_v56 }
0x1b2b   : > { %v5879_v62 = vpop.f32.mrb[76].mxu1 }
0x1b2c   : > { %v4471_v0 = vadd.f32 %v5879_v62, %v5392_v60  ;;  %v4447_v24 = vpop.f32.mrb[77].mxu1 }
0x1b2d   : > { %v4469_v2 = vadd.f32 %v5392_v60, %v4447_v24  ;;  %v5880_v55 = vpop.f32.mrb[78].mxu1 }
0x1b2e   : > { %v4472_v3 = vadd.f32 %v5880_v55, %v5392_v60  ;;  %v4450_v5 = vpop.f32.mrb[79].mxu1  ;;  %v4475_v45 = vmax.f32 %v4471_v0, 0.0 }
0x1b2f   : > { %v4470_v6 = vadd.f32 %v5392_v60, %v4450_v5  ;;  %v4473_v9 = vmax.f32 %v4469_v2, 0.0 }
0x1b30   : > { %v4476_v21 = vmax.f32 %v4472_v3, 0.0 }
0x1b31   : > { %v4474_v41 = vmax.f32 %v4470_v6, 0.0 }
0x1b32   : > { %v4478_v20 = vpack.c.bf16 %v4476_v21, %v4475_v45 }
0x1b33   : > { %v4477_v42 = vpack.c.bf16 %v4474_v41, %v4473_v9 }
0x1b35   : > { %5897 = vmatprep.mubr.bf16.mxu0 %v4477_v42  ;;  %5917 = vmatprep.mubr.bf16.mxu1 %v4477_v42 }
0x1b36   : > { %5898 = vmatmul.mubr.bf16.vlgmr.msra.gmra.mrb[84].mxu0 %v4478_v20  ;;  %5918 = vmatmul.mubr.bf16.vlgmr.msra.gmra.mrb[80].mxu1 %v4478_v20 }
0x1c09   : > { %v5899_v61 = vpop.f32.mrb[84].mxu0  ;;  %v5919_v57 = vpop.f32.mrb[80].mxu1 }
0x1c0a   : > { %v4594_v25 = vadd.f32 %v5899_v61, %v4258_v44  ;;  %v4577_v59 = vpop.f32.mrb[85].mxu0  ;;  %v4705_v1 = vpop.f32.mrb[81].mxu1  ;;  %v4722_v26 = vadd.f32 %v5919_v57, %v8431_v32 }
0x1c0b   : > { %v4592_v38 = vadd.f32 %v4577_v59, %v8428_v31  ;;  %v5900_v15 = vpop.f32.mrb[86].mxu0  ;;  %v5920_v39 = vpop.f32.mrb[82].mxu1  ;;  %v4720_v29 = vadd.f32 %v4705_v1, %v8422_v4 }
0x1c0c   : > { %v4605_v8 = vadd.f32 %v5401_v58, %v4594_v25  ;;  %v4595_v11 = vadd.f32 %v5900_v15, %v4259_v46  ;;  %v4580_v23 = vpop.f32.mrb[87].mxu0  ;;  %v4708_v10 = vpop.f32.mrb[83].mxu1  ;;  %v4733_v47 = vadd.f32 %v5410_v7, %v4722_v26 }
0x1c0d   : > { %v4593_v30 = vadd.f32 %v4580_v23, %v8435_v13  ;;  %v4603_v17 = vadd.f32 %v5401_v58, %v4592_v38  ;;  %v4721_v19 = vadd.f32 %v4708_v10, %v8424_v16  ;;  %v4731_v63 = vadd.f32 %v5410_v7, %v4720_v29 }
0x1c0e   : > { %v4606_v14 = vadd.f32 %v5401_v58, %v4595_v11  ;;  %v4745_v40 = vsel %vm1384_vm0, %v4605_v8, 0.0  ;;  %v4723_v13 = vadd.f32 %v5920_v39, %v8433_v18  ;;  %v4757_v32 = vsel %vm1384_vm0, %v4733_v47, 0.0 }
0x1c0f   : > { %4746 = vadd.xlane.f32.xlu0 %v4745_v40  ;;  %v4604_v28 = vadd.f32 %v5401_v58, %v4593_v30  ;;  %v4739_v22 = vsel %vm1384_vm0, %v4603_v17, 0.0  ;;  %v4732_v4 = vadd.f32 %v5410_v7, %v4721_v19  ;;  %v4751_v33 = vsel %vm1384_vm0, %v4731_v63, 0.0 }
0x1c10   : > { %v4748_v31 = vsel %vm1384_vm0, %v4606_v14, 0.0  ;;  %v4734_v16 = vadd.f32 %v5410_v7, %v4723_v13 }
0x1c11   : > { %4749 = vadd.xlane.f32.xlu1 %v4748_v31  ;;  %v4742_v27 = vsel %vm1384_vm0, %v4604_v28, 0.0  ;;  %v4754_v34 = vsel %vm1384_vm0, %v4732_v4, 0.0 }
0x1c12   : > { %v4760_v35 = vsel %vm1384_vm0, %v4734_v16, 0.0 }
0x1c13   : > { %4740 = vadd.xlane.f32.xlu0 %v4739_v22 }
0x1c15   : > { %4743 = vadd.xlane.f32.xlu1 %v4742_v27 }
0x1c17   : > { %4752 = vadd.xlane.f32.xlu0 %v4751_v33 }
0x1c19   : > { %4755 = vadd.xlane.f32.xlu1 %v4754_v34  ;;  %v5413_v34 = vld [vmem:[%s8680_s5] ss:$0 sm:$0xff] }
0x1c1b   : > { %4758 = vadd.xlane.f32.xlu0 %v4757_v32 }
0x1c1d   : > { %4761 = vadd.xlane.f32.xlu1 %v4760_v35 }
0x1c9c   : > { %v4747_v37 = vpop.xlane.xlu0 %4746 }
0x1c9e   : > { %v4750_v18 = vpop.xlane.xlu1 %4749 }
0x1ca0   : > { %v4741_v44 = vpop.xlane.xlu0 %4740 }
0x1ca2   : > { %v4744_v36 = vpop.xlane.xlu1 %4743 }
0x1ca4   : > { %v4753_v46 = vpop.xlane.xlu0 %4752 }
0x1ca5   : > { %v4763_v12 = vadd.f32 %v4753_v46, %v4741_v44 }
0x1ca6   : > { %v4756_v48 = vpop.xlane.xlu1 %4755 }
0x1ca7   : > { %v4764_v54 = vadd.f32 %v4756_v48, %v4744_v36  ;;  %v4767_v50 = vmul.f32 0.0078125, %v4763_v12 }
0x1ca8   : > { %v4759_v49 = vpop.xlane.xlu0 %4758 }
0x1ca9   : > { %v4765_v51 = vadd.f32 %v4759_v49, %v4747_v37  ;;  %v4768_v52 = vmul.f32 0.0078125, %v4764_v54  ;;  %v8476_v60 = vsub.f32 %v4603_v17, %v4767_v50  ;;  %v4775_v3 = vsub.f32 %v4731_v63, %v4767_v50  ;;  %v5414_v37 = vld [vmem:[#allocation35] ss:$0 sm:$0xff] }
0x1caa   : > { %v4762_v43 = vpop.xlane.xlu1 %4761 }
0x1cab   : > { %v4769_v53 = vmul.f32 0.0078125, %v4765_v51  ;;  %v4766_v56 = vadd.f32 %v4762_v43, %v4750_v18  ;;  %v8480_v24 = vsub.f32 %v4604_v28, %v4768_v52  ;;  %v4779_v45 = vmul.f32 %v8476_v60, %v8476_v60 }
0x1cac   : > { %v4776_v21 = vsub.f32 %v4732_v4, %v4768_v52  ;;  %v4795_v61 = vmul.f32 %v4775_v3, %v4775_v3 }
0x1cad   : > { %v8478_v62 = vsub.f32 %v4605_v8, %v4769_v53  ;;  %v4770_v0 = vmul.f32 0.0078125, %v4766_v56  ;;  %v4780_v41 = vmul.f32 %v8480_v24, %v8480_v24  ;;  %v4777_v20 = vsub.f32 %v4733_v47, %v4769_v53 }
0x1cae   : > { %v4783_v42 = vsel %vm1384_vm0, %v4779_v45, 0.0  ;;  %v4796_v25 = vmul.f32 %v4776_v21, %v4776_v21  ;;  %v4799_v59 = vsel %vm1384_vm0, %v4795_v61, 0.0 }
0x1caf   : > { %v8482_v2 = vsub.f32 %v4606_v14, %v4770_v0  ;;  %v4781_v55 = vmul.f32 %v8478_v62, %v8478_v62  ;;  %v4778_v58 = vsub.f32 %v4734_v16, %v4770_v0  ;;  %v4786_v57 = vsel %vm1384_vm0, %v4780_v41, 0.0  ;;  %v5411_v0 = vld [vmem:[%s8681_s16] ss:$0 sm:$0xff]  ;;  %s4914_s16 = sshll.u32 %s1318_s0, 4  ;;  %s8513_s16 = int_to_ptr.vmem [resolvable:$true] %s4914_s16 }
0x1cb0   : > { %v4797_v1 = vmul.f32 %v4777_v20, %v4777_v20  ;;  %v4802_v38 = vsel %vm1384_vm0, %v4796_v25, 0.0  ;;  %s7115_s2 = scalar_lea.vmem %s8513_s16, 512 }
0x1cb1   : > { %v4789_v5 = vsel %vm1384_vm0, %v4781_v55, 0.0  ;;  %v4782_v6 = vmul.f32 %v8482_v2, %v8482_v2  ;;  %v4798_v15 = vmul.f32 %v4778_v58, %v4778_v58  ;;  %p7116_p8 = scmp.ne.s32.totalorder %s8513_s16, %s7115_s2 }
0x1cb2   : > { %4790 = vadd.xlane.f32.xlu0 %v4789_v5  ;;  %v4805_v39 = vsel %vm1384_vm0, %v4797_v1, 0.0  ;;  %v5412_v5 = vld [vmem:[#allocation34] ss:$0 sm:$0xff] }
0x1cb3   : > { %v4792_v9 = vsel %vm1384_vm0, %v4782_v6, 0.0  ;;  %v4808_v8 = vsel %vm1384_vm0, %v4798_v15, 0.0  ;;  %p7117_p13 = pnand %p7116_p8, %p8683_p11 }
0x1cb4   : > { %4793 = vadd.xlane.f32.xlu1 %v4792_v9 }
0x1cb5   : > { %p7118_p6 = pneg %p7117_p13 }
0x1cb6   : > { %4784 = vadd.xlane.f32.xlu0 %v4783_v42 }
0x1cb8   : > { %4787 = vadd.xlane.f32.xlu1 %v4786_v57 }
0x1cba   : > { %4800 = vadd.xlane.f32.xlu0 %v4799_v59 }
0x1cbc   : > { %4803 = vadd.xlane.f32.xlu1 %v4802_v38 }
0x1cbe   : > { %4806 = vadd.xlane.f32.xlu0 %v4805_v39 }
0x1cc0   : > { %4809 = vadd.xlane.f32.xlu1 %v4808_v8 }
0x1d3f   : > { %v4791_v11 = vpop.xlane.xlu0 %4790 }
0x1d41   : > { %v4794_v23 = vpop.xlane.xlu1 %4793 }
0x1d43   : > { %v4785_v10 = vpop.xlane.xlu0 %4784 }
0x1d45   : > { %v4788_v30 = vpop.xlane.xlu1 %4787 }
0x1d47   : > { %v4801_v17 = vpop.xlane.xlu0 %4800 }
0x1d48   : > { %v4811_v29 = vadd.f32 %v4801_v17, %v4785_v10 }
0x1d49   : > { %v4804_v14 = vpop.xlane.xlu1 %4803 }
0x1d4a   : > { %v4815_v40 = vmul.f32 0.0078125, %v4811_v29  ;;  %v4812_v7 = vadd.f32 %v4804_v14, %v4788_v30 }
0x1d4b   : > { %v4807_v28 = vpop.xlane.xlu0 %4806 }
0x1d4c   : > { %v4819_v19 = vadd.f32 1e-05, %v4815_v40  ;;  %v4816_v31 = vmul.f32 0.0078125, %v4812_v7  ;;  %v4813_v26 = vadd.f32 %v4807_v28, %v4791_v11 }
0x1d4d   : > { %v4810_v63 = vpop.xlane.xlu1 %4809 }
0x1d4e   : > { %6483 = vrsqrt.f32 %v4819_v19  ;;  %v4820_v22 = vadd.f32 1e-05, %v4816_v31  ;;  %v4817_v13 = vmul.f32 0.0078125, %v4813_v26  ;;  %v4814_v4 = vadd.f32 %v4810_v63, %v4794_v23 }
0x1d50   : > { %6485 = vrsqrt.f32 %v4820_v22  ;;  %v4821_v27 = vadd.f32 1e-05, %v4817_v13  ;;  %v4818_v47 = vmul.f32 0.0078125, %v4814_v4 }
0x1d52   : > { %6487 = vrsqrt.f32 %v4821_v27  ;;  %v4822_v33 = vadd.f32 1e-05, %v4818_v47 }
0x1d54   : > { %6489 = vrsqrt.f32 %v4822_v33 }
0x1d58   : > { %v6484_v16 = vpop.eup %6483 }
0x1d59   : > { %v4851_v32 = vmul.f32 %v6484_v16, %v4775_v3  ;;  %v4827_v56 = vmul.f32 %v6484_v16, %v8476_v60 }
0x1d5a   : > { %v6486_v35 = vpop.eup %6485 }
0x1d5b   : > { %v4861_v18 = vmul.f32 %v5413_v34, %v4851_v32  ;;  %v4852_v12 = vmul.f32 %v6486_v35, %v4776_v21  ;;  %v4837_v55 = vmul.f32 %v5411_v0, %v4827_v56  ;;  %v4828_v21 = vmul.f32 %v6486_v35, %v8480_v24 }
0x1d5c   : > { %v6488_v44 = vpop.eup %6487 }
0x1d5d   : > { %v4871_v36 = vadd.f32 %v5414_v37, %v4861_v18  ;;  %v4853_v46 = vmul.f32 %v6488_v44, %v4777_v20  ;;  %v4862_v50 = vmul.f32 %v5413_v34, %v4852_v12  ;;  %v4829_v3 = vmul.f32 %v6488_v44, %v8478_v62 }
0x1d5e   : > { %v6490_v48 = vpop.eup %6489  ;;  %v4847_v6 = vadd.f32 %v5412_v5, %v4837_v55  ;;  %v4838_v60 = vmul.f32 %v5411_v0, %v4828_v21 }
0x1d5f   : > { %4879 = vrot.lane.b32.xlu0 %v4871_v36, %s7292_s8  ;;  %v4863_v54 = vmul.f32 %v5413_v34, %v4853_v46  ;;  %v4854_v51 = vmul.f32 %v6490_v48, %v4778_v58  ;;  %v4872_v43 = vadd.f32 %v5414_v37, %v4862_v50  ;;  %v4839_v45 = vmul.f32 %v5411_v0, %v4829_v3 }
0x1d60   : > { %v4830_v42 = vmul.f32 %v6490_v48, %v8482_v2  ;;  %v4848_v58 = vadd.f32 %v5412_v5, %v4838_v60 }
0x1d61   : > { %v4873_v49 = vadd.f32 %v5414_v37, %v4863_v54  ;;  %v4864_v52 = vmul.f32 %v5413_v34, %v4854_v51  ;;  %v4849_v20 = vadd.f32 %v5412_v5, %v4839_v45 }
0x1d62   : > { %v4840_v57 = vmul.f32 %v5411_v0, %v4830_v42 }
0x1d63   : > { %4883 = vrot.lane.b32.xlu1 %v4873_v49, %s7292_s8  ;;  %v4874_v53 = vadd.f32 %v5414_v37, %v4864_v52 }
0x1d64   : > { %v4850_v2 = vadd.f32 %v5412_v5, %v4840_v57 }
0x1d67   : > { %4881 = vrot.lane.b32.xlu1 %v4872_v43, %s7292_s8 }
0x1d6b   : > { %4885 = vrot.lane.b32.xlu1 %v4874_v53, %s7292_s8  ;;  %s5424_s8 = sshll.u32 %s7492_s15, 9  ;;  %s7293_s15 = smov [#allocation37]  }
0x1d6c   : > { %s8516_s7 = scalar_lea.hbm %s7469_s13, %s5424_s8  ;;  %s7119_s3 = sshll.u32 %s7293_s15, 4  ;;  %s7120_s3 = int_to_ptr.vmem [resolvable:$false] %s7119_s3 }
0x1d6d   : > { %s7121_s4 = scalar_lea.vmem %s7120_s3, 1024  ;;  %p7122_p5 = scmp.lt.s32.totalorder %s8513_s16, %s7120_s3 }
0x1d6e   : > { %p7123_p0 = scmp.lt.s32.totalorder %s7121_s4, %s7115_s2 }
0x1d70   : > { %p7124_p9 = por %p7123_p0, %p7122_p5 }
0x1d72   : > { %p7125_p10 = pnand %p7124_p9, %p7118_p6 }
0x1dd1   : > { %v4880_v9 = vpop.permute.xlu0 %4879 }
0x1dd2   : > { %v4891_v41 = vsel %vm1384_vm0, %v4847_v6, %v4880_v9 }
0x1dd3   : > { %4895 = vst [vmem:[%s1318_s0] sm:$0xff] %v4891_v41 }
0x1dd5   : > { %v4884_v61 = vpop.permute.xlu1 %4883 }
0x1dd6   : > { %v4893_v62 = vsel %vm1384_vm0, %v4849_v20, %v4884_v61 }
0x1dd7   : > { %4897 = vst [vmem:[%s1318_s0 + $0x10] sm:$0xff] %v4893_v62 }
0x1dd9   : > { %v4882_v24 = vpop.permute.xlu1 %4881 }
0x1dda   : > { %v4892_v25 = vsel %vm1384_vm0, %v4848_v58, %v4882_v24 }
0x1ddb   : > { %4896 = vst [vmem:[%s1318_s0 + $0x8] sm:$0xff] %v4892_v25 }
0x1ddd   : > { %v4886_v59 = vpop.permute.xlu1 %4885 }
0x1dde   : > { %v4894_v1 = vsel %vm1384_vm0, %v4850_v2, %v4886_v59 }
0x1ddf   : > { %4898 = vst [vmem:[%s1318_s0 + $0x18] sm:$0xff] %v4894_v1 }
0x1de0   : > { %7128 = shalt.err (!%p7125_p10)
}
0x1de1   : > { %s7129_s11 = scalar_lea.hbm %s8516_s7, 512  ;;  %s7133_s0 = scalar_lea.hbm %s7469_s13, 1024 }
0x1de2   : > { %p7130_p12 = scmp.ne.s32.totalorder %s8516_s7, %s7129_s11  ;;  %p7134_p3 = scmp.lt.u32.totalorder %s8516_s7, %s7469_s13 }
0x1de3   : > { %p7135_p4 = scmp.lt.u32.totalorder %s7133_s0, %s7129_s11  ;;  %p7137_p8 = scmp.lt.u32.totalorder %s7129_s11, %s8516_s7 }
0x1de4   : > { %p7131_p1 = pnand %p7130_p12, %p8683_p11 }
0x1de5   : > { %p7136_p7 = por %p7135_p4, %p7134_p3 }
0x1de6   : > { %p7132_p2 = pneg %p7131_p1 }
0x1de7   : > { %p7138_p13 = por %p7137_p8, %p7136_p7 }
0x1de9   : > { %p7139_p6 = pnand %p7138_p13, %p7132_p2 }
0x1deb   : > { %7142 = shalt.err (!%p7139_p6)
}
0x1dec   : > { %s7294_s4 = smov 128   ;;  %s7295_s2 = smov 8  }
0x1ded   : > { %6013 = dma.vmem_to_hbm [thread:$0]  (%p8683_p11), %s8513_s16, 512, %s8516_s7, %s8521_s1, %s7294_s4, %s7294_s4, %s7295_s2  }
0x1dee PF: > { %s8684_s3 = sld [smem:[#allocation75_spill]]  ;;  %s8685_s8 = sld [smem:[#allocation73_spill]] }
0x1def   : > { %s8686_s15 = sld [smem:[#allocation79_spill]] }
0x1df4   : > { %p6130_p5 = scmp.ge.s32.totalorder %s8684_s3, 2  ;;  %s4929_s5 = sand.u32 1, %s8685_s8  }
0x1df5   : > { %p8687_p0 = scmp.ne.s32.totalorder %s8686_s15, 0  ;;  %s4930_s11 = scalar_lea.sflag [#allocation4], %s4929_s5 }
0x1df7   : > { %p6083_p9 = pnand %p6130_p5, %p8687_p0 }
0x1df9   : > { %7208 = dma.done.wait (!%p6083_p9), %s4930_s11, 512  }
0x1dfa   : > { %7210 = vsyncadd (!%p6083_p9), %s4930_s11, 4294966784  ;;  %s8688_s11 = sld [smem:[#allocation76_spill]]  ;;  %s8689_s0 = sld [smem:[#allocation74_spill]] }
0x1dfb   : > { %s8690_s6 = sld [smem:[#allocation77_spill]]  ;;  %s8691_s7 = smov %s7217_s10 }
0x1e00   : > { %p89_p10 = scmp.ge.s32.totalorder %s8688_s11, 4   ;;  %s8692_s10 = smov %s8689_s0 }
0x1e01   : > { %s8693_s0 = smov %s8690_s6 }
0x1e02   :  { %91 = sbr.rel (!%p89_p10) target bundleno = 76 (0x4c), region = 312 }
0x1e09   :  { %4935 = vsyncpa [#allocation3], 1 }
0x1e0a   :  { %4937 = vsyncpa [#allocation3 + $0x1], 1 }
0x1e0b   :  { %4938 = vsyncpa [#allocation6], 1 }
0x1e0c   :  { %4939 = vsyncpa [#allocation9], 1 }
0x1e0d   :  { %4940 = vsyncpa [#allocation12], 1 }
0x1e0e   :  { %4941 = vsyncpa [#allocation15], 1 }
0x1e0f   :  { %4942 = vsyncpa [#allocation18], 1 }
0x1e10   :  { %4943 = vsyncpa [#allocation21], 1 }
0x1e11   :  { %4944 = vsyncpa [#allocation24], 1 }
0x1e12   :  { %4945 = vsyncpa [#allocation27], 1 }
0x1e13   :  { %4946 = vsyncpa [#allocation30], 1 }
0x1e14   :  { %4947 = vsyncpa [#allocation33], 1 }
0x1e15   :  { %4948 = vsyncpa [#allocation36], 1 }
0x1e16   :  { %4949 = vsyncpa [#allocation4], 1 }
0x1e17   :  { %4951 = vsyncpa [#allocation4 + $0x1], 1 }

</bundles_post_ra>
